<compile_context>
chip_gen: v7x
topology: tpu7x:2x2x1
jax: 0.10.0
libtpu: 0.0.40
codegen_flags: <defaults>
</compile_context>

<pallas_src>
import jax
import jax.numpy as jnp
from jax import lax
from jax.experimental import pallas as pl
from jax.experimental.pallas import tpu as pltpu


# ---------------------------------------------------------------------------
# Fused kernel: one grid step == one batch element.
# ---------------------------------------------------------------------------
def _fused_up_block_kernel(
    x1_ref,          # (1, H1, W1, Cin)        upconv input (NHWC)
    x2p_ref,         # (1, H2+2, W2+2, Ce)     zero-padded skip input (NHWC)
    wup_ref,         # (4, Cin, Cout)          ConvTranspose2d taps, t = 2*di + dj
    bup_ref,         # (1, Cout)
    kup_ref,         # (4, Sh*Sw, H1*W1)       0/1 spatial scatter matrix per tap
    wskip_ref,       # (9, Ce, Cout)           skip 3x3 conv taps, t = 3*ky + kx
    skip_scale_ref,  # (1, Cout)               folded BN scale
    skip_bias_ref,   # (1, Cout)               folded conv bias + BN shift
    kbil_ref,        # (Sh*Sw, H2*W2)          bilinear (align_corners=True) matrix
    wf1_ref,         # (9, Cout, Cout)         final conv taps, concat half 1 (upconv)
    wf2_ref,         # (9, Cout, Cout)         final conv taps, concat half 2 (skip)
    fin_scale_ref,   # (1, Cout)
    fin_bias_ref,    # (1, Cout)
    o_ref,           # (1, Sh, Sw, Cout)
    zp1_ref,         # VMEM (Sh+2, Sw+2, Cout) padded upconv branch
    zp2_ref,         # VMEM (Sh+2, Sw+2, Cout) padded upsampled-skip branch
):
    f32 = jnp.float32
    _, H1, W1, Cin = x1_ref.shape
    _, H2p, W2p, Ce = x2p_ref.shape
    H2, W2 = H2p - 2, W2p - 2
    _, Sh, Sw, Cout = o_ref.shape

    # ---- branch 1: ConvTranspose2d(k=2, s=2) -> zero-padded VMEM scratch ----
    x1 = x1_ref[0].reshape(H1 * W1, Cin)
    up = jnp.zeros((Sh * Sw, Cout), f32)
    for t in range(4):
        y_t = jnp.dot(x1, wup_ref[t], preferred_element_type=f32)        # (H1*W1, Cout)
        up = up + jnp.dot(kup_ref[t], y_t, preferred_element_type=f32)   # (Sh*Sw, Cout)
    up = up + bup_ref[...]
    zp1_ref[...] = jnp.zeros_like(zp1_ref)
    zp1_ref[pl.ds(1, Sh), pl.ds(1, Sw), :] = up.reshape(Sh, Sw, Cout)

    # ---- branch 2: skip_conv 3x3 + BN + ReLU, then bilinear upsample ----
    acc = jnp.zeros((H2 * W2, Cout), f32)
    for t in range(9):
        ky, kx = divmod(t, 3)
        tap = x2p_ref[0, pl.ds(ky, H2), pl.ds(kx, W2), :].reshape(H2 * W2, Ce)
        acc = acc + jnp.dot(tap, wskip_ref[t], preferred_element_type=f32)
    s = jnp.maximum(acc * skip_scale_ref[...] + skip_bias_ref[...], 0.0)  # (H2*W2, Cout)
    u = jnp.dot(kbil_ref[...], s, preferred_element_type=f32)            # (Sh*Sw, Cout)
    zp2_ref[...] = jnp.zeros_like(zp2_ref)
    zp2_ref[pl.ds(1, Sh), pl.ds(1, Sw), :] = u.reshape(Sh, Sw, Cout)

    # ---- final: 3x3 conv over the (implicit) channel concat + BN + ReLU ----
    acc2 = jnp.zeros((Sh * Sw, Cout), f32)
    for t in range(9):
        ky, kx = divmod(t, 3)
        a = zp1_ref[pl.ds(ky, Sh), pl.ds(kx, Sw), :].reshape(Sh * Sw, Cout)
        b = zp2_ref[pl.ds(ky, Sh), pl.ds(kx, Sw), :].reshape(Sh * Sw, Cout)
        acc2 = acc2 + jnp.dot(a, wf1_ref[t], preferred_element_type=f32)
        acc2 = acc2 + jnp.dot(b, wf2_ref[t], preferred_element_type=f32)
    out = jnp.maximum(acc2 * fin_scale_ref[...] + fin_bias_ref[...], 0.0)
    o_ref[0] = out.reshape(Sh, Sw, Cout).astype(o_ref.dtype)


# ---------------------------------------------------------------------------
# Host-side helpers (all tiny, computed once per call).
# ---------------------------------------------------------------------------
def _bilinear_matrix_ac_true(out_size, in_size):
    """Row interpolation matrix matching F.interpolate(mode='bilinear', align_corners=True)."""
    if out_size == 1 or in_size == 1:
        return jnp.zeros((out_size, in_size), jnp.float32).at[:, 0].set(1.0)
    dst = jnp.arange(out_size, dtype=jnp.float32)
    src = dst * (in_size - 1.0) / (out_size - 1.0)
    i0 = jnp.clip(jnp.floor(src).astype(jnp.int32), 0, in_size - 1)
    i1 = jnp.clip(i0 + 1, 0, in_size - 1)
    frac = src - i0.astype(jnp.float32)
    rows = jnp.arange(out_size)
    A = jnp.zeros((out_size, in_size), jnp.float32)
    A = A.at[rows, i0].add(1.0 - frac)
    A = A.at[rows, i1].add(frac)
    return A


def _expand2x_matrix(out_size, in_size, offset):
    """0/1 matrix M with M[y, i] = 1 iff y == 2*i + offset (ConvTranspose k=2 s=2 scatter)."""
    y = jnp.arange(out_size)[:, None]
    i = jnp.arange(in_size)[None, :]
    return (y == 2 * i + offset).astype(jnp.float32)


def _fold_bn(conv_bias, gamma, beta, mean, var, eps):
    scale = gamma / jnp.sqrt(var + eps)
    bias = (conv_bias - mean) * scale + beta
    return (scale.reshape(1, -1).astype(jnp.float32),
            bias.reshape(1, -1).astype(jnp.float32))


# ---------------------------------------------------------------------------
# Wrapper: NCHW in, NCHW out (same as the PyTorch module).
# ---------------------------------------------------------------------------
def unet_decoder_up_block_forward(x1, x2, params, *, eps=1e-5):
    B, Cin, H1, W1 = x1.shape
    _, Ce, H2, W2 = x2.shape
    wup_t = params["upconv_w"]                      # (Cin, Cout, 2, 2)
    Cout = wup_t.shape[1]
    Sh, Sw = 2 * H1, 2 * W1                         # upconv (and upsample) output size

    # layout glue: NCHW -> NHWC (+ zero-pad the skip input for its 3x3 conv)
    x1_nhwc = jnp.transpose(x1, (0, 2, 3, 1)).astype(jnp.float32)
    x2_nhwc = jnp.transpose(x2, (0, 2, 3, 1)).astype(jnp.float32)
    x2p = jnp.pad(x2_nhwc, ((0, 0), (1, 1), (1, 1), (0, 0)))

    # ConvTranspose2d taps + spatial scatter matrices
    wup = jnp.stack([wup_t[:, :, di, dj] for di in (0, 1) for dj in (0, 1)])
    kup = jnp.stack([jnp.kron(_expand2x_matrix(Sh, H1, di), _expand2x_matrix(Sw, W1, dj))
                     for di in (0, 1) for dj in (0, 1)])             # (4, Sh*Sw, H1*W1)
    bup = params["upconv_b"].reshape(1, Cout).astype(jnp.float32)

    # skip_conv taps + folded eval-mode BN
    wsk_t = params["skip_w"]                        # (Cout, Ce, 3, 3)
    wskip = jnp.stack([wsk_t[:, :, ky, kx].T for ky in range(3) for kx in range(3)])
    skip_scale, skip_bias = _fold_bn(params["skip_b"], params["skip_bn_gamma"],
                                     params["skip_bn_beta"], params["skip_bn_mean"],
                                     params["skip_bn_var"], eps)

    # bilinear (align_corners=True) upsample H2xW2 -> ShxSw as one Kronecker matmul
    kbil = jnp.kron(_bilinear_matrix_ac_true(Sh, H2),
                    _bilinear_matrix_ac_true(Sw, W2))                # (Sh*Sw, H2*W2)

    # final conv taps, split into the two concat halves, + folded BN
    wf_t = params["conv_w"]                         # (Cout, 2*Cout, 3, 3)
    wf1 = jnp.stack([wf_t[:, :Cout, ky, kx].T for ky in range(3) for kx in range(3)])
    wf2 = jnp.stack([wf_t[:, Cout:, ky, kx].T for ky in range(3) for kx in range(3)])
    fin_scale, fin_bias = _fold_bn(params["conv_b"], params["conv_bn_gamma"],
                                   params["conv_bn_beta"], params["conv_bn_mean"],
                                   params["conv_bn_var"], eps)

    grid_spec = pltpu.PrefetchScalarGridSpec(
        num_scalar_prefetch=0,
        grid=(B,),
        in_specs=[
            pl.BlockSpec((1, H1, W1, Cin), lambda b: (b, 0, 0, 0)),
            pl.BlockSpec((1, H2 + 2, W2 + 2, Ce), lambda b: (b, 0, 0, 0)),
            pl.BlockSpec((4, Cin, Cout), lambda b: (0, 0, 0)),
            pl.BlockSpec((1, Cout), lambda b: (0, 0)),
            pl.BlockSpec((4, Sh * Sw, H1 * W1), lambda b: (0, 0, 0)),
            pl.BlockSpec((9, Ce, Cout), lambda b: (0, 0, 0)),
            pl.BlockSpec((1, Cout), lambda b: (0, 0)),
            pl.BlockSpec((1, Cout), lambda b: (0, 0)),
            pl.BlockSpec((Sh * Sw, H2 * W2), lambda b: (0, 0)),
            pl.BlockSpec((9, Cout, Cout), lambda b: (0, 0, 0)),
            pl.BlockSpec((9, Cout, Cout), lambda b: (0, 0, 0)),
            pl.BlockSpec((1, Cout), lambda b: (0, 0)),
            pl.BlockSpec((1, Cout), lambda b: (0, 0)),
        ],
        out_specs=pl.BlockSpec((1, Sh, Sw, Cout), lambda b: (b, 0, 0, 0)),
        scratch_shapes=[
            pltpu.VMEM((Sh + 2, Sw + 2, Cout), jnp.float32),
            pltpu.VMEM((Sh + 2, Sw + 2, Cout), jnp.float32),
        ],
    )

    out_nhwc = pl.pallas_call(
        _fused_up_block_kernel,
        out_shape=jax.ShapeDtypeStruct((B, Sh, Sw, Cout), jnp.float32),
        grid_spec=grid_spec,
        compiler_params=pltpu.CompilerParams(dimension_semantics=("parallel",)),
    )(x1_nhwc, x2p, wup, bup, kup, wskip, skip_scale, skip_bias,
      kbil, wf1, wf2, fin_scale, fin_bias)

    return jnp.transpose(out_nhwc, (0, 3, 1, 2))    # back to NCHW like PyTorch


# ---------------------------------------------------------------------------
# Pure-JAX reference (independent code path) for validation.
# ---------------------------------------------------------------------------
def _reference_forward(x1, x2, params, *, eps=1e-5):
    hi = lax.Precision.HIGHEST
    wup = params["upconv_w"]
    Cout = wup.shape[1]
    B, Cin, H1, W1 = x1.shape
    _, Ce, H2, W2 = x2.shape
    Sh, Sw = 2 * H1, 2 * W1

    x1_nhwc = jnp.transpose(x1, (0, 2, 3, 1))
    x2_nhwc = jnp.transpose(x2, (0, 2, 3, 1))

    # ConvTranspose2d(k=2, s=2)
    up = jnp.einsum("bhwc,cofg->bhfwgo", x1_nhwc, wup, precision=hi)
    up = up.reshape(B, Sh, Sw, Cout) + params["upconv_b"]

    # skip_conv + BN(eval) + ReLU
    s = lax.conv_general_dilated(
        x2_nhwc, jnp.transpose(params["skip_w"], (2, 3, 1, 0)),
        window_strides=(1, 1), padding=((1, 1), (1, 1)),
        dimension_numbers=("NHWC", "HWIO", "NHWC"), precision=hi)
    s = s + params["skip_b"]
    s = (s - params["skip_bn_mean"]) / jnp.sqrt(params["skip_bn_var"] + eps)
    s = s * params["skip_bn_gamma"] + params["skip_bn_beta"]
    s = jnp.maximum(s, 0.0)

    # bilinear upsample, align_corners=True (gather + lerp)
    ys = jnp.linspace(0.0, H2 - 1.0, Sh)
    xs = jnp.linspace(0.0, W2 - 1.0, Sw)
    y0 = jnp.clip(jnp.floor(ys).astype(jnp.int32), 0, H2 - 1)
    y1 = jnp.clip(y0 + 1, 0, H2 - 1)
    x0 = jnp.clip(jnp.floor(xs).astype(jnp.int32), 0, W2 - 1)
    x1i = jnp.clip(x0 + 1, 0, W2 - 1)
    fy = (ys - y0)[None, :, None, None]
    fx = (xs - x0)[None, None, :, None]
    r = s[:, y0] * (1.0 - fy) + s[:, y1] * fy
    s_up = r[:, :, x0] * (1.0 - fx) + r[:, :, x1i] * fx

    # concat + final conv + BN + ReLU
    z = jnp.concatenate([up, s_up], axis=-1)
    o = lax.conv_general_dilated(
        z, jnp.transpose(params["conv_w"], (2, 3, 1, 0)),
        window_strides=(1, 1), padding=((1, 1), (1, 1)),
        dimension_numbers=("NHWC", "HWIO", "NHWC"), precision=hi)
    o = o + params["conv_b"]
    o = (o - params["conv_bn_mean"]) / jnp.sqrt(params["conv_bn_var"] + eps)
    o = o * params["conv_bn_gamma"] + params["conv_bn_beta"]
    o = jnp.maximum(o, 0.0)
    return jnp.transpose(o, (0, 3, 1, 2))


if __name__ == "__main__":
    key = jax.random.PRNGKey(0)
    ks = jax.random.split(key, 16)

    batch, in_channels, out_channels, embed_dim = 2, 16, 32, 64
    H1 = W1 = 8          # x1 spatial -> upconv output 16x16
    H2 = W2 = 8          # skip spatial -> bilinearly upsampled to 16x16

    def uinit(k, shape, fan_in):
        bound = float(fan_in) ** -0.5
        return jax.random.uniform(k, shape, jnp.float32, -bound, bound)

    x1 = jax.random.normal(ks[0], (batch, in_channels, H1, W1), jnp.float32)
    x2 = jax.random.normal(ks[1], (batch, embed_dim, H2, W2), jnp.float32)

    params = {
        "upconv_w": uinit(ks[2], (in_channels, out_channels, 2, 2), in_channels * 4),
        "upconv_b": uinit(ks[3], (out_channels,), in_channels * 4),
        "skip_w": uinit(ks[4], (out_channels, embed_dim, 3, 3), embed_dim * 9),
        "skip_b": uinit(ks[5], (out_channels,), embed_dim * 9),
        "skip_bn_gamma": 1.0 + 0.1 * jax.random.normal(ks[6], (out_channels,), jnp.float32),
        "skip_bn_beta": 0.1 * jax.random.normal(ks[7], (out_channels,), jnp.float32),
        "skip_bn_mean": 0.1 * jax.random.normal(ks[8], (out_channels,), jnp.float32),
        "skip_bn_var": jax.random.uniform(ks[9], (out_channels,), jnp.float32, 0.5, 1.5),
        "conv_w": uinit(ks[10], (out_channels, 2 * out_channels, 3, 3), 2 * out_channels * 9),
        "conv_b": uinit(ks[11], (out_channels,), 2 * out_channels * 9),
        "conv_bn_gamma": 1.0 + 0.1 * jax.random.normal(ks[12], (out_channels,), jnp.float32),
        "conv_bn_beta": 0.1 * jax.random.normal(ks[13], (out_channels,), jnp.float32),
        "conv_bn_mean": 0.1 * jax.random.normal(ks[14], (out_channels,), jnp.float32),
        "conv_bn_var": jax.random.uniform(ks[15], (out_channels,), jnp.float32, 0.5, 1.5),
    }

    out = unet_decoder_up_block_forward(x1, x2, params)
    out = jax.block_until_ready(out)
    assert out.shape == (batch, out_channels, 2 * H1, 2 * W1), out.shape

    ref = _reference_forward(x1, x2, params)
    err = float(jnp.max(jnp.abs(out - ref)))
    assert err < 3e-3, f"max abs err {err}"

    print("KERNEL_OK")
</pallas_src>

<mosaic_0001>
module attributes {stable_mosaic.version = 11 : i64} {
  func.func @_fused_up_block_kernel(%arg0: i32, %arg1: memref<1x8x8x16xf32, #tpu.memory_space<vmem>>, %arg2: memref<1x10x10x64xf32, #tpu.memory_space<vmem>>, %arg3: memref<4x16x32xf32, #tpu.memory_space<vmem>>, %arg4: memref<1x32xf32, #tpu.memory_space<vmem>>, %arg5: memref<4x256x64xf32, #tpu.memory_space<vmem>>, %arg6: memref<9x64x32xf32, #tpu.memory_space<vmem>>, %arg7: memref<1x32xf32, #tpu.memory_space<vmem>>, %arg8: memref<1x32xf32, #tpu.memory_space<vmem>>, %arg9: memref<256x64xf32, #tpu.memory_space<vmem>>, %arg10: memref<9x32x32xf32, #tpu.memory_space<vmem>>, %arg11: memref<9x32x32xf32, #tpu.memory_space<vmem>>, %arg12: memref<1x32xf32, #tpu.memory_space<vmem>>, %arg13: memref<1x32xf32, #tpu.memory_space<vmem>>, %arg14: memref<1x16x16x32xf32, #tpu.memory_space<vmem>>, %arg15: memref<18x18x32xf32, #tpu.memory_space<vmem>>, %arg16: memref<18x18x32xf32, #tpu.memory_space<vmem>>) attributes {dimension_semantics = [#tpu.dimension_semantics<parallel>], iteration_bounds = array<i64: 2>, scalar_prefetch = 0 : i64, scratch_operands = 2 : i64, tpu.core_type = #tpu.core_type<tc>, window_params = [{transform_indices = @transform_0, window_bounds = array<i64: 1, 8, 8, 16>}, {transform_indices = @transform_1, window_bounds = array<i64: 1, 10, 10, 64>}, {pipeline_mode = #tpu.pipeline_mode<synchronous>, transform_indices = @transform_2, window_bounds = array<i64: 4, 16, 32>}, {pipeline_mode = #tpu.pipeline_mode<synchronous>, transform_indices = @transform_3, window_bounds = array<i64: 1, 32>}, {pipeline_mode = #tpu.pipeline_mode<synchronous>, transform_indices = @transform_4, window_bounds = array<i64: 4, 256, 64>}, {pipeline_mode = #tpu.pipeline_mode<synchronous>, transform_indices = @transform_5, window_bounds = array<i64: 9, 64, 32>}, {pipeline_mode = #tpu.pipeline_mode<synchronous>, transform_indices = @transform_6, window_bounds = array<i64: 1, 32>}, {pipeline_mode = #tpu.pipeline_mode<synchronous>, transform_indices = @transform_7, window_bounds = array<i64: 1, 32>}, {pipeline_mode = #tpu.pipeline_mode<synchronous>, transform_indices = @transform_8, window_bounds = array<i64: 256, 64>}, {pipeline_mode = #tpu.pipeline_mode<synchronous>, transform_indices = @transform_9, window_bounds = array<i64: 9, 32, 32>}, {pipeline_mode = #tpu.pipeline_mode<synchronous>, transform_indices = @transform_10, window_bounds = array<i64: 9, 32, 32>}, {pipeline_mode = #tpu.pipeline_mode<synchronous>, transform_indices = @transform_11, window_bounds = array<i64: 1, 32>}, {pipeline_mode = #tpu.pipeline_mode<synchronous>, transform_indices = @transform_12, window_bounds = array<i64: 1, 32>}, {transform_indices = @transform_13, window_bounds = array<i64: 1, 16, 16, 32>}]} {
    %c0 = arith.constant 0 : index
    %c0_0 = arith.constant 0 : index
    %c0_1 = arith.constant 0 : index
    %c0_2 = arith.constant 0 : index
    %0 = vector.load %arg1[%c0, %c0_0, %c0_1, %c0_2] : memref<1x8x8x16xf32, #tpu.memory_space<vmem>>, vector<1x8x8x16xf32>
    %1 = vector.shape_cast %0 : vector<1x8x8x16xf32> to vector<8x8x16xf32>
    %2 = vector.shape_cast %1 : vector<8x8x16xf32> to vector<64x16xf32>
    %cst = arith.constant 0.000000e+00 : f32
    %3 = vector.broadcast %cst : f32 to vector<256x32xf32>
    %c0_3 = arith.constant 0 : index
    %c0_4 = arith.constant 0 : index
    %c0_5 = arith.constant 0 : index
    %4 = vector.load %arg3[%c0_3, %c0_4, %c0_5] : memref<4x16x32xf32, #tpu.memory_space<vmem>>, vector<1x16x32xf32>
    %5 = vector.shape_cast %4 : vector<1x16x32xf32> to vector<16x32xf32>
    %cst_6 = arith.constant dense<0.000000e+00> : vector<64x32xf32>
    %6 = tpu.matmul %2, %5, %cst_6 {dimension_numbers = #tpu.dot_dimension_numbers<[1], [0], [0], [1], [0, 0, 1, 1], [], []>} : vector<64x16xf32>, vector<16x32xf32>, vector<64x32xf32> -> vector<64x32xf32>
    %c0_7 = arith.constant 0 : index
    %c0_8 = arith.constant 0 : index
    %c0_9 = arith.constant 0 : index
    %7 = vector.load %arg5[%c0_7, %c0_8, %c0_9] : memref<4x256x64xf32, #tpu.memory_space<vmem>>, vector<1x256x64xf32>
    %8 = vector.shape_cast %7 : vector<1x256x64xf32> to vector<256x64xf32>
    %cst_10 = arith.constant dense<0.000000e+00> : vector<256x32xf32>
    %9 = tpu.matmul %8, %6, %cst_10 {dimension_numbers = #tpu.dot_dimension_numbers<[1], [0], [0], [1], [0, 0, 1, 1], [], []>} : vector<256x64xf32>, vector<64x32xf32>, vector<256x32xf32> -> vector<256x32xf32>
    %10 = arith.addf %3, %9 : vector<256x32xf32>
    %c1 = arith.constant 1 : index
    %c0_11 = arith.constant 0 : index
    %c0_12 = arith.constant 0 : index
    %11 = vector.load %arg3[%c1, %c0_11, %c0_12] : memref<4x16x32xf32, #tpu.memory_space<vmem>>, vector<1x16x32xf32>
    %12 = vector.shape_cast %11 : vector<1x16x32xf32> to vector<16x32xf32>
    %cst_13 = arith.constant dense<0.000000e+00> : vector<64x32xf32>
    %13 = tpu.matmul %2, %12, %cst_13 {dimension_numbers = #tpu.dot_dimension_numbers<[1], [0], [0], [1], [0, 0, 1, 1], [], []>} : vector<64x16xf32>, vector<16x32xf32>, vector<64x32xf32> -> vector<64x32xf32>
    %c1_14 = arith.constant 1 : index
    %c0_15 = arith.constant 0 : index
    %c0_16 = arith.constant 0 : index
    %14 = vector.load %arg5[%c1_14, %c0_15, %c0_16] : memref<4x256x64xf32, #tpu.memory_space<vmem>>, vector<1x256x64xf32>
    %15 = vector.shape_cast %14 : vector<1x256x64xf32> to vector<256x64xf32>
    %cst_17 = arith.constant dense<0.000000e+00> : vector<256x32xf32>
    %16 = tpu.matmul %15, %13, %cst_17 {dimension_numbers = #tpu.dot_dimension_numbers<[1], [0], [0], [1], [0, 0, 1, 1], [], []>} : vector<256x64xf32>, vector<64x32xf32>, vector<256x32xf32> -> vector<256x32xf32>
    %17 = arith.addf %10, %16 : vector<256x32xf32>
    %c2 = arith.constant 2 : index
    %c0_18 = arith.constant 0 : index
    %c0_19 = arith.constant 0 : index
    %18 = vector.load %arg3[%c2, %c0_18, %c0_19] : memref<4x16x32xf32, #tpu.memory_space<vmem>>, vector<1x16x32xf32>
    %19 = vector.shape_cast %18 : vector<1x16x32xf32> to vector<16x32xf32>
    %cst_20 = arith.constant dense<0.000000e+00> : vector<64x32xf32>
    %20 = tpu.matmul %2, %19, %cst_20 {dimension_numbers = #tpu.dot_dimension_numbers<[1], [0], [0], [1], [0, 0, 1, 1], [], []>} : vector<64x16xf32>, vector<16x32xf32>, vector<64x32xf32> -> vector<64x32xf32>
    %c2_21 = arith.constant 2 : index
    %c0_22 = arith.constant 0 : index
    %c0_23 = arith.constant 0 : index
    %21 = vector.load %arg5[%c2_21, %c0_22, %c0_23] : memref<4x256x64xf32, #tpu.memory_space<vmem>>, vector<1x256x64xf32>
    %22 = vector.shape_cast %21 : vector<1x256x64xf32> to vector<256x64xf32>
    %cst_24 = arith.constant dense<0.000000e+00> : vector<256x32xf32>
    %23 = tpu.matmul %22, %20, %cst_24 {dimension_numbers = #tpu.dot_dimension_numbers<[1], [0], [0], [1], [0, 0, 1, 1], [], []>} : vector<256x64xf32>, vector<64x32xf32>, vector<256x32xf32> -> vector<256x32xf32>
    %24 = arith.addf %17, %23 : vector<256x32xf32>
    %c3 = arith.constant 3 : index
    %c0_25 = arith.constant 0 : index
    %c0_26 = arith.constant 0 : index
    %25 = vector.load %arg3[%c3, %c0_25, %c0_26] : memref<4x16x32xf32, #tpu.memory_space<vmem>>, vector<1x16x32xf32>
    %26 = vector.shape_cast %25 : vector<1x16x32xf32> to vector<16x32xf32>
    %cst_27 = arith.constant dense<0.000000e+00> : vector<64x32xf32>
    %27 = tpu.matmul %2, %26, %cst_27 {dimension_numbers = #tpu.dot_dimension_numbers<[1], [0], [0], [1], [0, 0, 1, 1], [], []>} : vector<64x16xf32>, vector<16x32xf32>, vector<64x32xf32> -> vector<64x32xf32>
    %c3_28 = arith.constant 3 : index
    %c0_29 = arith.constant 0 : index
    %c0_30 = arith.constant 0 : index
    %28 = vector.load %arg5[%c3_28, %c0_29, %c0_30] : memref<4x256x64xf32, #tpu.memory_space<vmem>>, vector<1x256x64xf32>
    %29 = vector.shape_cast %28 : vector<1x256x64xf32> to vector<256x64xf32>
    %cst_31 = arith.constant dense<0.000000e+00> : vector<256x32xf32>
    %30 = tpu.matmul %29, %27, %cst_31 {dimension_numbers = #tpu.dot_dimension_numbers<[1], [0], [0], [1], [0, 0, 1, 1], [], []>} : vector<256x64xf32>, vector<64x32xf32>, vector<256x32xf32> -> vector<256x32xf32>
    %31 = arith.addf %24, %30 : vector<256x32xf32>
    %c0_32 = arith.constant 0 : index
    %c0_33 = arith.constant 0 : index
    %32 = vector.load %arg4[%c0_32, %c0_33] : memref<1x32xf32, #tpu.memory_space<vmem>>, vector<1x32xf32>
    %33 = vector.broadcast %32 : vector<1x32xf32> to vector<256x32xf32>
    %34 = arith.addf %31, %33 : vector<256x32xf32>
    %cst_34 = arith.constant 0.000000e+00 : f32
    %35 = vector.broadcast %cst_34 : f32 to vector<18x18x32xf32>
    %c0_35 = arith.constant 0 : index
    %c0_36 = arith.constant 0 : index
    %c0_37 = arith.constant 0 : index
    %36 = vector.load %arg15[%c0_35, %c0_36, %c0_37] : memref<18x18x32xf32, #tpu.memory_space<vmem>>, vector<18x18x32xf32>
    tpu.vector_store %arg15[%c0_35, %c0_36, %c0_37], %35 {strides = array<i32>} : memref<18x18x32xf32, #tpu.memory_space<vmem>>, vector<18x18x32xf32>,
    %37 = vector.shape_cast %34 : vector<256x32xf32> to vector<16x16x32xf32>
    %c1_38 = arith.constant 1 : index
    %c1_39 = arith.constant 1 : index
    %c0_40 = arith.constant 0 : index
    %38 = vector.load %arg15[%c1_38, %c1_39, %c0_40] : memref<18x18x32xf32, #tpu.memory_space<vmem>>, vector<16x16x32xf32>
    tpu.vector_store %arg15[%c1_38, %c1_39, %c0_40], %37 {strides = array<i32>} : memref<18x18x32xf32, #tpu.memory_space<vmem>>, vector<16x16x32xf32>,
    %cst_41 = arith.constant 0.000000e+00 : f32
    %39 = vector.broadcast %cst_41 : f32 to vector<64x32xf32>
    %c0_42 = arith.constant 0 : index
    %c0_43 = arith.constant 0 : index
    %c0_44 = arith.constant 0 : index
    %c0_45 = arith.constant 0 : index
    %40 = vector.load %arg2[%c0_42, %c0_43, %c0_44, %c0_45] : memref<1x10x10x64xf32, #tpu.memory_space<vmem>>, vector<1x8x8x64xf32>
    %41 = vector.shape_cast %40 : vector<1x8x8x64xf32> to vector<8x8x64xf32>
    %42 = vector.shape_cast %41 : vector<8x8x64xf32> to vector<64x64xf32>
    %c0_46 = arith.constant 0 : index
    %c0_47 = arith.constant 0 : index
    %c0_48 = arith.constant 0 : index
    %43 = vector.load %arg6[%c0_46, %c0_47, %c0_48] : memref<9x64x32xf32, #tpu.memory_space<vmem>>, vector<1x64x32xf32>
    %44 = vector.shape_cast %43 : vector<1x64x32xf32> to vector<64x32xf32>
    %cst_49 = arith.constant dense<0.000000e+00> : vector<64x32xf32>
    %45 = tpu.matmul %42, %44, %cst_49 {dimension_numbers = #tpu.dot_dimension_numbers<[1], [0], [0], [1], [0, 0, 1, 1], [], []>} : vector<64x64xf32>, vector<64x32xf32>, vector<64x32xf32> -> vector<64x32xf32>
    %46 = arith.addf %39, %45 : vector<64x32xf32>
    %c0_50 = arith.constant 0 : index
    %c0_51 = arith.constant 0 : index
    %c1_52 = arith.constant 1 : index
    %c0_53 = arith.constant 0 : index
    %47 = vector.load %arg2[%c0_50, %c0_51, %c1_52, %c0_53] : memref<1x10x10x64xf32, #tpu.memory_space<vmem>>, vector<1x8x8x64xf32>
    %48 = vector.shape_cast %47 : vector<1x8x8x64xf32> to vector<8x8x64xf32>
    %49 = vector.shape_cast %48 : vector<8x8x64xf32> to vector<64x64xf32>
    %c1_54 = arith.constant 1 : index
    %c0_55 = arith.constant 0 : index
    %c0_56 = arith.constant 0 : index
    %50 = vector.load %arg6[%c1_54, %c0_55, %c0_56] : memref<9x64x32xf32, #tpu.memory_space<vmem>>, vector<1x64x32xf32>
    %51 = vector.shape_cast %50 : vector<1x64x32xf32> to vector<64x32xf32>
    %cst_57 = arith.constant dense<0.000000e+00> : vector<64x32xf32>
    %52 = tpu.matmul %49, %51, %cst_57 {dimension_numbers = #tpu.dot_dimension_numbers<[1], [0], [0], [1], [0, 0, 1, 1], [], []>} : vector<64x64xf32>, vector<64x32xf32>, vector<64x32xf32> -> vector<64x32xf32>
    %53 = arith.addf %46, %52 : vector<64x32xf32>
    %c0_58 = arith.constant 0 : index
    %c0_59 = arith.constant 0 : index
    %c2_60 = arith.constant 2 : index
    %c0_61 = arith.constant 0 : index
    %54 = vector.load %arg2[%c0_58, %c0_59, %c2_60, %c0_61] : memref<1x10x10x64xf32, #tpu.memory_space<vmem>>, vector<1x8x8x64xf32>
    %55 = vector.shape_cast %54 : vector<1x8x8x64xf32> to vector<8x8x64xf32>
    %56 = vector.shape_cast %55 : vector<8x8x64xf32> to vector<64x64xf32>
    %c2_62 = arith.constant 2 : index
    %c0_63 = arith.constant 0 : index
    %c0_64 = arith.constant 0 : index
    %57 = vector.load %arg6[%c2_62, %c0_63, %c0_64] : memref<9x64x32xf32, #tpu.memory_space<vmem>>, vector<1x64x32xf32>
    %58 = vector.shape_cast %57 : vector<1x64x32xf32> to vector<64x32xf32>
    %cst_65 = arith.constant dense<0.000000e+00> : vector<64x32xf32>
    %59 = tpu.matmul %56, %58, %cst_65 {dimension_numbers = #tpu.dot_dimension_numbers<[1], [0], [0], [1], [0, 0, 1, 1], [], []>} : vector<64x64xf32>, vector<64x32xf32>, vector<64x32xf32> -> vector<64x32xf32>
    %60 = arith.addf %53, %59 : vector<64x32xf32>
    %c0_66 = arith.constant 0 : index
    %c1_67 = arith.constant 1 : index
    %c0_68 = arith.constant 0 : index
    %c0_69 = arith.constant 0 : index
    %61 = vector.load %arg2[%c0_66, %c1_67, %c0_68, %c0_69] : memref<1x10x10x64xf32, #tpu.memory_space<vmem>>, vector<1x8x8x64xf32>
    %62 = vector.shape_cast %61 : vector<1x8x8x64xf32> to vector<8x8x64xf32>
    %63 = vector.shape_cast %62 : vector<8x8x64xf32> to vector<64x64xf32>
    %c3_70 = arith.constant 3 : index
    %c0_71 = arith.constant 0 : index
    %c0_72 = arith.constant 0 : index
    %64 = vector.load %arg6[%c3_70, %c0_71, %c0_72] : memref<9x64x32xf32, #tpu.memory_space<vmem>>, vector<1x64x32xf32>
    %65 = vector.shape_cast %64 : vector<1x64x32xf32> to vector<64x32xf32>
    %cst_73 = arith.constant dense<0.000000e+00> : vector<64x32xf32>
    %66 = tpu.matmul %63, %65, %cst_73 {dimension_numbers = #tpu.dot_dimension_numbers<[1], [0], [0], [1], [0, 0, 1, 1], [], []>} : vector<64x64xf32>, vector<64x32xf32>, vector<64x32xf32> -> vector<64x32xf32>
    %67 = arith.addf %60, %66 : vector<64x32xf32>
    %c0_74 = arith.constant 0 : index
    %c1_75 = arith.constant 1 : index
    %c1_76 = arith.constant 1 : index
    %c0_77 = arith.constant 0 : index
    %68 = vector.load %arg2[%c0_74, %c1_75, %c1_76, %c0_77] : memref<1x10x10x64xf32, #tpu.memory_space<vmem>>, vector<1x8x8x64xf32>
    %69 = vector.shape_cast %68 : vector<1x8x8x64xf32> to vector<8x8x64xf32>
    %70 = vector.shape_cast %69 : vector<8x8x64xf32> to vector<64x64xf32>
    %c4 = arith.constant 4 : index
    %c0_78 = arith.constant 0 : index
    %c0_79 = arith.constant 0 : index
    %71 = vector.load %arg6[%c4, %c0_78, %c0_79] : memref<9x64x32xf32, #tpu.memory_space<vmem>>, vector<1x64x32xf32>
    %72 = vector.shape_cast %71 : vector<1x64x32xf32> to vector<64x32xf32>
    %cst_80 = arith.constant dense<0.000000e+00> : vector<64x32xf32>
    %73 = tpu.matmul %70, %72, %cst_80 {dimension_numbers = #tpu.dot_dimension_numbers<[1], [0], [0], [1], [0, 0, 1, 1], [], []>} : vector<64x64xf32>, vector<64x32xf32>, vector<64x32xf32> -> vector<64x32xf32>
    %74 = arith.addf %67, %73 : vector<64x32xf32>
    %c0_81 = arith.constant 0 : index
    %c1_82 = arith.constant 1 : index
    %c2_83 = arith.constant 2 : index
    %c0_84 = arith.constant 0 : index
    %75 = vector.load %arg2[%c0_81, %c1_82, %c2_83, %c0_84] : memref<1x10x10x64xf32, #tpu.memory_space<vmem>>, vector<1x8x8x64xf32>
    %76 = vector.shape_cast %75 : vector<1x8x8x64xf32> to vector<8x8x64xf32>
    %77 = vector.shape_cast %76 : vector<8x8x64xf32> to vector<64x64xf32>
    %c5 = arith.constant 5 : index
    %c0_85 = arith.constant 0 : index
    %c0_86 = arith.constant 0 : index
    %78 = vector.load %arg6[%c5, %c0_85, %c0_86] : memref<9x64x32xf32, #tpu.memory_space<vmem>>, vector<1x64x32xf32>
    %79 = vector.shape_cast %78 : vector<1x64x32xf32> to vector<64x32xf32>
    %cst_87 = arith.constant dense<0.000000e+00> : vector<64x32xf32>
    %80 = tpu.matmul %77, %79, %cst_87 {dimension_numbers = #tpu.dot_dimension_numbers<[1], [0], [0], [1], [0, 0, 1, 1], [], []>} : vector<64x64xf32>, vector<64x32xf32>, vector<64x32xf32> -> vector<64x32xf32>
    %81 = arith.addf %74, %80 : vector<64x32xf32>
    %c0_88 = arith.constant 0 : index
    %c2_89 = arith.constant 2 : index
    %c0_90 = arith.constant 0 : index
    %c0_91 = arith.constant 0 : index
    %82 = vector.load %arg2[%c0_88, %c2_89, %c0_90, %c0_91] : memref<1x10x10x64xf32, #tpu.memory_space<vmem>>, vector<1x8x8x64xf32>
    %83 = vector.shape_cast %82 : vector<1x8x8x64xf32> to vector<8x8x64xf32>
    %84 = vector.shape_cast %83 : vector<8x8x64xf32> to vector<64x64xf32>
    %c6 = arith.constant 6 : index
    %c0_92 = arith.constant 0 : index
    %c0_93 = arith.constant 0 : index
    %85 = vector.load %arg6[%c6, %c0_92, %c0_93] : memref<9x64x32xf32, #tpu.memory_space<vmem>>, vector<1x64x32xf32>
    %86 = vector.shape_cast %85 : vector<1x64x32xf32> to vector<64x32xf32>
    %cst_94 = arith.constant dense<0.000000e+00> : vector<64x32xf32>
    %87 = tpu.matmul %84, %86, %cst_94 {dimension_numbers = #tpu.dot_dimension_numbers<[1], [0], [0], [1], [0, 0, 1, 1], [], []>} : vector<64x64xf32>, vector<64x32xf32>, vector<64x32xf32> -> vector<64x32xf32>
    %88 = arith.addf %81, %87 : vector<64x32xf32>
    %c0_95 = arith.constant 0 : index
    %c2_96 = arith.constant 2 : index
    %c1_97 = arith.constant 1 : index
    %c0_98 = arith.constant 0 : index
    %89 = vector.load %arg2[%c0_95, %c2_96, %c1_97, %c0_98] : memref<1x10x10x64xf32, #tpu.memory_space<vmem>>, vector<1x8x8x64xf32>
    %90 = vector.shape_cast %89 : vector<1x8x8x64xf32> to vector<8x8x64xf32>
    %91 = vector.shape_cast %90 : vector<8x8x64xf32> to vector<64x64xf32>
    %c7 = arith.constant 7 : index
    %c0_99 = arith.constant 0 : index
    %c0_100 = arith.constant 0 : index
    %92 = vector.load %arg6[%c7, %c0_99, %c0_100] : memref<9x64x32xf32, #tpu.memory_space<vmem>>, vector<1x64x32xf32>
    %93 = vector.shape_cast %92 : vector<1x64x32xf32> to vector<64x32xf32>
    %cst_101 = arith.constant dense<0.000000e+00> : vector<64x32xf32>
    %94 = tpu.matmul %91, %93, %cst_101 {dimension_numbers = #tpu.dot_dimension_numbers<[1], [0], [0], [1], [0, 0, 1, 1], [], []>} : vector<64x64xf32>, vector<64x32xf32>, vector<64x32xf32> -> vector<64x32xf32>
    %95 = arith.addf %88, %94 : vector<64x32xf32>
    %c0_102 = arith.constant 0 : index
    %c2_103 = arith.constant 2 : index
    %c2_104 = arith.constant 2 : index
    %c0_105 = arith.constant 0 : index
    %96 = vector.load %arg2[%c0_102, %c2_103, %c2_104, %c0_105] : memref<1x10x10x64xf32, #tpu.memory_space<vmem>>, vector<1x8x8x64xf32>
    %97 = vector.shape_cast %96 : vector<1x8x8x64xf32> to vector<8x8x64xf32>
    %98 = vector.shape_cast %97 : vector<8x8x64xf32> to vector<64x64xf32>
    %c8 = arith.constant 8 : index
    %c0_106 = arith.constant 0 : index
    %c0_107 = arith.constant 0 : index
    %99 = vector.load %arg6[%c8, %c0_106, %c0_107] : memref<9x64x32xf32, #tpu.memory_space<vmem>>, vector<1x64x32xf32>
    %100 = vector.shape_cast %99 : vector<1x64x32xf32> to vector<64x32xf32>
    %cst_108 = arith.constant dense<0.000000e+00> : vector<64x32xf32>
    %101 = tpu.matmul %98, %100, %cst_108 {dimension_numbers = #tpu.dot_dimension_numbers<[1], [0], [0], [1], [0, 0, 1, 1], [], []>} : vector<64x64xf32>, vector<64x32xf32>, vector<64x32xf32> -> vector<64x32xf32>
    %102 = arith.addf %95, %101 : vector<64x32xf32>
    %c0_109 = arith.constant 0 : index
    %c0_110 = arith.constant 0 : index
    %103 = vector.load %arg7[%c0_109, %c0_110] : memref<1x32xf32, #tpu.memory_space<vmem>>, vector<1x32xf32>
    %104 = vector.broadcast %103 : vector<1x32xf32> to vector<64x32xf32>
    %105 = arith.mulf %102, %104 : vector<64x32xf32>
    %c0_111 = arith.constant 0 : index
    %c0_112 = arith.constant 0 : index
    %106 = vector.load %arg8[%c0_111, %c0_112] : memref<1x32xf32, #tpu.memory_space<vmem>>, vector<1x32xf32>
    %107 = vector.broadcast %106 : vector<1x32xf32> to vector<64x32xf32>
    %108 = arith.addf %105, %107 : vector<64x32xf32>
    %cst_113 = arith.constant 0.000000e+00 : f32
    %109 = vector.broadcast %cst_113 : f32 to vector<64x32xf32>
    %110 = arith.maximumf %108, %109 : vector<64x32xf32>
    %c0_114 = arith.constant 0 : index
    %c0_115 = arith.constant 0 : index
    %111 = vector.load %arg9[%c0_114, %c0_115] : memref<256x64xf32, #tpu.memory_space<vmem>>, vector<256x64xf32>
    %cst_116 = arith.constant dense<0.000000e+00> : vector<256x32xf32>
    %112 = tpu.matmul %111, %110, %cst_116 {dimension_numbers = #tpu.dot_dimension_numbers<[1], [0], [0], [1], [0, 0, 1, 1], [], []>} : vector<256x64xf32>, vector<64x32xf32>, vector<256x32xf32> -> vector<256x32xf32>
    %cst_117 = arith.constant 0.000000e+00 : f32
    %113 = vector.broadcast %cst_117 : f32 to vector<18x18x32xf32>
    %c0_118 = arith.constant 0 : index
    %c0_119 = arith.constant 0 : index
    %c0_120 = arith.constant 0 : index
    %114 = vector.load %arg16[%c0_118, %c0_119, %c0_120] : memref<18x18x32xf32, #tpu.memory_space<vmem>>, vector<18x18x32xf32>
    tpu.vector_store %arg16[%c0_118, %c0_119, %c0_120], %113 {strides = array<i32>} : memref<18x18x32xf32, #tpu.memory_space<vmem>>, vector<18x18x32xf32>,
    %115 = vector.shape_cast %112 : vector<256x32xf32> to vector<16x16x32xf32>
    %c1_121 = arith.constant 1 : index
    %c1_122 = arith.constant 1 : index
    %c0_123 = arith.constant 0 : index
    %116 = vector.load %arg16[%c1_121, %c1_122, %c0_123] : memref<18x18x32xf32, #tpu.memory_space<vmem>>, vector<16x16x32xf32>
    tpu.vector_store %arg16[%c1_121, %c1_122, %c0_123], %115 {strides = array<i32>} : memref<18x18x32xf32, #tpu.memory_space<vmem>>, vector<16x16x32xf32>,
    %cst_124 = arith.constant 0.000000e+00 : f32
    %117 = vector.broadcast %cst_124 : f32 to vector<256x32xf32>
    %c0_125 = arith.constant 0 : index
    %c0_126 = arith.constant 0 : index
    %c0_127 = arith.constant 0 : index
    %118 = vector.load %arg15[%c0_125, %c0_126, %c0_127] : memref<18x18x32xf32, #tpu.memory_space<vmem>>, vector<16x16x32xf32>
    %119 = vector.shape_cast %118 : vector<16x16x32xf32> to vector<256x32xf32>
    %c0_128 = arith.constant 0 : index
    %c0_129 = arith.constant 0 : index
    %c0_130 = arith.constant 0 : index
    %120 = vector.load %arg16[%c0_128, %c0_129, %c0_130] : memref<18x18x32xf32, #tpu.memory_space<vmem>>, vector<16x16x32xf32>
    %121 = vector.shape_cast %120 : vector<16x16x32xf32> to vector<256x32xf32>
    %c0_131 = arith.constant 0 : index
    %c0_132 = arith.constant 0 : index
    %c0_133 = arith.constant 0 : index
    %122 = vector.load %arg10[%c0_131, %c0_132, %c0_133] : memref<9x32x32xf32, #tpu.memory_space<vmem>>, vector<1x32x32xf32>
    %123 = vector.shape_cast %122 : vector<1x32x32xf32> to vector<32x32xf32>
    %cst_134 = arith.constant dense<0.000000e+00> : vector<256x32xf32>
    %124 = tpu.matmul %119, %123, %cst_134 {dimension_numbers = #tpu.dot_dimension_numbers<[1], [0], [0], [1], [0, 0, 1, 1], [], []>} : vector<256x32xf32>, vector<32x32xf32>, vector<256x32xf32> -> vector<256x32xf32>
    %125 = arith.addf %117, %124 : vector<256x32xf32>
    %c0_135 = arith.constant 0 : index
    %c0_136 = arith.constant 0 : index
    %c0_137 = arith.constant 0 : index
    %126 = vector.load %arg11[%c0_135, %c0_136, %c0_137] : memref<9x32x32xf32, #tpu.memory_space<vmem>>, vector<1x32x32xf32>
    %127 = vector.shape_cast %126 : vector<1x32x32xf32> to vector<32x32xf32>
    %cst_138 = arith.constant dense<0.000000e+00> : vector<256x32xf32>
    %128 = tpu.matmul %121, %127, %cst_138 {dimension_numbers = #tpu.dot_dimension_numbers<[1], [0], [0], [1], [0, 0, 1, 1], [], []>} : vector<256x32xf32>, vector<32x32xf32>, vector<256x32xf32> -> vector<256x32xf32>
    %129 = arith.addf %125, %128 : vector<256x32xf32>
    %c0_139 = arith.constant 0 : index
    %c1_140 = arith.constant 1 : index
    %c0_141 = arith.constant 0 : index
    %130 = vector.load %arg15[%c0_139, %c1_140, %c0_141] : memref<18x18x32xf32, #tpu.memory_space<vmem>>, vector<16x16x32xf32>
    %131 = vector.shape_cast %130 : vector<16x16x32xf32> to vector<256x32xf32>
    %c0_142 = arith.constant 0 : index
    %c1_143 = arith.constant 1 : index
    %c0_144 = arith.constant 0 : index
    %132 = vector.load %arg16[%c0_142, %c1_143, %c0_144] : memref<18x18x32xf32, #tpu.memory_space<vmem>>, vector<16x16x32xf32>
    %133 = vector.shape_cast %132 : vector<16x16x32xf32> to vector<256x32xf32>
    %c1_145 = arith.constant 1 : index
    %c0_146 = arith.constant 0 : index
    %c0_147 = arith.constant 0 : index
    %134 = vector.load %arg10[%c1_145, %c0_146, %c0_147] : memref<9x32x32xf32, #tpu.memory_space<vmem>>, vector<1x32x32xf32>
    %135 = vector.shape_cast %134 : vector<1x32x32xf32> to vector<32x32xf32>
    %cst_148 = arith.constant dense<0.000000e+00> : vector<256x32xf32>
    %136 = tpu.matmul %131, %135, %cst_148 {dimension_numbers = #tpu.dot_dimension_numbers<[1], [0], [0], [1], [0, 0, 1, 1], [], []>} : vector<256x32xf32>, vector<32x32xf32>, vector<256x32xf32> -> vector<256x32xf32>
    %137 = arith.addf %129, %136 : vector<256x32xf32>
    %c1_149 = arith.constant 1 : index
    %c0_150 = arith.constant 0 : index
    %c0_151 = arith.constant 0 : index
    %138 = vector.load %arg11[%c1_149, %c0_150, %c0_151] : memref<9x32x32xf32, #tpu.memory_space<vmem>>, vector<1x32x32xf32>
    %139 = vector.shape_cast %138 : vector<1x32x32xf32> to vector<32x32xf32>
    %cst_152 = arith.constant dense<0.000000e+00> : vector<256x32xf32>
    %140 = tpu.matmul %133, %139, %cst_152 {dimension_numbers = #tpu.dot_dimension_numbers<[1], [0], [0], [1], [0, 0, 1, 1], [], []>} : vector<256x32xf32>, vector<32x32xf32>, vector<256x32xf32> -> vector<256x32xf32>
    %141 = arith.addf %137, %140 : vector<256x32xf32>
    %c0_153 = arith.constant 0 : index
    %c2_154 = arith.constant 2 : index
    %c0_155 = arith.constant 0 : index
    %142 = vector.load %arg15[%c0_153, %c2_154, %c0_155] : memref<18x18x32xf32, #tpu.memory_space<vmem>>, vector<16x16x32xf32>
    %143 = vector.shape_cast %142 : vector<16x16x32xf32> to vector<256x32xf32>
    %c0_156 = arith.constant 0 : index
    %c2_157 = arith.constant 2 : index
    %c0_158 = arith.constant 0 : index
    %144 = vector.load %arg16[%c0_156, %c2_157, %c0_158] : memref<18x18x32xf32, #tpu.memory_space<vmem>>, vector<16x16x32xf32>
    %145 = vector.shape_cast %144 : vector<16x16x32xf32> to vector<256x32xf32>
    %c2_159 = arith.constant 2 : index
    %c0_160 = arith.constant 0 : index
    %c0_161 = arith.constant 0 : index
    %146 = vector.load %arg10[%c2_159, %c0_160, %c0_161] : memref<9x32x32xf32, #tpu.memory_space<vmem>>, vector<1x32x32xf32>
    %147 = vector.shape_cast %146 : vector<1x32x32xf32> to vector<32x32xf32>
    %cst_162 = arith.constant dense<0.000000e+00> : vector<256x32xf32>
    %148 = tpu.matmul %143, %147, %cst_162 {dimension_numbers = #tpu.dot_dimension_numbers<[1], [0], [0], [1], [0, 0, 1, 1], [], []>} : vector<256x32xf32>, vector<32x32xf32>, vector<256x32xf32> -> vector<256x32xf32>
    %149 = arith.addf %141, %148 : vector<256x32xf32>
    %c2_163 = arith.constant 2 : index
    %c0_164 = arith.constant 0 : index
    %c0_165 = arith.constant 0 : index
    %150 = vector.load %arg11[%c2_163, %c0_164, %c0_165] : memref<9x32x32xf32, #tpu.memory_space<vmem>>, vector<1x32x32xf32>
    %151 = vector.shape_cast %150 : vector<1x32x32xf32> to vector<32x32xf32>
    %cst_166 = arith.constant dense<0.000000e+00> : vector<256x32xf32>
    %152 = tpu.matmul %145, %151, %cst_166 {dimension_numbers = #tpu.dot_dimension_numbers<[1], [0], [0], [1], [0, 0, 1, 1], [], []>} : vector<256x32xf32>, vector<32x32xf32>, vector<256x32xf32> -> vector<256x32xf32>
    %153 = arith.addf %149, %152 : vector<256x32xf32>
    %c1_167 = arith.constant 1 : index
    %c0_168 = arith.constant 0 : index
    %c0_169 = arith.constant 0 : index
    %154 = vector.load %arg15[%c1_167, %c0_168, %c0_169] : memref<18x18x32xf32, #tpu.memory_space<vmem>>, vector<16x16x32xf32>
    %155 = vector.shape_cast %154 : vector<16x16x32xf32> to vector<256x32xf32>
    %c1_170 = arith.constant 1 : index
    %c0_171 = arith.constant 0 : index
    %c0_172 = arith.constant 0 : index
    %156 = vector.load %arg16[%c1_170, %c0_171, %c0_172] : memref<18x18x32xf32, #tpu.memory_space<vmem>>, vector<16x16x32xf32>
    %157 = vector.shape_cast %156 : vector<16x16x32xf32> to vector<256x32xf32>
    %c3_173 = arith.constant 3 : index
    %c0_174 = arith.constant 0 : index
    %c0_175 = arith.constant 0 : index
    %158 = vector.load %arg10[%c3_173, %c0_174, %c0_175] : memref<9x32x32xf32, #tpu.memory_space<vmem>>, vector<1x32x32xf32>
    %159 = vector.shape_cast %158 : vector<1x32x32xf32> to vector<32x32xf32>
    %cst_176 = arith.constant dense<0.000000e+00> : vector<256x32xf32>
    %160 = tpu.matmul %155, %159, %cst_176 {dimension_numbers = #tpu.dot_dimension_numbers<[1], [0], [0], [1], [0, 0, 1, 1], [], []>} : vector<256x32xf32>, vector<32x32xf32>, vector<256x32xf32> -> vector<256x32xf32>
    %161 = arith.addf %153, %160 : vector<256x32xf32>
    %c3_177 = arith.constant 3 : index
    %c0_178 = arith.constant 0 : index
    %c0_179 = arith.constant 0 : index
    %162 = vector.load %arg11[%c3_177, %c0_178, %c0_179] : memref<9x32x32xf32, #tpu.memory_space<vmem>>, vector<1x32x32xf32>
    %163 = vector.shape_cast %162 : vector<1x32x32xf32> to vector<32x32xf32>
    %cst_180 = arith.constant dense<0.000000e+00> : vector<256x32xf32>
    %164 = tpu.matmul %157, %163, %cst_180 {dimension_numbers = #tpu.dot_dimension_numbers<[1], [0], [0], [1], [0, 0, 1, 1], [], []>} : vector<256x32xf32>, vector<32x32xf32>, vector<256x32xf32> -> vector<256x32xf32>
    %165 = arith.addf %161, %164 : vector<256x32xf32>
    %c1_181 = arith.constant 1 : index
    %c1_182 = arith.constant 1 : index
    %c0_183 = arith.constant 0 : index
    %166 = vector.load %arg15[%c1_181, %c1_182, %c0_183] : memref<18x18x32xf32, #tpu.memory_space<vmem>>, vector<16x16x32xf32>
    %167 = vector.shape_cast %166 : vector<16x16x32xf32> to vector<256x32xf32>
    %c1_184 = arith.constant 1 : index
    %c1_185 = arith.constant 1 : index
    %c0_186 = arith.constant 0 : index
    %168 = vector.load %arg16[%c1_184, %c1_185, %c0_186] : memref<18x18x32xf32, #tpu.memory_space<vmem>>, vector<16x16x32xf32>
    %169 = vector.shape_cast %168 : vector<16x16x32xf32> to vector<256x32xf32>
    %c4_187 = arith.constant 4 : index
    %c0_188 = arith.constant 0 : index
    %c0_189 = arith.constant 0 : index
    %170 = vector.load %arg10[%c4_187, %c0_188, %c0_189] : memref<9x32x32xf32, #tpu.memory_space<vmem>>, vector<1x32x32xf32>
    %171 = vector.shape_cast %170 : vector<1x32x32xf32> to vector<32x32xf32>
    %cst_190 = arith.constant dense<0.000000e+00> : vector<256x32xf32>
    %172 = tpu.matmul %167, %171, %cst_190 {dimension_numbers = #tpu.dot_dimension_numbers<[1], [0], [0], [1], [0, 0, 1, 1], [], []>} : vector<256x32xf32>, vector<32x32xf32>, vector<256x32xf32> -> vector<256x32xf32>
    %173 = arith.addf %165, %172 : vector<256x32xf32>
    %c4_191 = arith.constant 4 : index
    %c0_192 = arith.constant 0 : index
    %c0_193 = arith.constant 0 : index
    %174 = vector.load %arg11[%c4_191, %c0_192, %c0_193] : memref<9x32x32xf32, #tpu.memory_space<vmem>>, vector<1x32x32xf32>
    %175 = vector.shape_cast %174 : vector<1x32x32xf32> to vector<32x32xf32>
    %cst_194 = arith.constant dense<0.000000e+00> : vector<256x32xf32>
    %176 = tpu.matmul %169, %175, %cst_194 {dimension_numbers = #tpu.dot_dimension_numbers<[1], [0], [0], [1], [0, 0, 1, 1], [], []>} : vector<256x32xf32>, vector<32x32xf32>, vector<256x32xf32> -> vector<256x32xf32>
    %177 = arith.addf %173, %176 : vector<256x32xf32>
    %c1_195 = arith.constant 1 : index
    %c2_196 = arith.constant 2 : index
    %c0_197 = arith.constant 0 : index
    %178 = vector.load %arg15[%c1_195, %c2_196, %c0_197] : memref<18x18x32xf32, #tpu.memory_space<vmem>>, vector<16x16x32xf32>
    %179 = vector.shape_cast %178 : vector<16x16x32xf32> to vector<256x32xf32>
    %c1_198 = arith.constant 1 : index
    %c2_199 = arith.constant 2 : index
    %c0_200 = arith.constant 0 : index
    %180 = vector.load %arg16[%c1_198, %c2_199, %c0_200] : memref<18x18x32xf32, #tpu.memory_space<vmem>>, vector<16x16x32xf32>
    %181 = vector.shape_cast %180 : vector<16x16x32xf32> to vector<256x32xf32>
    %c5_201 = arith.constant 5 : index
    %c0_202 = arith.constant 0 : index
    %c0_203 = arith.constant 0 : index
    %182 = vector.load %arg10[%c5_201, %c0_202, %c0_203] : memref<9x32x32xf32, #tpu.memory_space<vmem>>, vector<1x32x32xf32>
    %183 = vector.shape_cast %182 : vector<1x32x32xf32> to vector<32x32xf32>
    %cst_204 = arith.constant dense<0.000000e+00> : vector<256x32xf32>
    %184 = tpu.matmul %179, %183, %cst_204 {dimension_numbers = #tpu.dot_dimension_numbers<[1], [0], [0], [1], [0, 0, 1, 1], [], []>} : vector<256x32xf32>, vector<32x32xf32>, vector<256x32xf32> -> vector<256x32xf32>
    %185 = arith.addf %177, %184 : vector<256x32xf32>
    %c5_205 = arith.constant 5 : index
    %c0_206 = arith.constant 0 : index
    %c0_207 = arith.constant 0 : index
    %186 = vector.load %arg11[%c5_205, %c0_206, %c0_207] : memref<9x32x32xf32, #tpu.memory_space<vmem>>, vector<1x32x32xf32>
    %187 = vector.shape_cast %186 : vector<1x32x32xf32> to vector<32x32xf32>
    %cst_208 = arith.constant dense<0.000000e+00> : vector<256x32xf32>
    %188 = tpu.matmul %181, %187, %cst_208 {dimension_numbers = #tpu.dot_dimension_numbers<[1], [0], [0], [1], [0, 0, 1, 1], [], []>} : vector<256x32xf32>, vector<32x32xf32>, vector<256x32xf32> -> vector<256x32xf32>
    %189 = arith.addf %185, %188 : vector<256x32xf32>
    %c2_209 = arith.constant 2 : index
    %c0_210 = arith.constant 0 : index
    %c0_211 = arith.constant 0 : index
    %190 = vector.load %arg15[%c2_209, %c0_210, %c0_211] : memref<18x18x32xf32, #tpu.memory_space<vmem>>, vector<16x16x32xf32>
    %191 = vector.shape_cast %190 : vector<16x16x32xf32> to vector<256x32xf32>
    %c2_212 = arith.constant 2 : index
    %c0_213 = arith.constant 0 : index
    %c0_214 = arith.constant 0 : index
    %192 = vector.load %arg16[%c2_212, %c0_213, %c0_214] : memref<18x18x32xf32, #tpu.memory_space<vmem>>, vector<16x16x32xf32>
    %193 = vector.shape_cast %192 : vector<16x16x32xf32> to vector<256x32xf32>
    %c6_215 = arith.constant 6 : index
    %c0_216 = arith.constant 0 : index
    %c0_217 = arith.constant 0 : index
    %194 = vector.load %arg10[%c6_215, %c0_216, %c0_217] : memref<9x32x32xf32, #tpu.memory_space<vmem>>, vector<1x32x32xf32>
    %195 = vector.shape_cast %194 : vector<1x32x32xf32> to vector<32x32xf32>
    %cst_218 = arith.constant dense<0.000000e+00> : vector<256x32xf32>
    %196 = tpu.matmul %191, %195, %cst_218 {dimension_numbers = #tpu.dot_dimension_numbers<[1], [0], [0], [1], [0, 0, 1, 1], [], []>} : vector<256x32xf32>, vector<32x32xf32>, vector<256x32xf32> -> vector<256x32xf32>
    %197 = arith.addf %189, %196 : vector<256x32xf32>
    %c6_219 = arith.constant 6 : index
    %c0_220 = arith.constant 0 : index
    %c0_221 = arith.constant 0 : index
    %198 = vector.load %arg11[%c6_219, %c0_220, %c0_221] : memref<9x32x32xf32, #tpu.memory_space<vmem>>, vector<1x32x32xf32>
    %199 = vector.shape_cast %198 : vector<1x32x32xf32> to vector<32x32xf32>
    %cst_222 = arith.constant dense<0.000000e+00> : vector<256x32xf32>
    %200 = tpu.matmul %193, %199, %cst_222 {dimension_numbers = #tpu.dot_dimension_numbers<[1], [0], [0], [1], [0, 0, 1, 1], [], []>} : vector<256x32xf32>, vector<32x32xf32>, vector<256x32xf32> -> vector<256x32xf32>
    %201 = arith.addf %197, %200 : vector<256x32xf32>
    %c2_223 = arith.constant 2 : index
    %c1_224 = arith.constant 1 : index
    %c0_225 = arith.constant 0 : index
    %202 = vector.load %arg15[%c2_223, %c1_224, %c0_225] : memref<18x18x32xf32, #tpu.memory_space<vmem>>, vector<16x16x32xf32>
    %203 = vector.shape_cast %202 : vector<16x16x32xf32> to vector<256x32xf32>
    %c2_226 = arith.constant 2 : index
    %c1_227 = arith.constant 1 : index
    %c0_228 = arith.constant 0 : index
    %204 = vector.load %arg16[%c2_226, %c1_227, %c0_228] : memref<18x18x32xf32, #tpu.memory_space<vmem>>, vector<16x16x32xf32>
    %205 = vector.shape_cast %204 : vector<16x16x32xf32> to vector<256x32xf32>
    %c7_229 = arith.constant 7 : index
    %c0_230 = arith.constant 0 : index
    %c0_231 = arith.constant 0 : index
    %206 = vector.load %arg10[%c7_229, %c0_230, %c0_231] : memref<9x32x32xf32, #tpu.memory_space<vmem>>, vector<1x32x32xf32>
    %207 = vector.shape_cast %206 : vector<1x32x32xf32> to vector<32x32xf32>
    %cst_232 = arith.constant dense<0.000000e+00> : vector<256x32xf32>
    %208 = tpu.matmul %203, %207, %cst_232 {dimension_numbers = #tpu.dot_dimension_numbers<[1], [0], [0], [1], [0, 0, 1, 1], [], []>} : vector<256x32xf32>, vector<32x32xf32>, vector<256x32xf32> -> vector<256x32xf32>
    %209 = arith.addf %201, %208 : vector<256x32xf32>
    %c7_233 = arith.constant 7 : index
    %c0_234 = arith.constant 0 : index
    %c0_235 = arith.constant 0 : index
    %210 = vector.load %arg11[%c7_233, %c0_234, %c0_235] : memref<9x32x32xf32, #tpu.memory_space<vmem>>, vector<1x32x32xf32>
    %211 = vector.shape_cast %210 : vector<1x32x32xf32> to vector<32x32xf32>
    %cst_236 = arith.constant dense<0.000000e+00> : vector<256x32xf32>
    %212 = tpu.matmul %205, %211, %cst_236 {dimension_numbers = #tpu.dot_dimension_numbers<[1], [0], [0], [1], [0, 0, 1, 1], [], []>} : vector<256x32xf32>, vector<32x32xf32>, vector<256x32xf32> -> vector<256x32xf32>
    %213 = arith.addf %209, %212 : vector<256x32xf32>
    %c2_237 = arith.constant 2 : index
    %c2_238 = arith.constant 2 : index
    %c0_239 = arith.constant 0 : index
    %214 = vector.load %arg15[%c2_237, %c2_238, %c0_239] : memref<18x18x32xf32, #tpu.memory_space<vmem>>, vector<16x16x32xf32>
    %215 = vector.shape_cast %214 : vector<16x16x32xf32> to vector<256x32xf32>
    %c2_240 = arith.constant 2 : index
    %c2_241 = arith.constant 2 : index
    %c0_242 = arith.constant 0 : index
    %216 = vector.load %arg16[%c2_240, %c2_241, %c0_242] : memref<18x18x32xf32, #tpu.memory_space<vmem>>, vector<16x16x32xf32>
    %217 = vector.shape_cast %216 : vector<16x16x32xf32> to vector<256x32xf32>
    %c8_243 = arith.constant 8 : index
    %c0_244 = arith.constant 0 : index
    %c0_245 = arith.constant 0 : index
    %218 = vector.load %arg10[%c8_243, %c0_244, %c0_245] : memref<9x32x32xf32, #tpu.memory_space<vmem>>, vector<1x32x32xf32>
    %219 = vector.shape_cast %218 : vector<1x32x32xf32> to vector<32x32xf32>
    %cst_246 = arith.constant dense<0.000000e+00> : vector<256x32xf32>
    %220 = tpu.matmul %215, %219, %cst_246 {dimension_numbers = #tpu.dot_dimension_numbers<[1], [0], [0], [1], [0, 0, 1, 1], [], []>} : vector<256x32xf32>, vector<32x32xf32>, vector<256x32xf32> -> vector<256x32xf32>
    %221 = arith.addf %213, %220 : vector<256x32xf32>
    %c8_247 = arith.constant 8 : index
    %c0_248 = arith.constant 0 : index
    %c0_249 = arith.constant 0 : index
    %222 = vector.load %arg11[%c8_247, %c0_248, %c0_249] : memref<9x32x32xf32, #tpu.memory_space<vmem>>, vector<1x32x32xf32>
    %223 = vector.shape_cast %222 : vector<1x32x32xf32> to vector<32x32xf32>
    %cst_250 = arith.constant dense<0.000000e+00> : vector<256x32xf32>
    %224 = tpu.matmul %217, %223, %cst_250 {dimension_numbers = #tpu.dot_dimension_numbers<[1], [0], [0], [1], [0, 0, 1, 1], [], []>} : vector<256x32xf32>, vector<32x32xf32>, vector<256x32xf32> -> vector<256x32xf32>
    %225 = arith.addf %221, %224 : vector<256x32xf32>
    %c0_251 = arith.constant 0 : index
    %c0_252 = arith.constant 0 : index
    %226 = vector.load %arg12[%c0_251, %c0_252] : memref<1x32xf32, #tpu.memory_space<vmem>>, vector<1x32xf32>
    %227 = vector.broadcast %226 : vector<1x32xf32> to vector<256x32xf32>
    %228 = arith.mulf %225, %227 : vector<256x32xf32>
    %c0_253 = arith.constant 0 : index
    %c0_254 = arith.constant 0 : index
    %229 = vector.load %arg13[%c0_253, %c0_254] : memref<1x32xf32, #tpu.memory_space<vmem>>, vector<1x32xf32>
    %230 = vector.broadcast %229 : vector<1x32xf32> to vector<256x32xf32>
    %231 = arith.addf %228, %230 : vector<256x32xf32>
    %cst_255 = arith.constant 0.000000e+00 : f32
    %232 = vector.broadcast %cst_255 : f32 to vector<256x32xf32>
    %233 = arith.maximumf %231, %232 : vector<256x32xf32>
    %234 = vector.shape_cast %233 : vector<256x32xf32> to vector<16x16x32xf32>
    %c0_256 = arith.constant 0 : index
    %c0_257 = arith.constant 0 : index
    %c0_258 = arith.constant 0 : index
    %c0_259 = arith.constant 0 : index
    %235 = vector.load %arg14[%c0_256, %c0_257, %c0_258, %c0_259] : memref<1x16x16x32xf32, #tpu.memory_space<vmem>>, vector<1x16x16x32xf32>
    %236 = vector.shape_cast %235 : vector<1x16x16x32xf32> to vector<16x16x32xf32>
    %237 = vector.shape_cast %234 : vector<16x16x32xf32> to vector<1x16x16x32xf32>
    tpu.vector_store %arg14[%c0_256, %c0_257, %c0_258, %c0_259], %237 {strides = array<i32>} : memref<1x16x16x32xf32, #tpu.memory_space<vmem>>, vector<1x16x16x32xf32>,
    return
  }
  func.func @transform_0(%arg0: i32) -> (i32, i32, i32, i32) {
    %c0_i32 = arith.constant 0 : i32
    %c0_i32_0 = arith.constant 0 : i32
    %c0_i32_1 = arith.constant 0 : i32
    %c0_i32_2 = arith.constant 0 : i32
    return %arg0, %c0_i32, %c0_i32_0, %c0_i32_1 : i32, i32, i32, i32
  }
  func.func @transform_1(%arg0: i32) -> (i32, i32, i32, i32) {
    %c0_i32 = arith.constant 0 : i32
    %c0_i32_0 = arith.constant 0 : i32
    %c0_i32_1 = arith.constant 0 : i32
    %c0_i32_2 = arith.constant 0 : i32
    return %arg0, %c0_i32, %c0_i32_0, %c0_i32_1 : i32, i32, i32, i32
  }
  func.func @transform_2(%arg0: i32) -> (i32, i32, i32) {
    %c0_i32 = arith.constant 0 : i32
    %c0_i32_0 = arith.constant 0 : i32
    %c0_i32_1 = arith.constant 0 : i32
    %c0_i32_2 = arith.constant 0 : i32
    return %c0_i32, %c0_i32_0, %c0_i32_1 : i32, i32, i32
  }
  func.func @transform_3(%arg0: i32) -> (i32, i32) {
    %c0_i32 = arith.constant 0 : i32
    %c0_i32_0 = arith.constant 0 : i32
    %c0_i32_1 = arith.constant 0 : i32
    return %c0_i32, %c0_i32_0 : i32, i32
  }
  func.func @transform_4(%arg0: i32) -> (i32, i32, i32) {
    %c0_i32 = arith.constant 0 : i32
    %c0_i32_0 = arith.constant 0 : i32
    %c0_i32_1 = arith.constant 0 : i32
    %c0_i32_2 = arith.constant 0 : i32
    return %c0_i32, %c0_i32_0, %c0_i32_1 : i32, i32, i32
  }
  func.func @transform_5(%arg0: i32) -> (i32, i32, i32) {
    %c0_i32 = arith.constant 0 : i32
    %c0_i32_0 = arith.constant 0 : i32
    %c0_i32_1 = arith.constant 0 : i32
    %c0_i32_2 = arith.constant 0 : i32
    return %c0_i32, %c0_i32_0, %c0_i32_1 : i32, i32, i32
  }
  func.func @transform_6(%arg0: i32) -> (i32, i32) {
    %c0_i32 = arith.constant 0 : i32
    %c0_i32_0 = arith.constant 0 : i32
    %c0_i32_1 = arith.constant 0 : i32
    return %c0_i32, %c0_i32_0 : i32, i32
  }
  func.func @transform_7(%arg0: i32) -> (i32, i32) {
    %c0_i32 = arith.constant 0 : i32
    %c0_i32_0 = arith.constant 0 : i32
    %c0_i32_1 = arith.constant 0 : i32
    return %c0_i32, %c0_i32_0 : i32, i32
  }
  func.func @transform_8(%arg0: i32) -> (i32, i32) {
    %c0_i32 = arith.constant 0 : i32
    %c0_i32_0 = arith.constant 0 : i32
    %c0_i32_1 = arith.constant 0 : i32
    return %c0_i32, %c0_i32_0 : i32, i32
  }
  func.func @transform_9(%arg0: i32) -> (i32, i32, i32) {
    %c0_i32 = arith.constant 0 : i32
    %c0_i32_0 = arith.constant 0 : i32
    %c0_i32_1 = arith.constant 0 : i32
    %c0_i32_2 = arith.constant 0 : i32
    return %c0_i32, %c0_i32_0, %c0_i32_1 : i32, i32, i32
  }
  func.func @transform_10(%arg0: i32) -> (i32, i32, i32) {
    %c0_i32 = arith.constant 0 : i32
    %c0_i32_0 = arith.constant 0 : i32
    %c0_i32_1 = arith.constant 0 : i32
    %c0_i32_2 = arith.constant 0 : i32
    return %c0_i32, %c0_i32_0, %c0_i32_1 : i32, i32, i32
  }
  func.func @transform_11(%arg0: i32) -> (i32, i32) {
    %c0_i32 = arith.constant 0 : i32
    %c0_i32_0 = arith.constant 0 : i32
    %c0_i32_1 = arith.constant 0 : i32
    return %c0_i32, %c0_i32_0 : i32, i32
  }
  func.func @transform_12(%arg0: i32) -> (i32, i32) {
    %c0_i32 = arith.constant 0 : i32
    %c0_i32_0 = arith.constant 0 : i32
    %c0_i32_1 = arith.constant 0 : i32
    return %c0_i32, %c0_i32_0 : i32, i32
  }
  func.func @transform_13(%arg0: i32) -> (i32, i32, i32, i32) {
    %c0_i32 = arith.constant 0 : i32
    %c0_i32_0 = arith.constant 0 : i32
    %c0_i32_1 = arith.constant 0 : i32
    %c0_i32_2 = arith.constant 0 : i32
    return %arg0, %c0_i32, %c0_i32_0, %c0_i32_1 : i32, i32, i32, i32
  }
}

</mosaic_0001>

<bundles_post_ra>
// kernel: tpu_custom_call.1
= control target key start
LH: loop header
LB: loop body
LE: loop exit
PB: predicated region body
PF: predicated region fallthrough
CT: control target
= control target key end

     0   :  { %18 = vsyncpa [#allocation5], 0  ;;  %s20056_s0 = inlined_call_operand.vmem [shape: f32[2,8,8,16], index: 0, kind: input, shape index: {}]   ;;  %s20057_s1 = inlined_call_operand.vmem [shape: f32[2,10,10,64], index: 1, kind: input, shape index: {}]   ;;  %s20058_s2 = inlined_call_operand.vmem [shape: f32[4,16,32], index: 2, kind: input, shape index: {}]   ;;  %s20059_s3 = inlined_call_operand.vmem [shape: f32[1,32], index: 3, kind: input, shape index: {}]   ;;  %s20060_s4 = inlined_call_operand.vmem [shape: f32[4,256,64], index: 4, kind: input, shape index: {}]   ;;  %s20061_s5 = inlined_call_operand.vmem [shape: f32[9,64,32], index: 5, kind: input, shape index: {}]   ;;  %s20062_s6 = inlined_call_operand.vmem [shape: f32[1,32], index: 6, kind: input, shape index: {}]   ;;  %s20063_s7 = inlined_call_operand.vmem [shape: f32[1,32], index: 7, kind: input, shape index: {}]   ;;  %s20064_s8 = inlined_call_operand.vmem [shape: f32[256,64], index: 8, kind: input, shape index: {}]   ;;  %s20065_s9 = inlined_call_operand.vmem [shape: f32[9,32,32], index: 9, kind: input, shape index: {}]   ;;  %s20066_s10 = inlined_call_operand.vmem [shape: f32[9,32,32], index: 10, kind: input, shape index: {}]   ;;  %s20067_s11 = inlined_call_operand.vmem [shape: f32[1,32], index: 11, kind: input, shape index: {}]   ;;  %s20068_s12 = inlined_call_operand.vmem [shape: f32[1,32], index: 12, kind: input, shape index: {}]   ;;  %s20069_s13 = inlined_call_operand.hbm [shape: f32[2,16,16,32], index: 13, kind: output, shape index: {}]  }
   0x1   :  { %20 = vsyncpa [#allocation5 + $0x1], 0  ;;  %s16653_s25 = smov 0   ;;  %s16655_s26 = smov 0  }
   0x2   :  { %s16657_s27 = smov 0   ;;  %s16659_s28 = smov 0  }
   0x3 LB: > { %20071 = sst [smem:[#allocation7_spill]] %s16573_s27  ;;  %s16674_s29 = sadd.s32 4294967295, %s16577_s28   ;;  %s16577_s28 = sphi %s16659_s28, %s20079_s28   ;;  %s16573_s27 = sphi %s16657_s27, %s20076_s27   ;;  %s16569_s26 = sphi %s16655_s26, %s20078_s26   ;;  %s16565_s25 = sphi %s16653_s25, %s20077_s25  }
   0x4   : > { %s11566_s30 = sadd.s32 4294967294, %s16577_s28   ;;  %s16678_s14 = sadd.s32 1, %s16577_s28  }
   0x5   : > { %s316_s15 = sadd.s32 1, %s16573_s27  ;;  %s313_s16 = ssub.s32 %s16577_s28, %s16678_s14 }
   0x6   : > { %p326_p0 = scmp.ne.s32.totalorder %s16573_s27, %s16569_s26  ;;  %p314_p1 = scmp.eq.s32.totalorder %s313_s16, 0 }
   0x7   : > { %p327_p2 = scmp.eq.s32.totalorder %s16674_s29, 1  ;;  %p332_p3 = scmp.ne.s32.totalorder %s16569_s26, %s16565_s25 }
   0x8   : > { %p333_p4 = scmp.eq.s32.totalorder %s11566_s30, 1  ;;  %p11569_p7 = scmp.ge.s32.totalorder %s16577_s28, 1 }
   0x9   : > { %s16689_s17 = scalar_select %p314_p1, %s16573_s27, %s316_s15  }
   0xa   : > { %p16691_p5 = por %p327_p2, %p326_p0  ;;  %p16695_p6 = por %p333_p4, %p332_p3 }
   0xb   : > { %20072 = sst [smem:[#allocation8_spill]] %s16689_s17  ;;  %p400_p8 = scmp.lt.s32.totalorder %s16577_s28, 3 }
   0xd   : > { %p401_p9 = pnand %p11569_p7, %p400_p8 }
   0xe   : > { %v11582_v0 = vld [vmem:[%s20058_s2 + $0x10] sm:$0xff] (!%p401_p9)  ;;  %v11583_v1 = vld [vmem:[%s20058_s2 + $0x18] sm:$0xff] (!%p401_p9)  ;;  %p449_p10 = scmp.lt.s32.totalorder (!%p401_p9), %s16674_s29, 1  ;;  %v467_v2 = vld [vmem:[%s20058_s2] sm:$0xff] (!%p401_p9)  ;;  %vm469_vm0 = vcmask (!%p401_p9), 130048   ;;  %vm772_vm1 = vcmask (!%p401_p9), 523264  }
   0xf   : > { %404 = sbr.rel (%p401_p9) target bundleno = 1673 (0x689), region = 72  ;;  %v15384_v3 = vpack.c.bf16 (!%p401_p9), %v11583_v1, %v11582_v0  ;;  %v468_v4 = vld [vmem:[%s20058_s2 + $0x8] sm:$0xff] (!%p401_p9)  ;;  %v11688_v5 = vld [vmem:[%s20058_s2 + $0x20] sm:$0xff] (!%p401_p9)  ;;  %v11762_v9 = vld [vmem:[%s20058_s2 + $0x30] sm:$0xff] (!%p401_p9)  ;;  %vm2442_vm2 = vcmask (!%p401_p9), 261120   ;;  %vm2445_vm3 = vcmask (!%p401_p9), 254976  }
  0x10   : > { %v11689_v6 = vld [vmem:[%s20058_s2 + $0x28] sm:$0xff] (!%p401_p9)  ;;  %v15380_v7 = vpack.c.bf16 (!%p401_p9), %v468_v4, %v467_v2  ;;  %v11763_v10 = vld [vmem:[%s20058_s2 + $0x38] sm:$0xff] (!%p401_p9)  ;;  %v11837_v20 = vld [vmem:[%s20061_s5 + $0x40] sm:$0xff] (!%p401_p9)  ;;  %s446_s15 = sand.u32 (!%p401_p9), 1, %s16569_s26   ;;  %s12703_s21 = sshll.u32 (!%p401_p9), %s16674_s29, 12 }
  0x11   : > { %v15420_v8 = vpack.c.bf16 (!%p401_p9), %v11689_v6, %v11688_v5  ;;  %15385 = vmatprep.subr.bf16.mxu1 (!%p401_p9), %v15384_v3  ;;  %v15440_v14 = vpack.c.bf16 (!%p401_p9), %v11763_v10, %v11762_v9  ;;  %v11838_v21 = vld [vmem:[%s20061_s5 + $0x48] sm:$0xff] (!%p401_p9)  ;;  %v11839_v23 = vld [vmem:[%s20061_s5 + $0x50] sm:$0xff] (!%p401_p9)  ;;  %v11840_v24 = vld [vmem:[%s20061_s5 + $0x58] sm:$0xff] (!%p401_p9)  ;;  %s11570_s16 = sshll.u32 (!%p401_p9), %s446_s15, 8  ;;  %s16580_s17 = smov (!%p401_p9), [#allocation4]  }
  0x12   : > { %15387 = vmatpush3.bf16.msra.mxu1 (!%p401_p9), %v15384_v3  ;;  %15381 = vmatprep.subr.bf16.mxu0 (!%p401_p9), %v15380_v7  ;;  %v15460_v22 = vpack.c.bf16 (!%p401_p9), %v11838_v21, %v11837_v20  ;;  %v15464_v25 = vpack.c.bf16 (!%p401_p9), %v11840_v24, %v11839_v23  ;;  %v11841_v26 = vld [vmem:[%s20061_s5 + $0x60] sm:$0xff] (!%p401_p9)  ;;  %v11842_v27 = vld [vmem:[%s20061_s5 + $0x68] sm:$0xff] (!%p401_p9)  ;;  %v11843_v29 = vld [vmem:[%s20061_s5 + $0x70] sm:$0xff] (!%p401_p9) }
  0x13   : > { %15383 = vmatpush3.bf16.msra.mxu0 (!%p401_p9), %v15380_v7  ;;  %15421 = vmatprep.subr.bf16.mxu1 (!%p401_p9), %v15420_v8  ;;  %v15468_v28 = vpack.c.bf16 (!%p401_p9), %v11842_v27, %v11841_v26  ;;  %v11844_v30 = vld [vmem:[%s20061_s5 + $0x78] sm:$0xff] (!%p401_p9)  ;;  %v2539_v32 = vld [vmem:[%s20061_s5] sm:$0xff] (!%p401_p9)  ;;  %v2540_v33 = vld [vmem:[%s20061_s5 + $0x8] sm:$0xff] (!%p401_p9) }
  0x14   : > { %v15472_v31 = vpack.c.bf16 (!%p401_p9), %v11844_v30, %v11843_v29  ;;  %v15476_v35 = vpack.c.bf16 (!%p401_p9), %v2540_v33, %v2539_v32  ;;  %v2541_v36 = vld [vmem:[%s20061_s5 + $0x10] sm:$0xff] (!%p401_p9)  ;;  %v2542_v37 = vld [vmem:[%s20061_s5 + $0x18] sm:$0xff] (!%p401_p9)  ;;  %v2543_v41 = vld [vmem:[%s20061_s5 + $0x20] sm:$0xff] (!%p401_p9) }
  0x15   : > { %v15480_v40 = vpack.c.bf16 (!%p401_p9), %v2542_v37, %v2541_v36  ;;  %v2544_v42 = vld [vmem:[%s20061_s5 + $0x28] sm:$0xff] (!%p401_p9)  ;;  %v2545_v46 = vld [vmem:[%s20061_s5 + $0x30] sm:$0xff] (!%p401_p9)  ;;  %v2546_v47 = vld [vmem:[%s20061_s5 + $0x38] sm:$0xff] (!%p401_p9) }
  0x16   : > { %s16721_s22 = scalar_select %p449_p10, %s16674_s29, 1  ;;  %v15484_v45 = vpack.c.bf16 %v2544_v42, %v2543_v41  ;;  %v15488_v50 = vpack.c.bf16 %v2546_v47, %v2545_v46  ;;  %v11861_v51 = vld [vmem:[%s20061_s5 + $0x80] sm:$0xff]  ;;  %v11862_v52 = vld [vmem:[%s20061_s5 + $0x88] sm:$0xff]  ;;  %v11863_v56 = vld [vmem:[%s20061_s5 + $0x90] sm:$0xff] }
  0x17   : > { %v15492_v55 = vpack.c.bf16 %v11862_v52, %v11861_v51  ;;  %v11864_v57 = vld [vmem:[%s20061_s5 + $0x98] sm:$0xff]  ;;  %v11865_v61 = vld [vmem:[%s20061_s5 + $0xa0] sm:$0xff]  ;;  %v11866_v62 = vld [vmem:[%s20061_s5 + $0xa8] sm:$0xff]  ;;  %s20015_s29 = scalar_lea.sflag [#allocation5], %s446_s15 }
  0x18   : > { %s12702_s27 = sshll.u32 %s16721_s22, 6  ;;  %s16472_s30 = smul.u32 160, %s16721_s22  ;;  %v15496_v60 = vpack.c.bf16 %v11864_v57, %v11863_v56  ;;  %v15500_v1 = vpack.c.bf16 %v11866_v62, %v11865_v61  ;;  %v11867_v2 = vld [vmem:[%s20061_s5 + $0xb0] sm:$0xff]  ;;  %v11868_v3 = vld [vmem:[%s20061_s5 + $0xb8] sm:$0xff]  ;;  %v11885_v7 = vld [vmem:[%s20061_s5 + $0xc0] sm:$0xff] }
  0x19   : > { %s453_s20 = scalar_lea.vmem %s20056_s0, %s12702_s27  ;;  %v15504_v6 = vpack.c.bf16 %v11868_v3, %v11867_v2  ;;  %v11892_v23 = vld [vmem:[%s20061_s5 + $0xf8] sm:$0xff]  ;;  %v11909_v27 = vld [vmem:[%s20061_s5 + $0x100] sm:$0xff]  ;;  %v11915_v37 = vld [vmem:[%s20061_s5 + $0x130] sm:$0xff] }
  0x1a   : > { %v459_v11 = vld [vmem:[%s453_s20] sm:$0xff]  ;;  %v460_v12 = vld [vmem:[%s453_s20 + $0x8] sm:$0xff]  ;;  %v461_v13 = vld [vmem:[%s453_s20 + $0x10] sm:$0xff]  ;;  %s16790_s23 = scalar_lea.vmem %s20057_s1, %s16472_s30 }
  0x1b   : > { %13756 = vmatprep.mubr.msk.f32.mxu1 %vm469_vm0, %v459_v11  ;;  %13740 = vmatprep.mubr.msk.f32.mxu0 %vm469_vm0, %v459_v11  ;;  %v462_v15 = vld [vmem:[%s453_s20 + $0x18] sm:$0xff]  ;;  %v463_v16 = vld [vmem:[%s453_s20 + $0x20] sm:$0xff]  ;;  %v464_v17 = vld [vmem:[%s453_s20 + $0x28] sm:$0xff] }
  0x1c   : > { %13757 = vmatmul.mubr.msk.f32.vlgmr.msra.gmra.mrb[0].mxu1 %vm469_vm0, %v460_v12  ;;  %13741 = vmatmul.mubr.msk.f32.vlgmr.msra.gmra.mrb[0].mxu0 %vm469_vm0, %v460_v12  ;;  %v465_v18 = vld [vmem:[%s453_s20 + $0x30] sm:$0xff]  ;;  %v466_v19 = vld [vmem:[%s453_s20 + $0x38] sm:$0xff]  ;;  %v2547_v34 = vld [vmem:[%s16790_s23 + $0x1] sm:$0xff]  ;;  %s19852_s20 = scalar_lea.vmem [#allocation4], %s11570_s16  ;;  %s16519_s16 = sshll.u32 %s16580_s17, 4  ;;  %s16520_s16 = int_to_ptr.vmem [resolvable:$false] %s16519_s16 }
  0x1d   : > { %13759 = vmatprep.mubr.msk.f32.mxu1 %vm469_vm0, %v461_v13  ;;  %15423 = vmatpush3.bf16.msra.mxu1 %v15420_v8  ;;  %v16810_v38 = vld [vmem:[%s16790_s23 + $0x11] sm:$0xff]  ;;  %v16813_v39 = vld [vmem:[%s16790_s23 + $0x21] sm:$0xff]  ;;  %s11492_s22 = sshll.u32 %s19852_s20, 4  ;;  %s20007_s22 = int_to_ptr.vmem [resolvable:$true] %s11492_s22 }
  0x1e   : > { %15441 = vmatprep.subr.bf16.mxu1 %v15440_v14  ;;  %13743 = vmatprep.mubr.msk.f32.mxu0 %vm469_vm0, %v461_v13  ;;  %v16826_v43 = vld [vmem:[%s16790_s23 + $0x31] sm:$0xff]  ;;  %v16829_v44 = vld [vmem:[%s16790_s23 + $0x41] sm:$0xff]  ;;  %s16515_s30 = scalar_lea.vmem %s20007_s22, 4096  ;;  %p16522_p0 = scmp.lt.s32.totalorder %s20007_s22, %s16520_s16 }
  0x1f   : > { %v16842_v48 = vld [vmem:[%s16790_s23 + $0x51] sm:$0xff]  ;;  %v16845_v49 = vld [vmem:[%s16790_s23 + $0x61] sm:$0xff]  ;;  %p16516_p11 = scmp.ne.s32.totalorder %s20007_s22, %s16515_s30 }
  0x20   : > { %13760 = vmatmul.mubr.msk.f32.gmra.mrb[2].mxu1 %vm469_vm0, %v462_v15  ;;  %13744 = vmatmul.mubr.msk.f32.gmra.mrb[2].mxu0 %vm469_vm0, %v462_v15  ;;  %v16858_v53 = vld [vmem:[%s16790_s23 + $0x71] sm:$0xff]  ;;  %v2531_v54 = vld [vmem:[%s16790_s23] sm:$0xff]  ;;  %v11886_v8 = vld [vmem:[%s20061_s5 + $0xc8] sm:$0xff] }
  0x21   : > { %13762 = vmatprep.mubr.msk.f32.mxu1 %vm469_vm0, %v463_v16  ;;  %13746 = vmatprep.mubr.msk.f32.mxu0 %vm469_vm0, %v463_v16  ;;  %v16871_v58 = vld [vmem:[%s16790_s23 + $0x10] sm:$0xff]  ;;  %v16874_v59 = vld [vmem:[%s16790_s23 + $0x20] sm:$0xff]  ;;  %v11912_v32 = vld [vmem:[%s20061_s5 + $0x118] sm:$0xff]  ;;  %p16517_p12 = pnand %p16516_p11, %p16691_p5 }
  0x22   : > { %v16887_v63 = vld [vmem:[%s16790_s23 + $0x30] sm:$0xff]  ;;  %v16890_v0 = vld [vmem:[%s16790_s23 + $0x40] sm:$0xff]  ;;  %v11934_v46 = vld [vmem:[%s20061_s5 + $0x148] sm:$0xff] }
  0x23   : > { %v16903_v4 = vld [vmem:[%s16790_s23 + $0x50] sm:$0xff]  ;;  %v16906_v5 = vld [vmem:[%s16790_s23 + $0x60] sm:$0xff]  ;;  %v11936_v52 = vld [vmem:[%s20061_s5 + $0x158] sm:$0xff]  ;;  %p16518_p13 = pneg %p16517_p12 }
  0x24   : > { %13763 = vmatmul.mubr.msk.f32.gmra.mrb[4].mxu1 %vm469_vm0, %v464_v17  ;;  %13747 = vmatmul.mubr.msk.f32.gmra.mrb[4].mxu0 %vm469_vm0, %v464_v17  ;;  %v16919_v9 = vld [vmem:[%s16790_s23 + $0x70] sm:$0xff]  ;;  %v2822_v10 = vld [vmem:[%s16790_s23 + $0x2] sm:$0xff] }
  0x25   : > { %13765 = vmatprep.mubr.msk.f32.mxu1 %vm469_vm0, %v465_v18  ;;  %13749 = vmatprep.mubr.msk.f32.mxu0 %vm469_vm0, %v465_v18  ;;  %v16951_v20 = vld [vmem:[%s16790_s23 + $0x42] sm:$0xff]  ;;  %v16964_v24 = vld [vmem:[%s16790_s23 + $0x52] sm:$0xff] }
  0x26   : > { %v16980_v29 = vld [vmem:[%s16790_s23 + $0x72] sm:$0xff]  ;;  %v11592_v41 = vld [vmem:[%s20060_s4 + $0x100] sm:$0xff]  ;;  %v11938_v56 = vld [vmem:[%s20061_s5 + $0x168] sm:$0xff] }
  0x27   : > { %v17027_v47 = vld [vmem:[%s16790_s23 + $0x80] sm:$0xff]  ;;  %v11935_v51 = vld [vmem:[%s20061_s5 + $0x150] sm:$0xff]  ;;  %v11958_v62 = vld [vmem:[%s20061_s5 + $0x188] sm:$0xff] }
  0x28   : > { %13766 = vmatmul.mubr.msk.f32.gmra.mrb[6].mxu1 %vm469_vm0, %v466_v19  ;;  %13750 = vmatmul.mubr.msk.f32.gmra.mrb[6].mxu0 %vm469_vm0, %v466_v19  ;;  %v11939_v57 = vld [vmem:[%s20061_s5 + $0x170] sm:$0xff]  ;;  %v11957_v61 = vld [vmem:[%s20061_s5 + $0x180] sm:$0xff] }
  0x29   : > { %13900 = vmatprep.mubr.msk.f32.mxu1 %vm469_vm0, %v459_v11  ;;  %13784 = vmatprep.mubr.msk.f32.mxu0 %vm772_vm1, %v11592_v41  ;;  %v15556_v2 = vpack.c.bf16 %v11958_v62, %v11957_v61  ;;  %v11959_v3 = vld [vmem:[%s20061_s5 + $0x190] sm:$0xff] }
  0x2c   : > { %13901 = vmatmul.mubr.msk.f32.vlgmr.msra.gmra.mrb[8].mxu1 %vm469_vm0, %v460_v12 }
  0x2d   : > { %13903 = vmatprep.mubr.msk.f32.mxu1 %vm469_vm0, %v461_v13  ;;  %15443 = vmatpush3.bf16.msra.mxu1 %v15440_v14  ;;  %v16932_v14 = vld [vmem:[%s16790_s23 + $0x12] sm:$0xff] }
  0x2e   : > { %15461 = vmatprep.subr.bf16.mxu1 %v15460_v22 }
  0x30   : > { %13904 = vmatmul.mubr.msk.f32.gmra.mrb[10].mxu1 %vm469_vm0, %v462_v15 }
  0x31   : > { %13906 = vmatprep.mubr.msk.f32.mxu1 %vm469_vm0, %v463_v16 }
  0x34   : > { %13907 = vmatmul.mubr.msk.f32.gmra.mrb[12].mxu1 %vm469_vm0, %v464_v17 }
  0x35   : > { %13909 = vmatprep.mubr.msk.f32.mxu1 %vm469_vm0, %v465_v18 }
  0x38   : > { %13910 = vmatmul.mubr.msk.f32.gmra.mrb[14].mxu1 %vm469_vm0, %v466_v19 }
  0x39   : > { %13980 = vmatprep.mubr.msk.f32.mxu1 %vm469_vm0, %v459_v11  ;;  %v15508_v11 = vpack.c.bf16 %v11886_v8, %v11885_v7  ;;  %v11961_v8 = vld [vmem:[%s20061_s5 + $0x1a0] sm:$0xff] }
  0x3c   : > { %13981 = vmatmul.mubr.msk.f32.vlgmr.msra.gmra.mrb[16].mxu1 %vm469_vm0, %v460_v12  ;;  %v11887_v12 = vld [vmem:[%s20061_s5 + $0xd0] sm:$0xff] }
  0x3d   : > { %15463 = vmatpush3.bf16.msra.mxu1 %v15460_v22  ;;  %13983 = vmatprep.mubr.msk.f32.mxu1 %vm469_vm0, %v461_v13  ;;  %v11888_v13 = vld [vmem:[%s20061_s5 + $0xd8] sm:$0xff]  ;;  %v11891_v22 = vld [vmem:[%s20061_s5 + $0xf0] sm:$0xff] }
  0x3e   : > { %15465 = vmatprep.subr.bf16.mxu1 %v15464_v25  ;;  %v15520_v26 = vpack.c.bf16 %v11892_v23, %v11891_v22  ;;  %v11983_v22 = vld [vmem:[%s20061_s5 + $0x1d0] sm:$0xff]  ;;  %v11984_v23 = vld [vmem:[%s20061_s5 + $0x1d8] sm:$0xff] }
  0x40   : > { %13984 = vmatmul.mubr.msk.f32.gmra.mrb[18].mxu1 %vm469_vm0, %v462_v15  ;;  %v16935_v15 = vld [vmem:[%s16790_s23 + $0x22] sm:$0xff] }
  0x41   : > { %15467 = vmatpush3.bf16.msra.mxu1 %v15464_v25  ;;  %13986 = vmatprep.mubr.msk.f32.mxu1 %vm469_vm0, %v463_v16  ;;  %v15512_v16 = vpack.c.bf16 %v11888_v13, %v11887_v12  ;;  %v16967_v25 = vld [vmem:[%s16790_s23 + $0x62] sm:$0xff]  ;;  %v11963_v12 = vld [vmem:[%s20061_s5 + $0x1b0] sm:$0xff]  ;;  %v11964_v13 = vld [vmem:[%s20061_s5 + $0x1b8] sm:$0xff] }
  0x42   : > { %15469 = vmatprep.subr.bf16.mxu1 %v15468_v28 }
  0x44   : > { %13987 = vmatmul.mubr.msk.f32.gmra.mrb[20].mxu1 %vm469_vm0, %v464_v17  ;;  %v11889_v17 = vld [vmem:[%s20061_s5 + $0xe0] sm:$0xff] }
  0x45   : > { %15471 = vmatpush3.bf16.msra.mxu1 %v15468_v28  ;;  %13989 = vmatprep.mubr.msk.f32.mxu1 %vm469_vm0, %v465_v18  ;;  %v11890_v18 = vld [vmem:[%s20061_s5 + $0xe8] sm:$0xff] }
  0x46   : > { %15473 = vmatprep.subr.bf16.mxu1 %v15472_v31  ;;  %v15516_v21 = vpack.c.bf16 %v11890_v18, %v11889_v17  ;;  %v11910_v28 = vld [vmem:[%s20061_s5 + $0x108] sm:$0xff] }
  0x47   : > { %v15524_v30 = vpack.c.bf16 %v11910_v28, %v11909_v27  ;;  %v11982_v17 = vld [vmem:[%s20061_s5 + $0x1c8] sm:$0xff]  ;;  %v11985_v27 = vld [vmem:[%s20061_s5 + $0x1e0] sm:$0xff] }
  0x48   : > { %13990 = vmatmul.mubr.msk.f32.gmra.mrb[22].mxu1 %vm469_vm0, %v466_v19  ;;  %v16948_v19 = vld [vmem:[%s16790_s23 + $0x32] sm:$0xff]  ;;  %v17113_v18 = vld [vmem:[%s16790_s23 + $0x82] sm:$0xff] }
  0x49   : > { %15475 = vmatpush3.bf16.msra.mxu1 %v15472_v31  ;;  %14072 = vmatprep.mubr.msk.f32.mxu1 %vm772_vm1, %v2547_v34  ;;  %v11911_v31 = vld [vmem:[%s20061_s5 + $0x110] sm:$0xff]  ;;  %v11913_v34 = vld [vmem:[%s20061_s5 + $0x120] sm:$0xff]  ;;  %v11986_v28 = vld [vmem:[%s20061_s5 + $0x1e8] sm:$0xff] }
  0x4a   : > { %15477 = vmatprep.subr.bf16.mxu1 %v15476_v35  ;;  %v15528_v33 = vpack.c.bf16 %v11912_v32, %v11911_v31  ;;  %v11988_v31 = vld [vmem:[%s20061_s5 + $0x1f8] sm:$0xff]  ;;  %v12006_v32 = vld [vmem:[%s20061_s5 + $0x208] sm:$0xff] }
  0x4c   : > { %14073 = vmatmul.mubr.msk.f32.vlgmr.msra.gmra.mrb[24].mxu1 %vm772_vm1, %v16810_v38 }
  0x4d   : > { %15479 = vmatpush3.bf16.msra.mxu1 %v15476_v35  ;;  %14075 = vmatprep.mubr.msk.f32.mxu1 %vm772_vm1, %v16813_v39  ;;  %v11914_v35 = vld [vmem:[%s20061_s5 + $0x128] sm:$0xff] }
  0x4e   : > { %15481 = vmatprep.subr.bf16.mxu1 %v15480_v40  ;;  %v15532_v36 = vpack.c.bf16 %v11914_v35, %v11913_v34  ;;  %v12008_v34 = vld [vmem:[%s20061_s5 + $0x218] sm:$0xff]  ;;  %v12009_v35 = vld [vmem:[%s20061_s5 + $0x220] sm:$0xff] }
  0x50   : > { %14076 = vmatmul.mubr.msk.f32.gmra.mrb[26].mxu1 %vm772_vm1, %v16826_v43 }
  0x51   : > { %15483 = vmatpush3.bf16.msra.mxu1 %v15480_v40  ;;  %14078 = vmatprep.mubr.msk.f32.mxu1 %vm772_vm1, %v16829_v44  ;;  %v11916_v40 = vld [vmem:[%s20061_s5 + $0x138] sm:$0xff] }
  0x52   : > { %15485 = vmatprep.subr.bf16.mxu1 %v15484_v45  ;;  %v15536_v42 = vpack.c.bf16 %v11916_v40, %v11915_v37  ;;  %v12011_v37 = vld [vmem:[%s20061_s5 + $0x230] sm:$0xff]  ;;  %v12012_v40 = vld [vmem:[%s20061_s5 + $0x238] sm:$0xff] }
  0x54   : > { %14079 = vmatmul.mubr.msk.f32.gmra.mrb[28].mxu1 %vm772_vm1, %v16842_v48 }
  0x55   : > { %15487 = vmatpush3.bf16.msra.mxu1 %v15484_v45  ;;  %14081 = vmatprep.mubr.msk.f32.mxu1 %vm772_vm1, %v16845_v49  ;;  %v11933_v45 = vld [vmem:[%s20061_s5 + $0x140] sm:$0xff] }
  0x56   : > { %15489 = vmatprep.subr.bf16.mxu1 %v15488_v50 }
  0x58   : > { %14082 = vmatmul.mubr.msk.f32.gmra.mrb[30].mxu1 %vm772_vm1, %v16858_v53 }
  0x59   : > { %15491 = vmatpush3.bf16.msra.mxu1 %v15488_v50  ;;  %14100 = vmatprep.mubr.msk.f32.mxu1 %vm772_vm1, %v2531_v54  ;;  %v15540_v50 = vpack.c.bf16 %v11934_v46, %v11933_v45  ;;  %v15544_v54 = vpack.c.bf16 %v11936_v52, %v11935_v51 }
  0x5a   : > { %15493 = vmatprep.subr.bf16.mxu1 %v15492_v55 }
  0x5c   : > { %14101 = vmatmul.mubr.msk.f32.vlgmr.msra.gmra.mrb[24].mxu1 %vm772_vm1, %v16871_v58 }
  0x5d   : > { %15495 = vmatpush3.bf16.msra.mxu1 %v15492_v55  ;;  %14103 = vmatprep.mubr.msk.f32.mxu1 %vm772_vm1, %v16874_v59  ;;  %v11937_v55 = vld [vmem:[%s20061_s5 + $0x160] sm:$0xff] }
  0x5e   : > { %15497 = vmatprep.subr.bf16.mxu1 %v15496_v60 }
  0x60   : > { %14104 = vmatmul.mubr.msk.f32.gmra.mrb[26].mxu1 %vm772_vm1, %v16887_v63 }
  0x61   : > { %15499 = vmatpush3.bf16.msra.mxu1 %v15496_v60  ;;  %14106 = vmatprep.mubr.msk.f32.mxu1 %vm772_vm1, %v16890_v0 }
  0x62   : > { %15501 = vmatprep.subr.bf16.mxu1 %v15500_v1 }
  0x64   : > { %14107 = vmatmul.mubr.msk.f32.gmra.mrb[28].mxu1 %vm772_vm1, %v16903_v4 }
  0x65   : > { %15503 = vmatpush3.bf16.msra.mxu1 %v15500_v1  ;;  %14109 = vmatprep.mubr.msk.f32.mxu1 %vm772_vm1, %v16906_v5  ;;  %v17070_v1 = vld [vmem:[%s16790_s23 + $0x81] sm:$0xff] }
  0x66   : > { %15505 = vmatprep.subr.bf16.mxu1 %v15504_v6 }
  0x68   : > { %14110 = vmatmul.mubr.msk.f32.gmra.mrb[30].mxu1 %vm772_vm1, %v16919_v9 }
  0x69   : > { %15507 = vmatpush3.bf16.msra.mxu1 %v15504_v6  ;;  %14128 = vmatprep.mubr.msk.f32.mxu1 %vm772_vm1, %v2822_v10  ;;  %v11960_v6 = vld [vmem:[%s20061_s5 + $0x198] sm:$0xff]  ;;  %v11962_v10 = vld [vmem:[%s20061_s5 + $0x1a8] sm:$0xff] }
  0x6a   : > { %15509 = vmatprep.subr.bf16.mxu1 %v15508_v11  ;;  %v15560_v7 = vpack.c.bf16 %v11960_v6, %v11959_v3  ;;  %v11594_v3 = vld [vmem:[%s20060_s4 + $0x110] sm:$0xff] }
  0x6c   : > { %14129 = vmatmul.mubr.msk.f32.vlgmr.msra.gmra.mrb[24].mxu1 %vm772_vm1, %v16932_v14 }
  0x6d   : > { %15511 = vmatpush3.bf16.msra.mxu1 %v15508_v11  ;;  %14131 = vmatprep.mubr.msk.f32.mxu1 %vm772_vm1, %v16935_v15  ;;  %v15564_v11 = vpack.c.bf16 %v11962_v10, %v11961_v8  ;;  %v11595_v8 = vld [vmem:[%s20060_s4 + $0x118] sm:$0xff] }
  0x6e   : > { %15513 = vmatprep.subr.bf16.mxu1 %v15512_v16 }
  0x70   : > { %14132 = vmatmul.mubr.msk.f32.gmra.mrb[26].mxu1 %vm772_vm1, %v16948_v19 }
  0x71   : > { %15515 = vmatpush3.bf16.msra.mxu1 %v15512_v16  ;;  %14134 = vmatprep.mubr.msk.f32.mxu1 %vm772_vm1, %v16951_v20  ;;  %v11981_v16 = vld [vmem:[%s20061_s5 + $0x1c0] sm:$0xff] }
  0x72   : > { %15517 = vmatprep.subr.bf16.mxu1 %v15516_v21 }
  0x74   : > { %14135 = vmatmul.mubr.msk.f32.gmra.mrb[28].mxu1 %vm772_vm1, %v16964_v24 }
  0x75   : > { %15519 = vmatpush3.bf16.msra.mxu1 %v15516_v21  ;;  %14137 = vmatprep.mubr.msk.f32.mxu1 %vm772_vm1, %v16967_v25  ;;  %v15572_v21 = vpack.c.bf16 %v11982_v17, %v11981_v16  ;;  %v11598_v17 = vld [vmem:[%s20060_s4 + $0x130] sm:$0xff] }
  0x76   : > { %15521 = vmatprep.subr.bf16.mxu1 %v15520_v26 }
  0x78   : > { %14138 = vmatmul.mubr.msk.f32.gmra.mrb[30].mxu1 %vm772_vm1, %v16980_v29 }
  0x79   : > { %15523 = vmatpush3.bf16.msra.mxu1 %v15520_v26  ;;  %14156 = vmatprep.mubr.msk.f32.mxu1 %vm772_vm1, %v16871_v58  ;;  %v11940_v58 = vld [vmem:[%s20061_s5 + $0x178] sm:$0xff]  ;;  %v15576_v26 = vpack.c.bf16 %v11984_v23, %v11983_v22 }
  0x7a   : > { %15525 = vmatprep.subr.bf16.mxu1 %v15524_v30  ;;  %v15552_v60 = vpack.c.bf16 %v11940_v58, %v11939_v57  ;;  %v11599_v22 = vld [vmem:[%s20060_s4 + $0x138] sm:$0xff] }
  0x7c   : > { %14157 = vmatmul.mubr.msk.f32.vlgmr.msra.gmra.mrb[24].mxu1 %vm772_vm1, %v16874_v59 }
  0x7d   : > { %15527 = vmatpush3.bf16.msra.mxu1 %v15524_v30  ;;  %14159 = vmatprep.mubr.msk.f32.mxu1 %vm772_vm1, %v16887_v63  ;;  %v11987_v30 = vld [vmem:[%s20061_s5 + $0x1f0] sm:$0xff] }
  0x7e   : > { %15529 = vmatprep.subr.bf16.mxu1 %v15528_v33 }
  0x80   : > { %14160 = vmatmul.mubr.msk.f32.gmra.mrb[26].mxu1 %vm772_vm1, %v16890_v0 }
  0x81   : > { %15531 = vmatpush3.bf16.msra.mxu1 %v15528_v33  ;;  %14162 = vmatprep.mubr.msk.f32.mxu1 %vm772_vm1, %v16903_v4  ;;  %v12007_v33 = vld [vmem:[%s20061_s5 + $0x210] sm:$0xff] }
  0x82   : > { %15533 = vmatprep.subr.bf16.mxu1 %v15532_v36 }
  0x84   : > { %14163 = vmatmul.mubr.msk.f32.gmra.mrb[28].mxu1 %vm772_vm1, %v16906_v5 }
  0x85   : > { %15535 = vmatpush3.bf16.msra.mxu1 %v15532_v36  ;;  %14165 = vmatprep.mubr.msk.f32.mxu1 %vm772_vm1, %v16919_v9  ;;  %v12010_v36 = vld [vmem:[%s20061_s5 + $0x228] sm:$0xff] }
  0x86   : > { %15537 = vmatprep.subr.bf16.mxu1 %v15536_v42 }
  0x88   : > { %14166 = vmatmul.mubr.msk.f32.gmra.mrb[30].mxu1 %vm772_vm1, %v17027_v47 }
  0x89   : > { %15539 = vmatpush3.bf16.msra.mxu1 %v15536_v42  ;;  %14184 = vmatprep.mubr.msk.f32.mxu1 %vm772_vm1, %v16810_v38  ;;  %v15548_v38 = vpack.c.bf16 %v11938_v56, %v11937_v55 }
  0x8a   : > { %15541 = vmatprep.subr.bf16.mxu1 %v15540_v50 }
  0x8c   : > { %14185 = vmatmul.mubr.msk.f32.vlgmr.msra.gmra.mrb[24].mxu1 %vm772_vm1, %v16813_v39 }
  0x8d   : > { %15543 = vmatpush3.bf16.msra.mxu1 %v15540_v50  ;;  %14187 = vmatprep.mubr.msk.f32.mxu1 %vm772_vm1, %v16826_v43 }
  0x8e   : > { %15545 = vmatprep.subr.bf16.mxu1 %v15544_v54 }
  0x90   : > { %14188 = vmatmul.mubr.msk.f32.gmra.mrb[26].mxu1 %vm772_vm1, %v16829_v44 }
  0x91   : > { %15547 = vmatpush3.bf16.msra.mxu1 %v15544_v54  ;;  %14190 = vmatprep.mubr.msk.f32.mxu1 %vm772_vm1, %v16842_v48 }
  0x92   : > { %15549 = vmatprep.subr.bf16.mxu1 %v15548_v38 }
  0x94   : > { %14191 = vmatmul.mubr.msk.f32.gmra.mrb[28].mxu1 %vm772_vm1, %v16845_v49 }
  0x95   : > { %15551 = vmatpush3.bf16.msra.mxu1 %v15548_v38  ;;  %14193 = vmatprep.mubr.msk.f32.mxu1 %vm772_vm1, %v16858_v53 }
  0x96   : > { %15553 = vmatprep.subr.bf16.mxu1 %v15552_v60 }
  0x98   : > { %14194 = vmatmul.mubr.msk.f32.gmra.mrb[30].mxu1 %vm772_vm1, %v17070_v1 }
  0x99   : > { %15555 = vmatpush3.bf16.msra.mxu1 %v15552_v60  ;;  %14212 = vmatprep.mubr.msk.f32.mxu1 %vm772_vm1, %v16932_v14  ;;  %v15568_v14 = vpack.c.bf16 %v11964_v13, %v11963_v12 }
  0x9a   : > { %15557 = vmatprep.subr.bf16.mxu1 %v15556_v2 }
  0x9c   : > { %14213 = vmatmul.mubr.msk.f32.vlgmr.msra.gmra.mrb[24].mxu1 %vm772_vm1, %v16935_v15 }
  0x9d   : > { %15559 = vmatpush3.bf16.msra.mxu1 %v15556_v2  ;;  %14215 = vmatprep.mubr.msk.f32.mxu1 %vm772_vm1, %v16948_v19 }
  0x9e   : > { %15561 = vmatprep.subr.bf16.mxu1 %v15560_v7 }
  0xa0   : > { %14216 = vmatmul.mubr.msk.f32.gmra.mrb[26].mxu1 %vm772_vm1, %v16951_v20 }
  0xa1   : > { %15563 = vmatpush3.bf16.msra.mxu1 %v15560_v7  ;;  %14218 = vmatprep.mubr.msk.f32.mxu1 %vm772_vm1, %v16964_v24 }
  0xa2   : > { %15565 = vmatprep.subr.bf16.mxu1 %v15564_v11 }
  0xa4   : > { %14219 = vmatmul.mubr.msk.f32.gmra.mrb[28].mxu1 %vm772_vm1, %v16967_v25 }
  0xa5   : > { %15567 = vmatpush3.bf16.msra.mxu1 %v15564_v11  ;;  %14221 = vmatprep.mubr.msk.f32.mxu1 %vm772_vm1, %v16980_v29  ;;  %v11596_v11 = vld [vmem:[%s20060_s4 + $0x120] sm:$0xff] }
  0xa6   : > { %15569 = vmatprep.subr.bf16.mxu1 %v15568_v14 }
  0xa8   : > { %14222 = vmatmul.mubr.msk.f32.gmra.mrb[30].mxu1 %vm772_vm1, %v17113_v18 }
  0xa9   : > { %15571 = vmatpush3.bf16.msra.mxu1 %v15568_v14  ;;  %14240 = vmatprep.mubr.msk.f32.mxu1 %vm772_vm1, %v16874_v59  ;;  %v15580_v59 = vpack.c.bf16 %v11986_v28, %v11985_v27  ;;  %v11597_v14 = vld [vmem:[%s20060_s4 + $0x128] sm:$0xff] }
  0xaa   : > { %15573 = vmatprep.subr.bf16.mxu1 %v15572_v21 }
  0xac   : > { %14241 = vmatmul.mubr.msk.f32.vlgmr.msra.gmra.mrb[24].mxu1 %vm772_vm1, %v16887_v63  ;;  %v15584_v63 = vpack.c.bf16 %v11988_v31, %v11987_v30  ;;  %v11602_v31 = vld [vmem:[%s20060_s4 + $0x150] sm:$0xff] }
  0xad   : > { %15575 = vmatpush3.bf16.msra.mxu1 %v15572_v21  ;;  %14243 = vmatprep.mubr.msk.f32.mxu1 %vm772_vm1, %v16890_v0  ;;  %v12005_v0 = vld [vmem:[%s20061_s5 + $0x200] sm:$0xff] }
  0xae   : > { %15577 = vmatprep.subr.bf16.mxu1 %v15576_v26 }
  0xb0   : > { %14244 = vmatmul.mubr.msk.f32.gmra.mrb[26].mxu1 %vm772_vm1, %v16903_v4  ;;  %v11956_v4 = vld [vmem:[%s16790_s23 + $0x90] sm:$0xff] }
  0xb1   : > { %15579 = vmatpush3.bf16.msra.mxu1 %v15576_v26  ;;  %14246 = vmatprep.mubr.msk.f32.mxu1 %vm772_vm1, %v16906_v5  ;;  %v15588_v5 = vpack.c.bf16 %v12006_v32, %v12005_v0  ;;  %v11600_v26 = vld [vmem:[%s20060_s4 + $0x140] sm:$0xff]  ;;  %v11603_v32 = vld [vmem:[%s20060_s4 + $0x158] sm:$0xff] }
  0xb2   : > { %15581 = vmatprep.subr.bf16.mxu1 %v15580_v59 }
  0xb4   : > { %14247 = vmatmul.mubr.msk.f32.gmra.mrb[28].mxu1 %vm772_vm1, %v16919_v9  ;;  %v15592_v9 = vpack.c.bf16 %v12008_v34, %v12007_v33 }
  0xb5   : > { %15583 = vmatpush3.bf16.msra.mxu1 %v15580_v59  ;;  %14249 = vmatprep.mubr.msk.f32.mxu1 %vm772_vm1, %v17027_v47  ;;  %v11601_v59 = vld [vmem:[%s20060_s4 + $0x148] sm:$0xff] }
  0xb6   : > { %15585 = vmatprep.subr.bf16.mxu1 %v15584_v63 }
  0xb8   : > { %14250 = vmatmul.mubr.msk.f32.gmra.mrb[30].mxu1 %vm772_vm1, %v11956_v4 }
  0xb9   : > { %15587 = vmatpush3.bf16.msra.mxu1 %v15584_v63  ;;  %14268 = vmatprep.mubr.msk.f32.mxu1 %vm772_vm1, %v16813_v39  ;;  %v15596_v39 = vpack.c.bf16 %v12010_v36, %v12009_v35  ;;  %v11606_v36 = vld [vmem:[%s20060_s4 + $0x170] sm:$0xff] }
  0xba   : > { %15589 = vmatprep.subr.bf16.mxu1 %v15588_v5 }
  0xbc   : > { %14269 = vmatmul.mubr.msk.f32.vlgmr.msra.gmra.mrb[24].mxu1 %vm772_vm1, %v16826_v43  ;;  %v15600_v43 = vpack.c.bf16 %v12012_v40, %v12011_v37  ;;  %v11607_v40 = vld [vmem:[%s20060_s4 + $0x178] sm:$0xff] }
  0xbd   : > { %15591 = vmatpush3.bf16.msra.mxu1 %v15588_v5  ;;  %14271 = vmatprep.mubr.msk.f32.mxu1 %vm772_vm1, %v16829_v44  ;;  %v11980_v44 = vld [vmem:[%s16790_s23 + $0x91] sm:$0xff]  ;;  %v11604_v5 = vld [vmem:[%s20060_s4 + $0x160] sm:$0xff] }
  0xbe   : > { %15593 = vmatprep.subr.bf16.mxu1 %v15592_v9 }
  0xc0   : > { %14272 = vmatmul.mubr.msk.f32.gmra.mrb[26].mxu1 %vm772_vm1, %v16842_v48  ;;  %v12004_v48 = vld [vmem:[%s16790_s23 + $0x92] sm:$0xff]  ;;  %s20005_s23 = scalar_lea.hbm %s20069_s13, %s12703_s21  ;;  %s16521_s21 = scalar_lea.vmem %s16520_s16, 8192 }
  0xc1   : > { %15595 = vmatpush3.bf16.msra.mxu1 %v15592_v9  ;;  %14274 = vmatprep.mubr.msk.f32.mxu1 %vm772_vm1, %v16845_v49  ;;  %v11605_v9 = vld [vmem:[%s20060_s4 + $0x168] sm:$0xff]  ;;  %p16523_p1 = scmp.lt.s32.totalorder %s16521_s21, %s16515_s30 }
  0xc2   : > { %15597 = vmatprep.subr.bf16.mxu1 %v15596_v39 }
  0xc3   : > { %p16524_p2 = por %p16523_p1, %p16522_p0 }
  0xc4   : > { %14275 = vmatmul.mubr.msk.f32.gmra.mrb[28].mxu1 %vm772_vm1, %v16858_v53 }
  0xc5   : > { %15599 = vmatpush3.bf16.msra.mxu1 %v15596_v39  ;;  %14277 = vmatprep.mubr.msk.f32.mxu1 %vm772_vm1, %v17070_v1  ;;  %v11593_v1 = vld [vmem:[%s20060_s4 + $0x108] sm:$0xff]  ;;  %p16525_p3 = pnand %p16524_p2, %p16518_p13 }
  0xc6   : > { %15601 = vmatprep.subr.bf16.mxu1 %v15600_v43 }
  0xc8   : > { %14278 = vmatmul.mubr.msk.f32.gmra.mrb[30].mxu1 %vm772_vm1, %v11980_v44  ;;  %v11608_v44 = vld [vmem:[%s20060_s4 + $0x180] sm:$0xff] }
  0xc9   : > { %15603 = vmatpush3.bf16.msra.mxu1 %v15600_v43  ;;  %14296 = vmatprep.mubr.msk.f32.mxu1 %vm772_vm1, %v16935_v15 }
  0xcc   : > { %14297 = vmatmul.mubr.msk.f32.vlgmr.msra.gmra.mrb[24].mxu1 %vm772_vm1, %v16948_v19 }
  0xcd   : > { %14299 = vmatprep.mubr.msk.f32.mxu1 %vm772_vm1, %v16951_v20 }
  0xd0   : > { %14300 = vmatmul.mubr.msk.f32.gmra.mrb[26].mxu1 %vm772_vm1, %v16964_v24 }
  0xd1   : > { %14302 = vmatprep.mubr.msk.f32.mxu1 %vm772_vm1, %v16967_v25 }
  0xd4   : > { %14303 = vmatmul.mubr.msk.f32.gmra.mrb[28].mxu1 %vm772_vm1, %v16980_v29 }
  0xd5   : > { %14305 = vmatprep.mubr.msk.f32.mxu1 %vm772_vm1, %v17113_v18 }
  0xd8   : > { %14306 = vmatmul.mubr.msk.f32.gmra.mrb[30].mxu1 %vm772_vm1, %v12004_v48 }
  0xef   : > { %v13758_v49 = vpop.f32.mrb[0].mxu1  ;;  %v13742_v53 = vpop.f32.mrb[0].mxu0 }
  0xf0   : > { %v700_v15 = vpop.f32.mrb[1].mxu1  ;;  %v560_v19 = vpop.f32.mrb[1].mxu0 }
  0xf1   : > { %v15388_v20 = vpack.c.bf16 %v13758_v49, %v700_v15  ;;  %v15404_v41 = vpack.c.bf16 %v13742_v53, %v560_v19  ;;  %v11609_v49 = vld [vmem:[%s20060_s4 + $0x188] sm:$0xff]  ;;  %v11610_v53 = vld [vmem:[%s20060_s4 + $0x190] sm:$0xff]  ;;  %v11611_v15 = vld [vmem:[%s20060_s4 + $0x198] sm:$0xff] }
  0xf2   : > { %v11612_v19 = vld [vmem:[%s20060_s4 + $0x1a0] sm:$0xff] }
  0xf3   : > { %v13761_v42 = vpop.f32.mrb[2].mxu1  ;;  %15389 = vmatprep.subr.bf16.mxu0 %v15388_v20  ;;  %v13745_v24 = vpop.f32.mrb[2].mxu0 }
  0xf4   : > { %v710_v45 = vpop.f32.mrb[3].mxu1  ;;  %15391 = vmatpush3.bf16.msra.mxu0 %v15388_v20  ;;  %v570_v25 = vpop.f32.mrb[3].mxu0  ;;  %v11613_v20 = vld [vmem:[%s20060_s4 + $0x1a8] sm:$0xff] }
  0xf5   : > { %v15392_v46 = vpack.c.bf16 %v13761_v42, %v710_v45  ;;  %v15408_v29 = vpack.c.bf16 %v13745_v24, %v570_v25  ;;  %v11615_v42 = vld [vmem:[%s20060_s4 + $0x1b8] sm:$0xff]  ;;  %v11616_v24 = vld [vmem:[%s20060_s4 + $0x1c0] sm:$0xff]  ;;  %v11617_v45 = vld [vmem:[%s20060_s4 + $0x1c8] sm:$0xff] }
  0xf6   : > { %v11618_v25 = vld [vmem:[%s20060_s4 + $0x1d0] sm:$0xff] }
  0xf7   : > { %v13764_v47 = vpop.f32.mrb[4].mxu1  ;;  %15393 = vmatprep.subr.bf16.mxu0 %v15392_v46  ;;  %v13748_v50 = vpop.f32.mrb[4].mxu0 }
  0xf8   : > { %v720_v51 = vpop.f32.mrb[5].mxu1  ;;  %15395 = vmatpush3.bf16.msra.mxu0 %v15392_v46  ;;  %v580_v52 = vpop.f32.mrb[5].mxu0  ;;  %v11619_v46 = vld [vmem:[%s20060_s4 + $0x1d8] sm:$0xff] }
  0xf9   : > { %v15396_v54 = vpack.c.bf16 %v13764_v47, %v720_v51  ;;  %v15412_v55 = vpack.c.bf16 %v13748_v50, %v580_v52  ;;  %v11621_v47 = vld [vmem:[%s20060_s4 + $0x1e8] sm:$0xff]  ;;  %v11622_v50 = vld [vmem:[%s20060_s4 + $0x1f0] sm:$0xff]  ;;  %v11623_v51 = vld [vmem:[%s20060_s4 + $0x1f8] sm:$0xff] }
  0xfa   : > { %v599_v52 = vld [vmem:[%s20060_s4] sm:$0xff] }
  0xfb   : > { %v13767_v56 = vpop.f32.mrb[6].mxu1  ;;  %15397 = vmatprep.subr.bf16.mxu0 %v15396_v54  ;;  %v13751_v38 = vpop.f32.mrb[6].mxu0 }
  0xfc   : > { %v730_v57 = vpop.f32.mrb[7].mxu1  ;;  %15399 = vmatpush3.bf16.msra.mxu0 %v15396_v54  ;;  %v590_v58 = vpop.f32.mrb[7].mxu0  ;;  %v600_v54 = vld [vmem:[%s20060_s4 + $0x8] sm:$0xff] }
  0xfd   : > { %v15400_v60 = vpack.c.bf16 %v13767_v56, %v730_v57  ;;  %v15416_v61 = vpack.c.bf16 %v13751_v38, %v590_v58  ;;  %v602_v56 = vld [vmem:[%s20060_s4 + $0x18] sm:$0xff]  ;;  %v603_v38 = vld [vmem:[%s20060_s4 + $0x20] sm:$0xff]  ;;  %v604_v57 = vld [vmem:[%s20060_s4 + $0x28] sm:$0xff] }
  0xfe   : > { %v605_v58 = vld [vmem:[%s20060_s4 + $0x30] sm:$0xff] }
  0xff   : > { %15401 = vmatprep.subr.bf16.mxu0 %v15400_v60  ;;  %v13902_v62 = vpop.f32.mrb[8].mxu1 }
 0x100   : > { %15403 = vmatpush3.bf16.msra.mxu0 %v15400_v60  ;;  %v1484_v2 = vpop.f32.mrb[9].mxu1  ;;  %v606_v60 = vld [vmem:[%s20060_s4 + $0x38] sm:$0xff] }
 0x101   : > { %15405 = vmatprep.subr.bf16.mxu0 %v15404_v41  ;;  %v17213_v6 = vpack.c.bf16 %v13902_v62, %v1484_v2  ;;  %v608_v62 = vld [vmem:[%s20060_s4 + $0x48] sm:$0xff]  ;;  %v610_v2 = vld [vmem:[%s20060_s4 + $0x58] sm:$0xff] }
 0x103   : > { %13785 = vmatmul.mubr.msk.f32.vlgmr.msra.gmra.mrb[8].mxu0 %vm772_vm1, %v11593_v1  ;;  %v13905_v7 = vpop.f32.mrb[10].mxu1  ;;  %v609_v1 = vld [vmem:[%s20060_s4 + $0x50] sm:$0xff] }
 0x104   : > { %15407 = vmatpush3.bf16.msra.mxu0 %v15404_v41  ;;  %13787 = vmatprep.mubr.msk.f32.mxu0 %vm772_vm1, %v11594_v3  ;;  %v1494_v10 = vpop.f32.mrb[11].mxu1  ;;  %v11614_v41 = vld [vmem:[%s20060_s4 + $0x1b0] sm:$0xff]  ;;  %v611_v3 = vld [vmem:[%s20060_s4 + $0x60] sm:$0xff] }
 0x105   : > { %15409 = vmatprep.subr.bf16.mxu0 %v15408_v29  ;;  %v17223_v12 = vpack.c.bf16 %v13905_v7, %v1494_v10  ;;  %v613_v7 = vld [vmem:[%s20060_s4 + $0x70] sm:$0xff]  ;;  %v615_v10 = vld [vmem:[%s20060_s4 + $0x80] sm:$0xff] }
 0x107   : > { %13788 = vmatmul.mubr.msk.f32.gmra.mrb[10].mxu0 %vm772_vm1, %v11595_v8  ;;  %v13908_v13 = vpop.f32.mrb[12].mxu1  ;;  %v614_v8 = vld [vmem:[%s20060_s4 + $0x78] sm:$0xff] }
 0x108   : > { %13790 = vmatprep.mubr.msk.f32.mxu0 %vm772_vm1, %v11596_v11  ;;  %15411 = vmatpush3.bf16.msra.mxu0 %v15408_v29  ;;  %v1504_v16 = vpop.f32.mrb[13].mxu1  ;;  %v11620_v29 = vld [vmem:[%s20060_s4 + $0x1e0] sm:$0xff]  ;;  %v616_v11 = vld [vmem:[%s20060_s4 + $0x88] sm:$0xff] }
 0x109   : > { %15413 = vmatprep.subr.bf16.mxu0 %v15412_v55  ;;  %v17233_v18 = vpack.c.bf16 %v13908_v13, %v1504_v16  ;;  %v618_v13 = vld [vmem:[%s20060_s4 + $0x98] sm:$0xff]  ;;  %v620_v16 = vld [vmem:[%s20060_s4 + $0xa8] sm:$0xff] }
 0x10b   : > { %13791 = vmatmul.mubr.msk.f32.gmra.mrb[12].mxu0 %vm772_vm1, %v11597_v14  ;;  %v13911_v21 = vpop.f32.mrb[14].mxu1  ;;  %v619_v14 = vld [vmem:[%s20060_s4 + $0xa0] sm:$0xff] }
 0x10c   : > { %13793 = vmatprep.mubr.msk.f32.mxu0 %vm772_vm1, %v11598_v17  ;;  %15415 = vmatpush3.bf16.msra.mxu0 %v15412_v55  ;;  %v1514_v23 = vpop.f32.mrb[15].mxu1  ;;  %v601_v55 = vld [vmem:[%s20060_s4 + $0x10] sm:$0xff] }
 0x10d   : > { %15417 = vmatprep.subr.bf16.mxu0 %v15416_v61  ;;  %v17243_v27 = vpack.c.bf16 %v13911_v21, %v1514_v23  ;;  %v621_v17 = vld [vmem:[%s20060_s4 + $0xb0] sm:$0xff]  ;;  %v623_v21 = vld [vmem:[%s20060_s4 + $0xc0] sm:$0xff] }
 0x10e   : > { %v625_v23 = vld [vmem:[%s20060_s4 + $0xd0] sm:$0xff] }
 0x10f   : > { %13794 = vmatmul.mubr.msk.f32.gmra.mrb[14].mxu0 %vm772_vm1, %v11599_v22  ;;  %v13982_v28 = vpop.f32.mrb[16].mxu1  ;;  %v624_v22 = vld [vmem:[%s20060_s4 + $0xc8] sm:$0xff] }
 0x110   : > { %13796 = vmatprep.mubr.msk.f32.mxu0 %vm772_vm1, %v11600_v26  ;;  %15419 = vmatpush3.bf16.msra.mxu0 %v15416_v61  ;;  %v1978_v30 = vpop.f32.mrb[17].mxu1  ;;  %v607_v61 = vld [vmem:[%s20060_s4 + $0x40] sm:$0xff]  ;;  %v626_v26 = vld [vmem:[%s20060_s4 + $0xd8] sm:$0xff] }
 0x111   : > { %15425 = vmatprep.subr.bf16.mxu0 %v17213_v6  ;;  %v17254_v63 = vpack.c.bf16 %v13982_v28, %v1978_v30  ;;  %v628_v28 = vld [vmem:[%s20060_s4 + $0xe8] sm:$0xff]  ;;  %v630_v30 = vld [vmem:[%s20060_s4 + $0xf8] sm:$0xff] }
 0x113   : > { %13797 = vmatmul.mubr.msk.f32.gmra.mrb[16].mxu0 %vm772_vm1, %v11601_v59  ;;  %v13985_v0 = vpop.f32.mrb[18].mxu1  ;;  %v629_v59 = vld [vmem:[%s20060_s4 + $0xf0] sm:$0xff] }
 0x114   : > { %13799 = vmatprep.mubr.msk.f32.mxu0 %vm772_vm1, %v11602_v31  ;;  %v1988_v4 = vpop.f32.mrb[19].mxu1  ;;  %v11698_v31 = vld [vmem:[%s20060_s4 + $0x200] sm:$0xff] }
 0x115   : > { %v17264_v33 = vpack.c.bf16 %v13985_v0, %v1988_v4  ;;  %v11699_v0 = vld [vmem:[%s20060_s4 + $0x208] sm:$0xff]  ;;  %v11701_v4 = vld [vmem:[%s20060_s4 + $0x218] sm:$0xff] }
 0x117   : > { %13800 = vmatmul.mubr.msk.f32.gmra.mrb[18].mxu0 %vm772_vm1, %v11603_v32  ;;  %v13988_v34 = vpop.f32.mrb[20].mxu1  ;;  %v11700_v32 = vld [vmem:[%s20060_s4 + $0x210] sm:$0xff] }
 0x118   : > { %13802 = vmatprep.mubr.msk.f32.mxu0 %vm772_vm1, %v11604_v5  ;;  %v1998_v35 = vpop.f32.mrb[21].mxu1  ;;  %v11702_v5 = vld [vmem:[%s20060_s4 + $0x220] sm:$0xff] }
 0x119   : > { %v17274_v39 = vpack.c.bf16 %v13988_v34, %v1998_v35  ;;  %v11704_v34 = vld [vmem:[%s20060_s4 + $0x230] sm:$0xff]  ;;  %v11707_v35 = vld [vmem:[%s20060_s4 + $0x248] sm:$0xff] }
 0x11b   : > { %13803 = vmatmul.mubr.msk.f32.gmra.mrb[20].mxu0 %vm772_vm1, %v11605_v9  ;;  %v13991_v37 = vpop.f32.mrb[22].mxu1  ;;  %v11706_v9 = vld [vmem:[%s20060_s4 + $0x240] sm:$0xff] }
 0x11c   : > { %13805 = vmatprep.mubr.msk.f32.mxu0 %vm772_vm1, %v11606_v36  ;;  %v2008_v43 = vpop.f32.mrb[23].mxu1  ;;  %v11708_v36 = vld [vmem:[%s20060_s4 + $0x250] sm:$0xff] }
 0x11d   : > { %v17284_v48 = vpack.c.bf16 %v13991_v37, %v2008_v43  ;;  %v11710_v37 = vld [vmem:[%s20060_s4 + $0x260] sm:$0xff]  ;;  %v11712_v43 = vld [vmem:[%s20060_s4 + $0x270] sm:$0xff] }
 0x11f   : > { %13806 = vmatmul.mubr.msk.f32.gmra.mrb[22].mxu0 %vm772_vm1, %v11607_v40  ;;  %v11711_v40 = vld [vmem:[%s20060_s4 + $0x268] sm:$0xff] }
 0x120   : > { %13808 = vmatprep.mubr.msk.f32.mxu0 %vm772_vm1, %v11608_v44  ;;  %v11713_v44 = vld [vmem:[%s20060_s4 + $0x278] sm:$0xff] }
 0x123   : > { %13809 = vmatmul.mubr.msk.f32.gmra.mrb[24].mxu0 %vm772_vm1, %v11609_v49  ;;  %v11714_v49 = vld [vmem:[%s20060_s4 + $0x280] sm:$0xff] }
 0x124   : > { %13811 = vmatprep.mubr.msk.f32.mxu0 %vm772_vm1, %v11610_v53 }
 0x127   : > { %13812 = vmatmul.mubr.msk.f32.gmra.mrb[26].mxu0 %vm772_vm1, %v11611_v15  ;;  %v12022_v15 = vld [vmem:[%s20063_s7] ss:$0 sm:$0xff] }
 0x128   : > { %13814 = vmatprep.mubr.msk.f32.mxu0 %vm772_vm1, %v11612_v19 }
 0x12b   : > { %13815 = vmatmul.mubr.msk.f32.gmra.mrb[28].mxu0 %vm772_vm1, %v11613_v20 }
 0x12c   : > { %13817 = vmatprep.mubr.msk.f32.mxu0 %vm772_vm1, %v11614_v41  ;;  %v11715_v41 = vld [vmem:[%s20060_s4 + $0x288] sm:$0xff] }
 0x12f   : > { %13818 = vmatmul.mubr.msk.f32.gmra.mrb[30].mxu0 %vm772_vm1, %v11615_v42 }
 0x130   : > { %13820 = vmatprep.mubr.msk.f32.mxu0 %vm772_vm1, %v11616_v24  ;;  %v11716_v24 = vld [vmem:[%s20060_s4 + $0x290] sm:$0xff] }
 0x133   : > { %13821 = vmatmul.mubr.msk.f32.gmra.mrb[32].mxu0 %vm772_vm1, %v11617_v45 }
 0x134   : > { %13823 = vmatprep.mubr.msk.f32.mxu0 %vm772_vm1, %v11618_v25 }
 0x137   : > { %13824 = vmatmul.mubr.msk.f32.gmra.mrb[34].mxu0 %vm772_vm1, %v11619_v46 }
 0x138   : > { %13826 = vmatprep.mubr.msk.f32.mxu0 %vm772_vm1, %v11620_v29 }
 0x13b   : > { %13827 = vmatmul.mubr.msk.f32.gmra.mrb[36].mxu0 %vm772_vm1, %v11621_v47 }
 0x13c   : > { %13829 = vmatprep.mubr.msk.f32.mxu0 %vm772_vm1, %v11622_v50 }
 0x13f   : > { %13830 = vmatmul.mubr.msk.f32.gmra.mrb[38].mxu0 %vm772_vm1, %v11623_v51  ;;  %v11717_v51 = vld [vmem:[%s20060_s4 + $0x298] sm:$0xff] }
 0x140   : > { %13848 = vmatprep.mubr.msk.f32.mxu0 %vm772_vm1, %v599_v52 }
 0x143   : > { %13849 = vmatmul.mubr.msk.f32.vlgmr.msra.gmra.mrb[8].mxu0 %vm772_vm1, %v600_v54 }
 0x144   : > { %15427 = vmatpush3.bf16.msra.mxu0 %v17213_v6  ;;  %13851 = vmatprep.mubr.msk.f32.mxu0 %vm772_vm1, %v601_v55  ;;  %v612_v6 = vld [vmem:[%s20060_s4 + $0x68] sm:$0xff]  ;;  %v11718_v55 = vld [vmem:[%s20060_s4 + $0x2a0] sm:$0xff] }
 0x145   : > { %15429 = vmatprep.subr.bf16.mxu0 %v17223_v12 }
 0x147   : > { %13852 = vmatmul.mubr.msk.f32.gmra.mrb[10].mxu0 %vm772_vm1, %v602_v56 }
 0x148   : > { %15431 = vmatpush3.bf16.msra.mxu0 %v17223_v12  ;;  %13854 = vmatprep.mubr.msk.f32.mxu0 %vm772_vm1, %v603_v38  ;;  %v617_v12 = vld [vmem:[%s20060_s4 + $0x90] sm:$0xff] }
 0x149   : > { %15433 = vmatprep.subr.bf16.mxu0 %v17233_v18 }
 0x14b   : > { %13855 = vmatmul.mubr.msk.f32.gmra.mrb[12].mxu0 %vm772_vm1, %v604_v57 }
 0x14c   : > { %15435 = vmatpush3.bf16.msra.mxu0 %v17233_v18  ;;  %13857 = vmatprep.mubr.msk.f32.mxu0 %vm772_vm1, %v605_v58  ;;  %v622_v18 = vld [vmem:[%s20060_s4 + $0xb8] sm:$0xff] }
 0x14d   : > { %15437 = vmatprep.subr.bf16.mxu0 %v17243_v27 }
 0x14f   : > { %13858 = vmatmul.mubr.msk.f32.gmra.mrb[14].mxu0 %vm772_vm1, %v606_v60 }
 0x150   : > { %15439 = vmatpush3.bf16.msra.mxu0 %v17243_v27  ;;  %13860 = vmatprep.mubr.msk.f32.mxu0 %vm772_vm1, %v607_v61  ;;  %v627_v27 = vld [vmem:[%s20060_s4 + $0xe0] sm:$0xff] }
 0x151   : > { %15445 = vmatprep.subr.bf16.mxu0 %v17254_v63 }
 0x153   : > { %13861 = vmatmul.mubr.msk.f32.gmra.mrb[16].mxu0 %vm772_vm1, %v608_v62 }
 0x154   : > { %13863 = vmatprep.mubr.msk.f32.mxu0 %vm772_vm1, %v609_v1  ;;  %v11719_v1 = vld [vmem:[%s20060_s4 + $0x2a8] sm:$0xff] }
 0x157   : > { %13864 = vmatmul.mubr.msk.f32.gmra.mrb[18].mxu0 %vm772_vm1, %v610_v2 }
 0x158   : > { %13866 = vmatprep.mubr.msk.f32.mxu0 %vm772_vm1, %v611_v3 }
 0x15b   : > { %13867 = vmatmul.mubr.msk.f32.gmra.mrb[20].mxu0 %vm772_vm1, %v612_v6  ;;  %v11720_v6 = vld [vmem:[%s20060_s4 + $0x2b0] sm:$0xff] }
 0x15c   : > { %13869 = vmatprep.mubr.msk.f32.mxu0 %vm772_vm1, %v613_v7 }
 0x15f   : > { %13870 = vmatmul.mubr.msk.f32.gmra.mrb[22].mxu0 %vm772_vm1, %v614_v8 }
 0x160   : > { %13872 = vmatprep.mubr.msk.f32.mxu0 %vm772_vm1, %v615_v10 }
 0x163   : > { %13873 = vmatmul.mubr.msk.f32.gmra.mrb[24].mxu0 %vm772_vm1, %v616_v11 }
 0x164   : > { %13875 = vmatprep.mubr.msk.f32.mxu0 %vm772_vm1, %v617_v12 }
 0x167   : > { %13876 = vmatmul.mubr.msk.f32.gmra.mrb[26].mxu0 %vm772_vm1, %v618_v13 }
 0x168   : > { %13878 = vmatprep.mubr.msk.f32.mxu0 %vm772_vm1, %v619_v14 }
 0x16b   : > { %13879 = vmatmul.mubr.msk.f32.gmra.mrb[28].mxu0 %vm772_vm1, %v620_v16  ;;  %v11721_v16 = vld [vmem:[%s20060_s4 + $0x2b8] sm:$0xff] }
 0x16c   : > { %13881 = vmatprep.mubr.msk.f32.mxu0 %vm772_vm1, %v621_v17 }
 0x16f   : > { %13882 = vmatmul.mubr.msk.f32.gmra.mrb[30].mxu0 %vm772_vm1, %v622_v18 }
 0x170   : > { %13884 = vmatprep.mubr.msk.f32.mxu0 %vm772_vm1, %v623_v21  ;;  %v11722_v21 = vld [vmem:[%s20060_s4 + $0x2c0] sm:$0xff] }
 0x173   : > { %13885 = vmatmul.mubr.msk.f32.gmra.mrb[32].mxu0 %vm772_vm1, %v624_v22 }
 0x174   : > { %13887 = vmatprep.mubr.msk.f32.mxu0 %vm772_vm1, %v625_v23 }
 0x177   : > { %13888 = vmatmul.mubr.msk.f32.gmra.mrb[34].mxu0 %vm772_vm1, %v626_v26 }
 0x178   : > { %13890 = vmatprep.mubr.msk.f32.mxu0 %vm772_vm1, %v627_v27 }
 0x17b   : > { %13891 = vmatmul.mubr.msk.f32.gmra.mrb[36].mxu0 %vm772_vm1, %v628_v28  ;;  %v11723_v28 = vld [vmem:[%s20060_s4 + $0x2c8] sm:$0xff] }
 0x17c   : > { %13893 = vmatprep.mubr.msk.f32.mxu0 %vm772_vm1, %v629_v59 }
 0x17f   : > { %13894 = vmatmul.mubr.msk.f32.gmra.mrb[38].mxu0 %vm772_vm1, %v630_v30  ;;  %v11724_v30 = vld [vmem:[%s20060_s4 + $0x2d0] sm:$0xff] }
 0x180   : > { %13928 = vmatprep.mubr.msk.f32.mxu0 %vm772_vm1, %v11698_v31 }
 0x183   : > { %13929 = vmatmul.mubr.msk.f32.vlgmr.msra.gmra.mrb[8].mxu0 %vm772_vm1, %v11699_v0  ;;  %v11725_v0 = vld [vmem:[%s20060_s4 + $0x2d8] sm:$0xff] }
 0x184   : > { %15447 = vmatpush3.bf16.msra.mxu0 %v17254_v63  ;;  %13931 = vmatprep.mubr.msk.f32.mxu0 %vm772_vm1, %v11700_v32  ;;  %v11703_v63 = vld [vmem:[%s20060_s4 + $0x228] sm:$0xff]  ;;  %v11726_v32 = vld [vmem:[%s20060_s4 + $0x2e0] sm:$0xff] }
 0x185   : > { %15449 = vmatprep.subr.bf16.mxu0 %v17264_v33 }
 0x187   : > { %13932 = vmatmul.mubr.msk.f32.gmra.mrb[10].mxu0 %vm772_vm1, %v11701_v4  ;;  %v11727_v4 = vld [vmem:[%s20060_s4 + $0x2e8] sm:$0xff] }
 0x188   : > { %15451 = vmatpush3.bf16.msra.mxu0 %v17264_v33  ;;  %13934 = vmatprep.mubr.msk.f32.mxu0 %vm772_vm1, %v11702_v5  ;;  %v11705_v33 = vld [vmem:[%s20060_s4 + $0x238] sm:$0xff]  ;;  %v11728_v5 = vld [vmem:[%s20060_s4 + $0x2f0] sm:$0xff] }
 0x189   : > { %15453 = vmatprep.subr.bf16.mxu0 %v17274_v39 }
 0x18b   : > { %13935 = vmatmul.mubr.msk.f32.gmra.mrb[12].mxu0 %vm772_vm1, %v11703_v63  ;;  %v11729_v63 = vld [vmem:[%s20060_s4 + $0x2f8] sm:$0xff] }
 0x18c   : > { %15455 = vmatpush3.bf16.msra.mxu0 %v17274_v39  ;;  %13937 = vmatprep.mubr.msk.f32.mxu0 %vm772_vm1, %v11704_v34  ;;  %v11709_v39 = vld [vmem:[%s20060_s4 + $0x258] sm:$0xff]  ;;  %v11772_v34 = vld [vmem:[%s20060_s4 + $0x300] sm:$0xff] }
 0x18d   : > { %15457 = vmatprep.subr.bf16.mxu0 %v17284_v48 }
 0x18f   : > { %13938 = vmatmul.mubr.msk.f32.gmra.mrb[14].mxu0 %vm772_vm1, %v11705_v33  ;;  %v11773_v33 = vld [vmem:[%s20060_s4 + $0x308] sm:$0xff] }
 0x190   : > { %15459 = vmatpush3.bf16.msra.mxu0 %v17284_v48  ;;  %13940 = vmatprep.mubr.msk.f32.mxu0 %vm772_vm1, %v11706_v9  ;;  %v12021_v48 = vld [vmem:[%s20062_s6] ss:$0 sm:$0xff]  ;;  %v11774_v9 = vld [vmem:[%s20060_s4 + $0x310] sm:$0xff] }
 0x193   : > { %13941 = vmatmul.mubr.msk.f32.gmra.mrb[16].mxu0 %vm772_vm1, %v11707_v35  ;;  %v11775_v35 = vld [vmem:[%s20060_s4 + $0x318] sm:$0xff] }
 0x194   : > { %13943 = vmatprep.mubr.msk.f32.mxu0 %vm772_vm1, %v11708_v36  ;;  %v11776_v36 = vld [vmem:[%s20060_s4 + $0x320] sm:$0xff] }
 0x197   : > { %13944 = vmatmul.mubr.msk.f32.gmra.mrb[18].mxu0 %vm772_vm1, %v11709_v39  ;;  %v11777_v39 = vld [vmem:[%s20060_s4 + $0x328] sm:$0xff] }
 0x198   : > { %13946 = vmatprep.mubr.msk.f32.mxu0 %vm772_vm1, %v11710_v37  ;;  %v11778_v37 = vld [vmem:[%s20060_s4 + $0x330] sm:$0xff] }
 0x19b   : > { %13947 = vmatmul.mubr.msk.f32.gmra.mrb[20].mxu0 %vm772_vm1, %v11711_v40  ;;  %v11779_v40 = vld [vmem:[%s20060_s4 + $0x338] sm:$0xff] }
 0x19c   : > { %13949 = vmatprep.mubr.msk.f32.mxu0 %vm772_vm1, %v11712_v43  ;;  %v11780_v43 = vld [vmem:[%s20060_s4 + $0x340] sm:$0xff] }
 0x19f   : > { %13950 = vmatmul.mubr.msk.f32.gmra.mrb[22].mxu0 %vm772_vm1, %v11713_v44  ;;  %v14298_v53 = vpop.f32.mrb[24].mxu1  ;;  %v11781_v44 = vld [vmem:[%s20060_s4 + $0x348] sm:$0xff] }
 0x1a0   : > { %v3910_v19 = vmul.f32 %v14298_v53, %v12021_v48  ;;  %v3855_v20 = vpop.f32.mrb[25].mxu1  ;;  %13952 = vmatprep.mubr.msk.f32.mxu0 %vm772_vm1, %v11714_v49  ;;  %v11783_v49 = vld [vmem:[%s20060_s4 + $0x358] sm:$0xff]  ;;  %v11784_v53 = vld [vmem:[%s20060_s4 + $0x360] sm:$0xff] }
 0x1a1   : > { %v3909_v42 = vmul.f32 %v12021_v48, %v3855_v20  ;;  %v11787_v20 = vld [vmem:[%s20060_s4 + $0x378] sm:$0xff] }
 0x1a2   : > { %v3925_v45 = vadd.f32 %v12022_v15, %v3910_v19  ;;  %v11786_v19 = vld [vmem:[%s20060_s4 + $0x370] sm:$0xff] }
 0x1a3   : > { %v3924_v25 = vadd.f32 %v12022_v15, %v3909_v42  ;;  %13953 = vmatmul.mubr.msk.f32.gmra.mrb[24].mxu0 %vm772_vm1, %v11715_v41  ;;  %v14301_v46 = vpop.f32.mrb[26].mxu1  ;;  %v11788_v41 = vld [vmem:[%s20060_s4 + $0x380] sm:$0xff]  ;;  %v11789_v42 = vld [vmem:[%s20060_s4 + $0x388] sm:$0xff] }
 0x1a4   : > { %v3933_v29 = vmax.f32 %v3925_v45, 0.0  ;;  %v3912_v47 = vmul.f32 %v14301_v46, %v12021_v48  ;;  %v3865_v50 = vpop.f32.mrb[27].mxu1  ;;  %13955 = vmatprep.mubr.msk.f32.mxu0 %vm772_vm1, %v11716_v24  ;;  %v11790_v24 = vld [vmem:[%s20060_s4 + $0x390] sm:$0xff]  ;;  %v11791_v45 = vld [vmem:[%s20060_s4 + $0x398] sm:$0xff]  ;;  %v11793_v46 = vld [vmem:[%s20060_s4 + $0x3a8] sm:$0xff] }
 0x1a5   : > { %v3932_v52 = vmax.f32 %v3924_v25, 0.0  ;;  %v3911_v54 = vmul.f32 %v12021_v48, %v3865_v50  ;;  %v11792_v25 = vld [vmem:[%s20060_s4 + $0x3a0] sm:$0xff] }
 0x1a6   : > { %v3927_v56 = vadd.f32 %v12022_v15, %v3912_v47  ;;  %v11795_v47 = vld [vmem:[%s20060_s4 + $0x3b8] sm:$0xff]  ;;  %v11796_v50 = vld [vmem:[%s20060_s4 + $0x3c0] sm:$0xff] }
 0x1a7   : > { %v3926_v38 = vadd.f32 %v12022_v15, %v3911_v54  ;;  %13956 = vmatmul.mubr.msk.f32.gmra.mrb[26].mxu0 %vm772_vm1, %v11717_v51  ;;  %v14304_v57 = vpop.f32.mrb[28].mxu1  ;;  %v15604_v58 = vpack.c.bf16 %v3933_v29, %v3932_v52  ;;  %v11794_v29 = vld [vmem:[%s20060_s4 + $0x3b0] sm:$0xff]  ;;  %v11797_v51 = vld [vmem:[%s20060_s4 + $0x3c8] sm:$0xff]  ;;  %v11799_v54 = vld [vmem:[%s20060_s4 + $0x3d8] sm:$0xff] }
 0x1a8   : > { %v3935_v60 = vmax.f32 %v3927_v56, 0.0  ;;  %v3914_v61 = vmul.f32 %v14304_v57, %v12021_v48  ;;  %v3875_v62 = vpop.f32.mrb[29].mxu1  ;;  %13958 = vmatprep.mubr.msk.f32.mxu0 %vm772_vm1, %v11718_v55  ;;  %v11798_v52 = vld [vmem:[%s20060_s4 + $0x3d0] sm:$0xff]  ;;  %v11800_v55 = vld [vmem:[%s20060_s4 + $0x3e0] sm:$0xff]  ;;  %v11801_v56 = vld [vmem:[%s20060_s4 + $0x3e8] sm:$0xff] }
 0x1a9   : > { %v3934_v2 = vmax.f32 %v3926_v38, 0.0  ;;  %v3913_v3 = vmul.f32 %v12021_v48, %v3875_v62  ;;  %15605 = vmatprep.subr.bf16.mxu0 %v15604_v58  ;;  %v11802_v38 = vld [vmem:[%s20060_s4 + $0x3f0] sm:$0xff]  ;;  %v11803_v57 = vld [vmem:[%s20060_s4 + $0x3f8] sm:$0xff] }
 0x1aa   : > { %v3929_v7 = vadd.f32 %v12022_v15, %v3914_v61  ;;  %v3942_v61 = vld [vmem:[%s20064_s8 + $0x10] sm:$0xff]  ;;  %v3943_v62 = vld [vmem:[%s20064_s8 + $0x18] sm:$0xff] }
 0x1ab   : > { %v3928_v8 = vadd.f32 %v12022_v15, %v3913_v3  ;;  %13959 = vmatmul.mubr.msk.f32.gmra.mrb[28].mxu0 %vm772_vm1, %v11719_v1  ;;  %v14307_v10 = vpop.f32.mrb[30].mxu1  ;;  %v15608_v11 = vpack.c.bf16 %v3935_v60, %v3934_v2  ;;  %v3941_v60 = vld [vmem:[%s20064_s8 + $0x8] sm:$0xff]  ;;  %v3944_v1 = vld [vmem:[%s20064_s8 + $0x20] sm:$0xff]  ;;  %v3946_v3 = vld [vmem:[%s20064_s8 + $0x30] sm:$0xff] }
 0x1ac   : > { %v3937_v12 = vmax.f32 %v3929_v7, 0.0  ;;  %v3916_v13 = vmul.f32 %v14307_v10, %v12021_v48  ;;  %v3885_v14 = vpop.f32.mrb[31].mxu1  ;;  %13961 = vmatprep.mubr.msk.f32.mxu0 %vm772_vm1, %v11720_v6  ;;  %v3945_v2 = vld [vmem:[%s20064_s8 + $0x28] sm:$0xff]  ;;  %v3947_v6 = vld [vmem:[%s20064_s8 + $0x38] sm:$0xff]  ;;  %v3948_v7 = vld [vmem:[%s20064_s8 + $0x40] sm:$0xff] }
 0x1ad   : > { %v3936_v17 = vmax.f32 %v3928_v8, 0.0  ;;  %v3915_v18 = vmul.f32 %v12021_v48, %v3885_v14  ;;  %v11782_v48 = vld [vmem:[%s20060_s4 + $0x350] sm:$0xff]  ;;  %v3949_v8 = vld [vmem:[%s20064_s8 + $0x48] sm:$0xff]  ;;  %v16579_v14 = vmov 0.0  }
 0x1ae   : > { %v3931_v22 = vadd.f32 %v12022_v15, %v3916_v13  ;;  %v3950_v10 = vld [vmem:[%s20064_s8 + $0x50] sm:$0xff]  ;;  %v17808_v13 = vld [vmem:[%s20064_s8 + $0x68] sm:$0xff]  ;;  %2448 = vst.msk [vmem:[#allocation2 + $0x20] sm:$0xff] %vm2442_vm2, %v16579_v14  ;;  %2443 = vst.msk [vmem:[#allocation2] sm:$0xff] %vm2442_vm2, %v16579_v14 }
 0x1af   : > { %v3930_v23 = vadd.f32 %v12022_v15, %v3915_v18  ;;  %13962 = vmatmul.mubr.msk.f32.gmra.mrb[30].mxu0 %vm772_vm1, %v11721_v16  ;;  %v15612_v26 = vpack.c.bf16 %v3937_v12, %v3936_v17  ;;  %v11785_v15 = vld [vmem:[%s20060_s4 + $0x368] sm:$0xff]  ;;  %v3952_v12 = vld [vmem:[%s20064_s8 + $0x60] sm:$0xff]  ;;  %2449 = vst.msk [vmem:[#allocation2 + $0x28] sm:$0x3] %vm2445_vm3, %v16579_v14  ;;  %2446 = vst.msk [vmem:[#allocation2 + $0x10] sm:$0x3] %vm2445_vm3, %v16579_v14 }
 0x1b0   : > { %v3939_v27 = vmax.f32 %v3931_v22, 0.0  ;;  %13964 = vmatprep.mubr.msk.f32.mxu0 %vm772_vm1, %v11722_v21  ;;  %2444 = vst.msk [vmem:[#allocation2 + $0x8] sm:$0xff] %vm2442_vm2, %v16579_v14  ;;  %2447 = vst.msk [vmem:[#allocation2 + $0x18] sm:$0xff] %vm2442_vm2, %v16579_v14  ;;  %v3954_v16 = vld [vmem:[%s20064_s8 + $0x70] sm:$0xff]  ;;  %v3955_v17 = vld [vmem:[%s20064_s8 + $0x78] sm:$0xff] }
 0x1b1   : > { %v3938_v59 = vmax.f32 %v3930_v23, 0.0  ;;  %2450 = vst.msk [vmem:[#allocation2 + $0x30] sm:$0xff] %vm2442_vm2, %v16579_v14  ;;  %2451 = vst.msk [vmem:[#allocation2 + $0x38] sm:$0xff] %vm2442_vm2, %v16579_v14  ;;  %v3956_v18 = vld [vmem:[%s20064_s8 + $0x80] sm:$0xff]  ;;  %v3957_v21 = vld [vmem:[%s20064_s8 + $0x88] sm:$0xff] }
 0x1b2   : > { %2452 = vst.msk [vmem:[#allocation2 + $0x40] sm:$0x3] %vm2445_vm3, %v16579_v14  ;;  %2455 = vst.msk [vmem:[#allocation2 + $0x58] sm:$0x3] %vm2445_vm3, %v16579_v14  ;;  %v3958_v22 = vld [vmem:[%s20064_s8 + $0x90] sm:$0xff]  ;;  %v3959_v23 = vld [vmem:[%s20064_s8 + $0x98] sm:$0xff] }
 0x1b3   : > { %13965 = vmatmul.mubr.msk.f32.gmra.mrb[32].mxu0 %vm772_vm1, %v11723_v28  ;;  %v15616_v31 = vpack.c.bf16 %v3939_v27, %v3938_v59  ;;  %2453 = vst.msk [vmem:[#allocation2 + $0x48] sm:$0xff] %vm2442_vm2, %v16579_v14  ;;  %2454 = vst.msk [vmem:[#allocation2 + $0x50] sm:$0xff] %vm2442_vm2, %v16579_v14  ;;  %v3961_v27 = vld [vmem:[%s20064_s8 + $0xa8] sm:$0xff]  ;;  %v3962_v28 = vld [vmem:[%s20064_s8 + $0xb0] sm:$0xff] }
 0x1b4   : > { %13967 = vmatprep.mubr.msk.f32.mxu0 %vm772_vm1, %v11724_v30  ;;  %2456 = vst.msk [vmem:[#allocation2 + $0x60] sm:$0xff] %vm2442_vm2, %v16579_v14  ;;  %2457 = vst.msk [vmem:[#allocation2 + $0x68] sm:$0xff] %vm2442_vm2, %v16579_v14  ;;  %v3963_v59 = vld [vmem:[%s20064_s8 + $0xb8] sm:$0xff]  ;;  %v3964_v30 = vld [vmem:[%s20064_s8 + $0xc0] sm:$0xff] }
 0x1b5   : > { %2458 = vst.msk [vmem:[#allocation2 + $0x70] sm:$0x3] %vm2445_vm3, %v16579_v14  ;;  %2461 = vst.msk [vmem:[#allocation2 + $0x88] sm:$0x3] %vm2445_vm3, %v16579_v14 }
 0x1b6   : > { %2459 = vst.msk [vmem:[#allocation2 + $0x78] sm:$0xff] %vm2442_vm2, %v16579_v14  ;;  %2460 = vst.msk [vmem:[#allocation2 + $0x80] sm:$0xff] %vm2442_vm2, %v16579_v14 }
 0x1b7   : > { %13968 = vmatmul.mubr.msk.f32.gmra.mrb[34].mxu0 %vm772_vm1, %v11725_v0  ;;  %2462 = vst.msk [vmem:[#allocation2 + $0x90] sm:$0xff] %vm2442_vm2, %v16579_v14  ;;  %2463 = vst.msk [vmem:[#allocation2 + $0x98] sm:$0xff] %vm2442_vm2, %v16579_v14  ;;  %v3966_v0 = vld [vmem:[%s20064_s8 + $0xd0] sm:$0xff] }
 0x1b8   : > { %13970 = vmatprep.mubr.msk.f32.mxu0 %vm772_vm1, %v11726_v32  ;;  %2464 = vst.msk [vmem:[#allocation2 + $0xa0] sm:$0x3] %vm2445_vm3, %v16579_v14  ;;  %2467 = vst.msk [vmem:[#allocation2 + $0xb8] sm:$0x3] %vm2445_vm3, %v16579_v14  ;;  %v3967_v32 = vld [vmem:[%s20064_s8 + $0xd8] sm:$0xff] }
 0x1b9   : > { %2465 = vst.msk [vmem:[#allocation2 + $0xa8] sm:$0xff] %vm2442_vm2, %v16579_v14  ;;  %2466 = vst.msk [vmem:[#allocation2 + $0xb0] sm:$0xff] %vm2442_vm2, %v16579_v14 }
 0x1ba   : > { %2468 = vst.msk [vmem:[#allocation2 + $0xc0] sm:$0xff] %vm2442_vm2, %v16579_v14  ;;  %2469 = vst.msk [vmem:[#allocation2 + $0xc8] sm:$0xff] %vm2442_vm2, %v16579_v14 }
 0x1bb   : > { %13971 = vmatmul.mubr.msk.f32.gmra.mrb[36].mxu0 %vm772_vm1, %v11727_v4  ;;  %2470 = vst.msk [vmem:[#allocation2 + $0xd0] sm:$0x3] %vm2445_vm3, %v16579_v14  ;;  %2473 = vst.msk [vmem:[#allocation2 + $0xe8] sm:$0x3] %vm2445_vm3, %v16579_v14  ;;  %v3968_v4 = vld [vmem:[%s20064_s8 + $0xe0] sm:$0xff] }
 0x1bc   : > { %13973 = vmatprep.mubr.msk.f32.mxu0 %vm772_vm1, %v11728_v5  ;;  %2471 = vst.msk [vmem:[#allocation2 + $0xd8] sm:$0xff] %vm2442_vm2, %v16579_v14  ;;  %2472 = vst.msk [vmem:[#allocation2 + $0xe0] sm:$0xff] %vm2442_vm2, %v16579_v14  ;;  %v3969_v5 = vld [vmem:[%s20064_s8 + $0xe8] sm:$0xff] }
 0x1bd   : > { %2474 = vst.msk [vmem:[#allocation2 + $0xf0] sm:$0xff] %vm2442_vm2, %v16579_v14  ;;  %2475 = vst.msk [vmem:[#allocation2 + $0xf8] sm:$0xff] %vm2442_vm2, %v16579_v14 }
 0x1be   : > { %2476 = vst.msk [vmem:[#allocation2 + $0x100] sm:$0x3] %vm2445_vm3, %v16579_v14  ;;  %2479 = vst.msk [vmem:[#allocation2 + $0x118] sm:$0x3] %vm2445_vm3, %v16579_v14 }
 0x1bf   : > { %13974 = vmatmul.mubr.msk.f32.gmra.mrb[38].mxu0 %vm772_vm1, %v11729_v63  ;;  %2477 = vst.msk [vmem:[#allocation2 + $0x108] sm:$0xff] %vm2442_vm2, %v16579_v14  ;;  %2478 = vst.msk [vmem:[#allocation2 + $0x110] sm:$0xff] %vm2442_vm2, %v16579_v14  ;;  %v3970_v63 = vld [vmem:[%s20064_s8 + $0xf0] sm:$0xff] }
 0x1c0   : > { %14008 = vmatprep.mubr.msk.f32.mxu0 %vm772_vm1, %v11772_v34  ;;  %2480 = vst.msk [vmem:[#allocation2 + $0x120] sm:$0xff] %vm2442_vm2, %v16579_v14  ;;  %2481 = vst.msk [vmem:[#allocation2 + $0x128] sm:$0xff] %vm2442_vm2, %v16579_v14  ;;  %v3971_v34 = vld [vmem:[%s20064_s8 + $0xf8] sm:$0xff] }
 0x1c1   : > { %2482 = vst.msk [vmem:[#allocation2 + $0x130] sm:$0x3] %vm2445_vm3, %v16579_v14  ;;  %2485 = vst.msk [vmem:[#allocation2 + $0x148] sm:$0x3] %vm2445_vm3, %v16579_v14 }
 0x1c2   : > { %2483 = vst.msk [vmem:[#allocation2 + $0x138] sm:$0xff] %vm2442_vm2, %v16579_v14  ;;  %2484 = vst.msk [vmem:[#allocation2 + $0x140] sm:$0xff] %vm2442_vm2, %v16579_v14 }
 0x1c3   : > { %14009 = vmatmul.mubr.msk.f32.vlgmr.msra.gmra.mrb[8].mxu0 %vm772_vm1, %v11773_v33  ;;  %2486 = vst.msk [vmem:[#allocation2 + $0x150] sm:$0xff] %vm2442_vm2, %v16579_v14  ;;  %2487 = vst.msk [vmem:[#allocation2 + $0x158] sm:$0xff] %vm2442_vm2, %v16579_v14  ;;  %v4448_v33 = vld [vmem:[%s20066_s10] sm:$0xff] }
 0x1c4   : > { %15607 = vmatpush3.bf16.msra.mxu0 %v15604_v58  ;;  %14011 = vmatprep.mubr.msk.f32.mxu0 %vm772_vm1, %v11774_v9  ;;  %v3940_v58 = vld [vmem:[%s20064_s8] sm:$0xff]  ;;  %2488 = vst.msk [vmem:[#allocation2 + $0x160] sm:$0x3] %vm2445_vm3, %v16579_v14  ;;  %2491 = vst.msk [vmem:[#allocation2 + $0x178] sm:$0x3] %vm2445_vm3, %v16579_v14  ;;  %v4449_v9 = vld [vmem:[%s20066_s10 + $0x8] sm:$0xff] }
 0x1c5   : > { %15609 = vmatprep.subr.bf16.mxu0 %v15608_v11  ;;  %2489 = vst.msk [vmem:[#allocation2 + $0x168] sm:$0xff] %vm2442_vm2, %v16579_v14  ;;  %2490 = vst.msk [vmem:[#allocation2 + $0x170] sm:$0xff] %vm2442_vm2, %v16579_v14 }
 0x1c6   : > { %2492 = vst.msk [vmem:[#allocation2 + $0x180] sm:$0xff] %vm2442_vm2, %v16579_v14  ;;  %2493 = vst.msk [vmem:[#allocation2 + $0x188] sm:$0xff] %vm2442_vm2, %v16579_v14 }
 0x1c7   : > { %14012 = vmatmul.mubr.msk.f32.gmra.mrb[10].mxu0 %vm772_vm1, %v11775_v35  ;;  %2494 = vst.msk [vmem:[#allocation2 + $0x190] sm:$0x3] %vm2445_vm3, %v16579_v14  ;;  %2497 = vst.msk [vmem:[#allocation2 + $0x1a8] sm:$0x3] %vm2445_vm3, %v16579_v14  ;;  %v15620_v35 = vpack.c.bf16 %v4449_v9, %v4448_v33 }
 0x1c8   : > { %15611 = vmatpush3.bf16.msra.mxu0 %v15608_v11  ;;  %14014 = vmatprep.mubr.msk.f32.mxu0 %vm772_vm1, %v11776_v36  ;;  %v3951_v11 = vld [vmem:[%s20064_s8 + $0x58] sm:$0xff]  ;;  %2495 = vst.msk [vmem:[#allocation2 + $0x198] sm:$0xff] %vm2442_vm2, %v16579_v14  ;;  %2496 = vst.msk [vmem:[#allocation2 + $0x1a0] sm:$0xff] %vm2442_vm2, %v16579_v14  ;;  %v4450_v36 = vld [vmem:[%s20066_s10 + $0x10] sm:$0xff] }
 0x1c9   : > { %15613 = vmatprep.subr.bf16.mxu0 %v15612_v26  ;;  %4293 = vst.msk [vmem:[#allocation3] sm:$0xff] %vm2442_vm2, %v16579_v14  ;;  %4294 = vst.msk [vmem:[#allocation3 + $0x8] sm:$0xff] %vm2442_vm2, %v16579_v14 }
 0x1ca   : > { %4295 = vst.msk [vmem:[#allocation3 + $0x10] sm:$0x3] %vm2445_vm3, %v16579_v14  ;;  %4298 = vst.msk [vmem:[#allocation3 + $0x28] sm:$0x3] %vm2445_vm3, %v16579_v14 }
 0x1cb   : > { %14015 = vmatmul.mubr.msk.f32.gmra.mrb[12].mxu0 %vm772_vm1, %v11777_v39  ;;  %4296 = vst.msk [vmem:[#allocation3 + $0x18] sm:$0xff] %vm2442_vm2, %v16579_v14  ;;  %4297 = vst.msk [vmem:[#allocation3 + $0x20] sm:$0xff] %vm2442_vm2, %v16579_v14  ;;  %v4451_v39 = vld [vmem:[%s20066_s10 + $0x18] sm:$0xff] }
 0x1cc   : > { %15615 = vmatpush3.bf16.msra.mxu0 %v15612_v26  ;;  %14017 = vmatprep.mubr.msk.f32.mxu0 %vm772_vm1, %v11778_v37  ;;  %4299 = vst.msk [vmem:[#allocation3 + $0x30] sm:$0xff] %vm2442_vm2, %v16579_v14  ;;  %4300 = vst.msk [vmem:[#allocation3 + $0x38] sm:$0xff] %vm2442_vm2, %v16579_v14  ;;  %v3960_v26 = vld [vmem:[%s20064_s8 + $0xa0] sm:$0xff]  ;;  %v15624_v37 = vpack.c.bf16 %v4451_v39, %v4450_v36 }
 0x1cd   : > { %15617 = vmatprep.subr.bf16.mxu0 %v15616_v31  ;;  %4301 = vst.msk [vmem:[#allocation3 + $0x40] sm:$0x3] %vm2445_vm3, %v16579_v14  ;;  %4304 = vst.msk [vmem:[#allocation3 + $0x58] sm:$0x3] %vm2445_vm3, %v16579_v14 }
 0x1ce   : > { %4302 = vst.msk [vmem:[#allocation3 + $0x48] sm:$0xff] %vm2442_vm2, %v16579_v14  ;;  %4303 = vst.msk [vmem:[#allocation3 + $0x50] sm:$0xff] %vm2442_vm2, %v16579_v14 }
 0x1cf   : > { %14018 = vmatmul.mubr.msk.f32.gmra.mrb[14].mxu0 %vm772_vm1, %v11779_v40  ;;  %4305 = vst.msk [vmem:[#allocation3 + $0x60] sm:$0xff] %vm2442_vm2, %v16579_v14  ;;  %4306 = vst.msk [vmem:[#allocation3 + $0x68] sm:$0xff] %vm2442_vm2, %v16579_v14 }
 0x1d0   : > { %15619 = vmatpush3.bf16.msra.mxu0 %v15616_v31  ;;  %14020 = vmatprep.mubr.msk.f32.mxu0 %vm772_vm1, %v11780_v43  ;;  %4307 = vst.msk [vmem:[#allocation3 + $0x70] sm:$0x3] %vm2445_vm3, %v16579_v14  ;;  %4310 = vst.msk [vmem:[#allocation3 + $0x88] sm:$0x3] %vm2445_vm3, %v16579_v14  ;;  %v3965_v31 = vld [vmem:[%s20064_s8 + $0xc8] sm:$0xff]  ;;  %v4412_v40 = vld [vmem:[#allocation3] sm:$0xff] }
 0x1d1   : > { %4308 = vst.msk [vmem:[#allocation3 + $0x78] sm:$0xff] %vm2442_vm2, %v16579_v14  ;;  %4309 = vst.msk [vmem:[#allocation3 + $0x80] sm:$0xff] %vm2442_vm2, %v16579_v14  ;;  %15621 = vmatprep.subr.bf16.mxu0 %v15620_v35  ;;  %v4413_v43 = vld [vmem:[#allocation3 + $0x8] sm:$0xff] }
 0x1d2   : > { %4311 = vst.msk [vmem:[#allocation3 + $0x90] sm:$0xff] %vm2442_vm2, %v16579_v14  ;;  %4312 = vst.msk [vmem:[#allocation3 + $0x98] sm:$0xff] %vm2442_vm2, %v16579_v14 }
 0x1d3   : > { %14021 = vmatmul.mubr.msk.f32.gmra.mrb[16].mxu0 %vm772_vm1, %v11781_v44  ;;  %4313 = vst.msk [vmem:[#allocation3 + $0xa0] sm:$0x3] %vm2445_vm3, %v16579_v14  ;;  %4316 = vst.msk [vmem:[#allocation3 + $0xb8] sm:$0x3] %vm2445_vm3, %v16579_v14  ;;  %v12299_v44 = vld [vmem:[%s20066_s10 + $0x60] sm:$0xff] }
 0x1d4   : > { %14023 = vmatprep.mubr.msk.f32.mxu0 %vm772_vm1, %v11782_v48  ;;  %4314 = vst.msk [vmem:[#allocation3 + $0xa8] sm:$0xff] %vm2442_vm2, %v16579_v14  ;;  %4315 = vst.msk [vmem:[#allocation3 + $0xb0] sm:$0xff] %vm2442_vm2, %v16579_v14  ;;  %v12300_v48 = vld [vmem:[%s20066_s10 + $0x68] sm:$0xff] }
 0x1d5   : > { %4317 = vst.msk [vmem:[#allocation3 + $0xc0] sm:$0xff] %vm2442_vm2, %v16579_v14  ;;  %4318 = vst.msk [vmem:[#allocation3 + $0xc8] sm:$0xff] %vm2442_vm2, %v16579_v14 }
 0x1d6   : > { %4319 = vst.msk [vmem:[#allocation3 + $0xd0] sm:$0x3] %vm2445_vm3, %v16579_v14  ;;  %4322 = vst.msk [vmem:[#allocation3 + $0xe8] sm:$0x3] %vm2445_vm3, %v16579_v14 }
 0x1d7   : > { %14024 = vmatmul.mubr.msk.f32.gmra.mrb[18].mxu0 %vm772_vm1, %v11783_v49  ;;  %4320 = vst.msk [vmem:[#allocation3 + $0xd8] sm:$0xff] %vm2442_vm2, %v16579_v14  ;;  %4321 = vst.msk [vmem:[#allocation3 + $0xe0] sm:$0xff] %vm2442_vm2, %v16579_v14  ;;  %v18120_v49 = vpack.c.bf16 %v12300_v48, %v12299_v44 }
 0x1d8   : > { %14026 = vmatprep.mubr.msk.f32.mxu0 %vm772_vm1, %v11784_v53  ;;  %4323 = vst.msk [vmem:[#allocation3 + $0xf0] sm:$0xff] %vm2442_vm2, %v16579_v14  ;;  %4324 = vst.msk [vmem:[#allocation3 + $0xf8] sm:$0xff] %vm2442_vm2, %v16579_v14  ;;  %v12301_v53 = vld [vmem:[%s20066_s10 + $0x70] sm:$0xff] }
 0x1d9   : > { %4325 = vst.msk [vmem:[#allocation3 + $0x100] sm:$0x3] %vm2445_vm3, %v16579_v14  ;;  %4328 = vst.msk [vmem:[#allocation3 + $0x118] sm:$0x3] %vm2445_vm3, %v16579_v14  ;;  %15764 = vmatprep.subr.bf16.mxu1 %v18120_v49 }
 0x1da   : > { %4326 = vst.msk [vmem:[#allocation3 + $0x108] sm:$0xff] %vm2442_vm2, %v16579_v14  ;;  %4327 = vst.msk [vmem:[#allocation3 + $0x110] sm:$0xff] %vm2442_vm2, %v16579_v14  ;;  %15766 = vmatpush3.bf16.msra.mxu1 %v18120_v49 }
 0x1db   : > { %14027 = vmatmul.mubr.msk.f32.gmra.mrb[20].mxu0 %vm772_vm1, %v11785_v15  ;;  %4329 = vst.msk [vmem:[#allocation3 + $0x120] sm:$0xff] %vm2442_vm2, %v16579_v14  ;;  %4330 = vst.msk [vmem:[#allocation3 + $0x128] sm:$0xff] %vm2442_vm2, %v16579_v14  ;;  %v12302_v15 = vld [vmem:[%s20066_s10 + $0x78] sm:$0xff] }
 0x1dc   : > { %14029 = vmatprep.mubr.msk.f32.mxu0 %vm772_vm1, %v11786_v19  ;;  %4331 = vst.msk [vmem:[#allocation3 + $0x130] sm:$0x3] %vm2445_vm3, %v16579_v14  ;;  %4334 = vst.msk [vmem:[#allocation3 + $0x148] sm:$0x3] %vm2445_vm3, %v16579_v14  ;;  %v18130_v19 = vpack.c.bf16 %v12302_v15, %v12301_v53 }
 0x1dd   : > { %4332 = vst.msk [vmem:[#allocation3 + $0x138] sm:$0xff] %vm2442_vm2, %v16579_v14  ;;  %4333 = vst.msk [vmem:[#allocation3 + $0x140] sm:$0xff] %vm2442_vm2, %v16579_v14 }
 0x1de   : > { %4335 = vst.msk [vmem:[#allocation3 + $0x150] sm:$0xff] %vm2442_vm2, %v16579_v14  ;;  %4336 = vst.msk [vmem:[#allocation3 + $0x158] sm:$0xff] %vm2442_vm2, %v16579_v14  ;;  %15765 = vmatprep.subr.bf16.mxu1 %v18130_v19 }
 0x1df   : > { %14030 = vmatmul.mubr.msk.f32.gmra.mrb[22].mxu0 %vm772_vm1, %v11787_v20  ;;  %4337 = vst.msk [vmem:[#allocation3 + $0x160] sm:$0x3] %vm2445_vm3, %v16579_v14  ;;  %4340 = vst.msk [vmem:[#allocation3 + $0x178] sm:$0x3] %vm2445_vm3, %v16579_v14  ;;  %v4444_v20 = vld [vmem:[%s20065_s9] sm:$0xff]  ;;  %15767 = vmatpush3.bf16.msra.mxu1 %v18130_v19 }
 0x1e0   : > { %14032 = vmatprep.mubr.msk.f32.mxu0 %vm772_vm1, %v11788_v41  ;;  %4338 = vst.msk [vmem:[#allocation3 + $0x168] sm:$0xff] %vm2442_vm2, %v16579_v14  ;;  %4339 = vst.msk [vmem:[#allocation3 + $0x170] sm:$0xff] %vm2442_vm2, %v16579_v14  ;;  %v4445_v41 = vld [vmem:[%s20065_s9 + $0x8] sm:$0xff] }
 0x1e1   : > { %4341 = vst.msk [vmem:[#allocation3 + $0x180] sm:$0xff] %vm2442_vm2, %v16579_v14  ;;  %4342 = vst.msk [vmem:[#allocation3 + $0x188] sm:$0xff] %vm2442_vm2, %v16579_v14 }
 0x1e2   : > { %4343 = vst.msk [vmem:[#allocation3 + $0x190] sm:$0x3] %vm2445_vm3, %v16579_v14  ;;  %4346 = vst.msk [vmem:[#allocation3 + $0x1a8] sm:$0x3] %vm2445_vm3, %v16579_v14 }
 0x1e3   : > { %14033 = vmatmul.mubr.msk.f32.gmra.mrb[24].mxu0 %vm772_vm1, %v11789_v42  ;;  %4344 = vst.msk [vmem:[#allocation3 + $0x198] sm:$0xff] %vm2442_vm2, %v16579_v14  ;;  %4345 = vst.msk [vmem:[#allocation3 + $0x1a0] sm:$0xff] %vm2442_vm2, %v16579_v14  ;;  %v18141_v42 = vld [vmem:[%s20059_s3] ss:$0 sm:$0xff] }
 0x1e4   : > { %14035 = vmatprep.mubr.msk.f32.mxu0 %vm772_vm1, %v11790_v24  ;;  %v15628_v24 = vpack.c.bf16 %v4445_v41, %v4444_v20 }
 0x1e7   : > { %14036 = vmatmul.mubr.msk.f32.gmra.mrb[26].mxu0 %vm772_vm1, %v11791_v45 }
 0x1e8   : > { %14038 = vmatprep.mubr.msk.f32.mxu0 %vm772_vm1, %v11792_v25 }
 0x1eb   : > { %14039 = vmatmul.mubr.msk.f32.gmra.mrb[28].mxu0 %vm772_vm1, %v11793_v46 }
 0x1ec   : > { %14041 = vmatprep.mubr.msk.f32.mxu0 %vm772_vm1, %v11794_v29  ;;  %v4446_v29 = vld [vmem:[%s20065_s9 + $0x10] sm:$0xff] }
 0x1ef   : > { %14042 = vmatmul.mubr.msk.f32.gmra.mrb[30].mxu0 %vm772_vm1, %v11795_v47  ;;  %v4447_v47 = vld [vmem:[%s20065_s9 + $0x18] sm:$0xff] }
 0x1f0   : > { %14044 = vmatprep.mubr.msk.f32.mxu0 %vm772_vm1, %v11796_v50  ;;  %v12335_v50 = vld [vmem:[%s20065_s9 + $0x80] sm:$0xff] }
 0x1f3   : > { %14045 = vmatmul.mubr.msk.f32.gmra.mrb[32].mxu0 %vm772_vm1, %v11797_v51 }
 0x1f4   : > { %14047 = vmatprep.mubr.msk.f32.mxu0 %vm772_vm1, %v11798_v52  ;;  %v15632_v52 = vpack.c.bf16 %v4447_v47, %v4446_v29 }
 0x1f7   : > { %14048 = vmatmul.mubr.msk.f32.gmra.mrb[34].mxu0 %vm772_vm1, %v11799_v54  ;;  %v12336_v54 = vld [vmem:[%s20065_s9 + $0x88] sm:$0xff] }
 0x1f8   : > { %14050 = vmatprep.mubr.msk.f32.mxu0 %vm772_vm1, %v11800_v55  ;;  %v18160_v55 = vpack.c.bf16 %v12336_v54, %v12335_v50  ;;  %v12119_v54 = vld [vmem:[%s20065_s9 + $0x20] sm:$0xff] }
 0x1fa   : > { %15685 = vmatprep.subr.bf16.mxu1 %v18160_v55 }
 0x1fb   : > { %14051 = vmatmul.mubr.msk.f32.gmra.mrb[36].mxu0 %vm772_vm1, %v11801_v56 }
 0x1fc   : > { %14053 = vmatprep.mubr.msk.f32.mxu0 %vm772_vm1, %v11802_v38 }
 0x1ff   : > { %14054 = vmatmul.mubr.msk.f32.gmra.mrb[38].mxu0 %vm772_vm1, %v11803_v57 }
 0x200   : > { %14324 = vmatprep.mubr.msk.f32.mxu0 %vm772_vm1, %v3940_v58 }
 0x203   : > { %14325 = vmatmul.mubr.msk.f32.vlgmr.msra.gmra.mrb[40].mxu0 %vm772_vm1, %v3941_v60 }
 0x204   : > { %14327 = vmatprep.mubr.msk.f32.mxu0 %vm772_vm1, %v3942_v61  ;;  %15623 = vmatpush3.bf16.msra.mxu0 %v15620_v35 }
 0x205   : > { %15625 = vmatprep.subr.bf16.mxu0 %v15624_v37 }
 0x207   : > { %14328 = vmatmul.mubr.msk.f32.gmra.mrb[42].mxu0 %vm772_vm1, %v3943_v62 }
 0x208   : > { %14330 = vmatprep.mubr.msk.f32.mxu0 %vm772_vm1, %v3944_v1  ;;  %15627 = vmatpush3.bf16.msra.mxu0 %v15624_v37 }
 0x209   : > { %15629 = vmatprep.subr.bf16.mxu0 %v15628_v24 }
 0x20b   : > { %14331 = vmatmul.mubr.msk.f32.gmra.mrb[44].mxu0 %vm772_vm1, %v3945_v2 }
 0x20c   : > { %14333 = vmatprep.mubr.msk.f32.mxu0 %vm772_vm1, %v3946_v3 }
 0x20f   : > { %14334 = vmatmul.mubr.msk.f32.gmra.mrb[46].mxu0 %vm772_vm1, %v3947_v6 }
 0x210   : > { %14336 = vmatprep.mubr.msk.f32.mxu0 %vm772_vm1, %v3948_v7 }
 0x213   : > { %14337 = vmatmul.mubr.msk.f32.gmra.mrb[48].mxu0 %vm772_vm1, %v3949_v8 }
 0x214   : > { %14339 = vmatprep.mubr.msk.f32.mxu0 %vm772_vm1, %v3950_v10 }
 0x217   : > { %14340 = vmatmul.mubr.msk.f32.gmra.mrb[50].mxu0 %vm772_vm1, %v3951_v11 }
 0x218   : > { %14342 = vmatprep.mubr.msk.f32.mxu0 %vm772_vm1, %v3952_v12 }
 0x21b   : > { %14343 = vmatmul.mubr.msk.f32.gmra.mrb[52].mxu0 %vm772_vm1, %v17808_v13 }
 0x21c   : > { %14345 = vmatprep.mubr.msk.f32.mxu0 %vm772_vm1, %v3954_v16 }
 0x21f   : > { %14346 = vmatmul.mubr.msk.f32.gmra.mrb[54].mxu0 %vm772_vm1, %v3955_v17 }
 0x220   : > { %14348 = vmatprep.mubr.msk.f32.mxu0 %vm772_vm1, %v3956_v18 }
 0x223   : > { %14349 = vmatmul.mubr.msk.f32.gmra.mrb[56].mxu0 %vm772_vm1, %v3957_v21 }
 0x224   : > { %14351 = vmatprep.mubr.msk.f32.mxu0 %vm772_vm1, %v3958_v22 }
 0x227   : > { %14352 = vmatmul.mubr.msk.f32.gmra.mrb[58].mxu0 %vm772_vm1, %v3959_v23 }
 0x228   : > { %14354 = vmatprep.mubr.msk.f32.mxu0 %vm772_vm1, %v3960_v26 }
 0x22b   : > { %14355 = vmatmul.mubr.msk.f32.gmra.mrb[60].mxu0 %vm772_vm1, %v3961_v27 }
 0x22c   : > { %14357 = vmatprep.mubr.msk.f32.mxu0 %vm772_vm1, %v3962_v28 }
 0x22f   : > { %14358 = vmatmul.mubr.msk.f32.gmra.mrb[62].mxu0 %vm772_vm1, %v3963_v59 }
 0x230   : > { %14360 = vmatprep.mubr.msk.f32.mxu0 %vm772_vm1, %v3964_v30 }
 0x233   : > { %14361 = vmatmul.mubr.msk.f32.gmra.mrb[64].mxu0 %vm772_vm1, %v3965_v31 }
 0x234   : > { %14363 = vmatprep.mubr.msk.f32.mxu0 %vm772_vm1, %v3966_v0 }
 0x237   : > { %14364 = vmatmul.mubr.msk.f32.gmra.mrb[66].mxu0 %vm772_vm1, %v3967_v32 }
 0x238   : > { %14366 = vmatprep.mubr.msk.f32.mxu0 %vm772_vm1, %v3968_v4 }
 0x23b   : > { %14367 = vmatmul.mubr.msk.f32.gmra.mrb[68].mxu0 %vm772_vm1, %v3969_v5 }
 0x23c   : > { %14369 = vmatprep.mubr.msk.f32.mxu0 %vm772_vm1, %v3970_v63 }
 0x23f   : > { %14370 = vmatmul.mubr.msk.f32.gmra.mrb[70].mxu0 %vm772_vm1, %v3971_v34 }
 0x240   : > { %14380 = vmatprep.mubr.msk.f32.mxu0 %vm2442_vm2, %v4412_v40 }
 0x243   : > { %14381 = vmatmul.mubr.msk.f32.vlgmr.msra.gmra.mrb[72].mxu0 %vm2442_vm2, %v4413_v43 }
 0x244   : > { %15631 = vmatpush3.bf16.msra.mxu0 %v15628_v24 }
 0x245   : > { %15633 = vmatprep.subr.bf16.mxu0 %v15632_v52 }
 0x248   : > { %15635 = vmatpush3.bf16.msra.mxu0 %v15632_v52 }
 0x296   : > { %v14010_v45 = vpop.f32.mrb[8].mxu0 }
 0x297   : > { %v2411_v25 = vadd.f32 %v14010_v45, %v18141_v42  ;;  %v2212_v46 = vpop.f32.mrb[9].mxu0 }
 0x298   : > { %v2410_v51 = vadd.f32 %v18141_v42, %v2212_v46 }
 0x299   : > { %2500 = vst.msk [vmem:[#allocation2 + $0x21] sm:$0xff] %vm2442_vm2, %v2411_v25 }
 0x29a   : > { %2499 = vst.msk [vmem:[#allocation2 + $0x19] sm:$0xff] %vm2442_vm2, %v2410_v51  ;;  %v14013_v56 = vpop.f32.mrb[10].mxu0 }
 0x29b   : > { %v2413_v38 = vadd.f32 %v14013_v56, %v18141_v42  ;;  %v2222_v57 = vpop.f32.mrb[11].mxu0  ;;  %v12120_v56 = vld [vmem:[%s20065_s9 + $0x28] sm:$0xff] }
 0x29c   : > { %v2412_v58 = vadd.f32 %v18141_v42, %v2222_v57  ;;  %v18228_v57 = vpack.c.bf16 %v12120_v56, %v12119_v54 }
 0x29d   : > { %2502 = vst.msk [vmem:[#allocation2 + $0x39] sm:$0xff] %vm2442_vm2, %v2413_v38 }
 0x29e   : > { %2501 = vst.msk [vmem:[#allocation2 + $0x31] sm:$0xff] %vm2442_vm2, %v2412_v58  ;;  %v14016_v60 = vpop.f32.mrb[12].mxu0  ;;  %15637 = vmatprep.subr.bf16.mxu0 %v18228_v57 }
 0x29f   : > { %v2415_v61 = vadd.f32 %v14016_v60, %v18141_v42  ;;  %v2232_v62 = vpop.f32.mrb[13].mxu0 }
 0x2a0   : > { %v2414_v1 = vadd.f32 %v18141_v42, %v2232_v62 }
 0x2a1   : > { %2504 = vst.msk [vmem:[#allocation2 + $0x51] sm:$0xff] %vm2442_vm2, %v2415_v61 }
 0x2a2   : > { %2503 = vst.msk [vmem:[#allocation2 + $0x49] sm:$0xff] %vm2442_vm2, %v2414_v1  ;;  %v14019_v2 = vpop.f32.mrb[14].mxu0 }
 0x2a3   : > { %v2417_v3 = vadd.f32 %v14019_v2, %v18141_v42  ;;  %v2242_v6 = vpop.f32.mrb[15].mxu0 }
 0x2a4   : > { %v2416_v7 = vadd.f32 %v18141_v42, %v2242_v6 }
 0x2a5   : > { %2506 = vst.msk [vmem:[#allocation2 + $0x69] sm:$0xff] %vm2442_vm2, %v2417_v3 }
 0x2a6   : > { %2505 = vst.msk [vmem:[#allocation2 + $0x61] sm:$0xff] %vm2442_vm2, %v2416_v7  ;;  %v14022_v8 = vpop.f32.mrb[16].mxu0 }
 0x2a7   : > { %v2419_v10 = vadd.f32 %v14022_v8, %v18141_v42  ;;  %v2252_v11 = vpop.f32.mrb[17].mxu0 }
 0x2a8   : > { %v2418_v12 = vadd.f32 %v18141_v42, %v2252_v11 }
 0x2a9   : > { %2508 = vst.msk [vmem:[#allocation2 + $0x81] sm:$0xff] %vm2442_vm2, %v2419_v10 }
 0x2aa   : > { %2507 = vst.msk [vmem:[#allocation2 + $0x79] sm:$0xff] %vm2442_vm2, %v2418_v12  ;;  %v14025_v13 = vpop.f32.mrb[18].mxu0 }
 0x2ab   : > { %v2421_v14 = vadd.f32 %v14025_v13, %v18141_v42  ;;  %v2262_v16 = vpop.f32.mrb[19].mxu0 }
 0x2ac   : > { %v2420_v17 = vadd.f32 %v18141_v42, %v2262_v16 }
 0x2ad   : > { %2510 = vst.msk [vmem:[#allocation2 + $0x99] sm:$0xff] %vm2442_vm2, %v2421_v14 }
 0x2ae   : > { %2509 = vst.msk [vmem:[#allocation2 + $0x91] sm:$0xff] %vm2442_vm2, %v2420_v17  ;;  %v14028_v18 = vpop.f32.mrb[20].mxu0 }
 0x2af   : > { %v2423_v21 = vadd.f32 %v14028_v18, %v18141_v42  ;;  %v2272_v22 = vpop.f32.mrb[21].mxu0 }
 0x2b0   : > { %v2422_v23 = vadd.f32 %v18141_v42, %v2272_v22 }
 0x2b1   : > { %2512 = vst.msk [vmem:[#allocation2 + $0xb1] sm:$0xff] %vm2442_vm2, %v2423_v21 }
 0x2b2   : > { %2511 = vst.msk [vmem:[#allocation2 + $0xa9] sm:$0xff] %vm2442_vm2, %v2422_v23  ;;  %v14031_v26 = vpop.f32.mrb[22].mxu0 }
 0x2b3   : > { %v2425_v27 = vadd.f32 %v14031_v26, %v18141_v42  ;;  %v2282_v28 = vpop.f32.mrb[23].mxu0 }
 0x2b4   : > { %v2424_v59 = vadd.f32 %v18141_v42, %v2282_v28 }
 0x2b5   : > { %2514 = vst.msk [vmem:[#allocation2 + $0xc9] sm:$0xff] %vm2442_vm2, %v2425_v27 }
 0x2b6   : > { %2513 = vst.msk [vmem:[#allocation2 + $0xc1] sm:$0xff] %vm2442_vm2, %v2424_v59  ;;  %v14034_v30 = vpop.f32.mrb[24].mxu0 }
 0x2b7   : > { %v2427_v31 = vadd.f32 %v14034_v30, %v18141_v42  ;;  %v2292_v0 = vpop.f32.mrb[25].mxu0 }
 0x2b8   : > { %v2426_v32 = vadd.f32 %v18141_v42, %v2292_v0 }
 0x2b9   : > { %2516 = vst.msk [vmem:[#allocation2 + $0xe1] sm:$0xff] %vm2442_vm2, %v2427_v31 }
 0x2ba   : > { %2515 = vst.msk [vmem:[#allocation2 + $0xd9] sm:$0xff] %vm2442_vm2, %v2426_v32  ;;  %v14037_v4 = vpop.f32.mrb[26].mxu0 }
 0x2bb   : > { %v2429_v5 = vadd.f32 %v14037_v4, %v18141_v42  ;;  %v2302_v63 = vpop.f32.mrb[27].mxu0 }
 0x2bc   : > { %v2428_v34 = vadd.f32 %v18141_v42, %v2302_v63 }
 0x2bd   : > { %2518 = vst.msk [vmem:[#allocation2 + $0xf9] sm:$0xff] %vm2442_vm2, %v2429_v5 }
 0x2be   : > { %2517 = vst.msk [vmem:[#allocation2 + $0xf1] sm:$0xff] %vm2442_vm2, %v2428_v34  ;;  %v14040_v33 = vpop.f32.mrb[28].mxu0 }
 0x2bf   : > { %v2431_v9 = vadd.f32 %v14040_v33, %v18141_v42  ;;  %v2312_v35 = vpop.f32.mrb[29].mxu0 }
 0x2c0   : > { %v2430_v36 = vadd.f32 %v18141_v42, %v2312_v35 }
 0x2c1   : > { %2520 = vst.msk [vmem:[#allocation2 + $0x111] sm:$0xff] %vm2442_vm2, %v2431_v9 }
 0x2c2   : > { %2519 = vst.msk [vmem:[#allocation2 + $0x109] sm:$0xff] %vm2442_vm2, %v2430_v36  ;;  %v14043_v39 = vpop.f32.mrb[30].mxu0 }
 0x2c3   : > { %v2433_v37 = vadd.f32 %v14043_v39, %v18141_v42  ;;  %v2322_v40 = vpop.f32.mrb[31].mxu0 }
 0x2c4   : > { %v2432_v43 = vadd.f32 %v18141_v42, %v2322_v40 }
 0x2c5   : > { %2522 = vst.msk [vmem:[#allocation2 + $0x129] sm:$0xff] %vm2442_vm2, %v2433_v37 }
 0x2c6   : > { %2521 = vst.msk [vmem:[#allocation2 + $0x121] sm:$0xff] %vm2442_vm2, %v2432_v43  ;;  %v14046_v44 = vpop.f32.mrb[32].mxu0 }
 0x2c7   : > { %v2435_v48 = vadd.f32 %v14046_v44, %v18141_v42  ;;  %v2332_v53 = vpop.f32.mrb[33].mxu0 }
 0x2c8   : > { %v2434_v15 = vadd.f32 %v18141_v42, %v2332_v53 }
 0x2c9   : > { %2524 = vst.msk [vmem:[#allocation2 + $0x141] sm:$0xff] %vm2442_vm2, %v2435_v48 }
 0x2ca   : > { %2523 = vst.msk [vmem:[#allocation2 + $0x139] sm:$0xff] %vm2442_vm2, %v2434_v15  ;;  %v14049_v20 = vpop.f32.mrb[34].mxu0 }
 0x2cb   : > { %v2437_v41 = vadd.f32 %v14049_v20, %v18141_v42  ;;  %v2342_v24 = vpop.f32.mrb[35].mxu0 }
 0x2cc   : > { %v2436_v45 = vadd.f32 %v18141_v42, %v2342_v24 }
 0x2cd   : > { %2526 = vst.msk [vmem:[#allocation2 + $0x159] sm:$0xff] %vm2442_vm2, %v2437_v41 }
 0x2ce   : > { %2525 = vst.msk [vmem:[#allocation2 + $0x151] sm:$0xff] %vm2442_vm2, %v2436_v45  ;;  %v14052_v25 = vpop.f32.mrb[36].mxu0 }
 0x2cf   : > { %v2439_v46 = vadd.f32 %v14052_v25, %v18141_v42  ;;  %v2352_v29 = vpop.f32.mrb[37].mxu0 }
 0x2d0   : > { %v2438_v47 = vadd.f32 %v18141_v42, %v2352_v29 }
 0x2d1   : > { %2528 = vst.msk [vmem:[#allocation2 + $0x171] sm:$0xff] %vm2442_vm2, %v2439_v46 }
 0x2d2   : > { %2527 = vst.msk [vmem:[#allocation2 + $0x169] sm:$0xff] %vm2442_vm2, %v2438_v47  ;;  %v14055_v50 = vpop.f32.mrb[38].mxu0 }
 0x2d3   : > { %v2441_v51 = vadd.f32 %v14055_v50, %v18141_v42  ;;  %v2362_v52 = vpop.f32.mrb[39].mxu0 }
 0x2d4   : > { %v2440_v38 = vadd.f32 %v18141_v42, %v2362_v52 }
 0x2d5   : > { %2530 = vst.msk [vmem:[#allocation2 + $0x189] sm:$0xff] %vm2442_vm2, %v2441_v51 }
 0x2d6   : > { %2529 = vst.msk [vmem:[#allocation2 + $0x181] sm:$0xff] %vm2442_vm2, %v2440_v38  ;;  %v14326_v58 = vpop.f32.mrb[40].mxu0 }
 0x2d7   : > { %4349 = vst.msk [vmem:[#allocation3 + $0x21] sm:$0xff] %vm2442_vm2, %v14326_v58  ;;  %v4134_v60 = vpop.f32.mrb[41].mxu0  ;;  %v12337_v58 = vld [vmem:[%s20065_s9 + $0x90] sm:$0xff] }
 0x2d8   : > { %4348 = vst.msk [vmem:[#allocation3 + $0x19] sm:$0xff] %vm2442_vm2, %v4134_v60  ;;  %v12338_v60 = vld [vmem:[%s20065_s9 + $0x98] sm:$0xff] }
 0x2da   : > { %v14329_v61 = vpop.f32.mrb[42].mxu0 }
 0x2db   : > { %4351 = vst.msk [vmem:[#allocation3 + $0x39] sm:$0xff] %vm2442_vm2, %v14329_v61  ;;  %v4144_v62 = vpop.f32.mrb[43].mxu0 }
 0x2dc   : > { %4350 = vst.msk [vmem:[#allocation3 + $0x31] sm:$0xff] %vm2442_vm2, %v4144_v62 }
 0x2de   : > { %v14332_v42 = vpop.f32.mrb[44].mxu0 }
 0x2df   : > { %4353 = vst.msk [vmem:[#allocation3 + $0x51] sm:$0xff] %vm2442_vm2, %v14332_v42  ;;  %v4154_v1 = vpop.f32.mrb[45].mxu0  ;;  %v4414_v2 = vld [vmem:[#allocation3 + $0x18] sm:$0xff]  ;;  %v4415_v3 = vld [vmem:[#allocation3 + $0x20] sm:$0xff]  ;;  %v4380_v42 = vld [vmem:[#allocation2] sm:$0xff] }
 0x2e0   : > { %4352 = vst.msk [vmem:[#allocation3 + $0x49] sm:$0xff] %vm2442_vm2, %v4154_v1  ;;  %14383 = vmatprep.mubr.msk.f32.mxu0 %vm2442_vm2, %v4414_v2  ;;  %v15688_v1 = vpack.c.bf16 %v12338_v60, %v12337_v58  ;;  %v12371_v2 = vld [vmem:[%s20066_s10 + $0x80] sm:$0xff]  ;;  %v4401_v58 = vld [vmem:[#allocation2 + $0xf8] sm:$0xff] }
 0x2e1   : > { %14384 = vmatmul.mubr.msk.f32.gmra.mrb[74].mxu0 %vm2442_vm2, %v4415_v3  ;;  %v12372_v3 = vld [vmem:[%s20066_s10 + $0x88] sm:$0xff]  ;;  %v18440_v60 = vld [vmem:[#allocation2 + $0xf9] sm:$0xff] }
 0x2e2   : > { %v14335_v6 = vpop.f32.mrb[46].mxu0 }
 0x2e3   : > { %4355 = vst.msk [vmem:[#allocation3 + $0x69] sm:$0xff] %vm2442_vm2, %v14335_v6  ;;  %v4164_v7 = vpop.f32.mrb[47].mxu0  ;;  %v4416_v8 = vld [vmem:[#allocation3 + $0x30] sm:$0xff]  ;;  %v4417_v10 = vld [vmem:[#allocation3 + $0x38] sm:$0xff] }
 0x2e4   : > { %4354 = vst.msk [vmem:[#allocation3 + $0x61] sm:$0xff] %vm2442_vm2, %v4164_v7  ;;  %14386 = vmatprep.mubr.msk.f32.mxu0 %vm2442_vm2, %v4416_v8  ;;  %v4381_v6 = vld [vmem:[#allocation2 + $0x8] sm:$0xff] }
 0x2e5   : > { %14387 = vmatmul.mubr.msk.f32.gmra.mrb[76].mxu0 %vm2442_vm2, %v4417_v10  ;;  %v15692_v10 = vpack.c.bf16 %v12372_v3, %v12371_v2  ;;  %v4404_v2 = vld [vmem:[#allocation2 + $0x120] sm:$0xff] }
 0x2e6   : > { %v14338_v11 = vpop.f32.mrb[48].mxu0  ;;  %v18455_v3 = vld [vmem:[#allocation2 + $0x121] sm:$0xff] }
 0x2e7   : > { %4357 = vst.msk [vmem:[#allocation3 + $0x81] sm:$0xff] %vm2442_vm2, %v14338_v11  ;;  %v4174_v12 = vpop.f32.mrb[49].mxu0  ;;  %v4418_v13 = vld [vmem:[#allocation3 + $0x48] sm:$0xff]  ;;  %v4419_v14 = vld [vmem:[#allocation3 + $0x50] sm:$0xff]  ;;  %v12121_v11 = vld [vmem:[%s20065_s9 + $0x30] sm:$0xff] }
 0x2e8   : > { %4356 = vst.msk [vmem:[#allocation3 + $0x79] sm:$0xff] %vm2442_vm2, %v4174_v12  ;;  %14389 = vmatprep.mubr.msk.f32.mxu0 %vm2442_vm2, %v4418_v13  ;;  %v12122_v12 = vld [vmem:[%s20065_s9 + $0x38] sm:$0xff]  ;;  %v12373_v13 = vld [vmem:[%s20066_s10 + $0x90] sm:$0xff] }
 0x2e9   : > { %14390 = vmatmul.mubr.msk.f32.gmra.mrb[78].mxu0 %vm2442_vm2, %v4419_v14  ;;  %v12374_v14 = vld [vmem:[%s20066_s10 + $0x98] sm:$0xff] }
 0x2ea   : > { %v14341_v16 = vpop.f32.mrb[50].mxu0 }
 0x2eb   : > { %4359 = vst.msk [vmem:[#allocation3 + $0x99] sm:$0xff] %vm2442_vm2, %v14341_v16  ;;  %v4184_v17 = vpop.f32.mrb[51].mxu0  ;;  %v4420_v18 = vld [vmem:[#allocation3 + $0x60] sm:$0xff]  ;;  %v4421_v21 = vld [vmem:[#allocation3 + $0x68] sm:$0xff] }
 0x2ec   : > { %4358 = vst.msk [vmem:[#allocation3 + $0x91] sm:$0xff] %vm2442_vm2, %v4184_v17  ;;  %14392 = vmatprep.mubr.msk.f32.mxu0 %vm2442_vm2, %v4420_v18  ;;  %v18327_v16 = vld [vmem:[#allocation2 + $0x19] sm:$0xff]  ;;  %v18331_v18 = vld [vmem:[#allocation2 + $0x21] sm:$0xff] }
 0x2ed   : > { %14393 = vmatmul.mubr.msk.f32.gmra.mrb[80].mxu0 %vm2442_vm2, %v4421_v21  ;;  %v4383_v17 = vld [vmem:[#allocation2 + $0x20] sm:$0xff]  ;;  %v15640_v21 = vpack.c.bf16 %v12122_v12, %v12121_v11 }
 0x2ee   : > { %v14344_v22 = vpop.f32.mrb[52].mxu0  ;;  %v4407_v11 = vld [vmem:[#allocation2 + $0x140] sm:$0xff] }
 0x2ef   : > { %4361 = vst.msk [vmem:[#allocation3 + $0xb1] sm:$0xff] %vm2442_vm2, %v14344_v22  ;;  %v4194_v23 = vpop.f32.mrb[53].mxu0  ;;  %v4422_v26 = vld [vmem:[#allocation3 + $0x78] sm:$0xff]  ;;  %v4423_v27 = vld [vmem:[#allocation3 + $0x80] sm:$0xff] }
 0x2f0   : > { %4360 = vst.msk [vmem:[#allocation3 + $0xa9] sm:$0xff] %vm2442_vm2, %v4194_v23  ;;  %14395 = vmatprep.mubr.msk.f32.mxu0 %vm2442_vm2, %v4422_v26  ;;  %v4384_v22 = vld [vmem:[#allocation2 + $0x30] sm:$0xff]  ;;  %v15696_v23 = vpack.c.bf16 %v12374_v14, %v12373_v13  ;;  %v12155_v26 = vld [vmem:[%s20066_s10 + $0x20] sm:$0xff]  ;;  %v4409_v14 = vld [vmem:[#allocation2 + $0x158] sm:$0xff] }
 0x2f1   : > { %14396 = vmatmul.mubr.msk.f32.gmra.mrb[82].mxu0 %vm2442_vm2, %v4423_v27  ;;  %v12156_v27 = vld [vmem:[%s20066_s10 + $0x28] sm:$0xff]  ;;  %v18475_v13 = vld [vmem:[#allocation2 + $0x151] sm:$0xff] }
 0x2f2   : > { %v14347_v28 = vpop.f32.mrb[54].mxu0  ;;  %v18470_v12 = vld [vmem:[#allocation2 + $0x141] sm:$0xff] }
 0x2f3   : > { %4363 = vst.msk [vmem:[#allocation3 + $0xc9] sm:$0xff] %vm2442_vm2, %v14347_v28  ;;  %v4204_v59 = vpop.f32.mrb[55].mxu0  ;;  %v4424_v30 = vld [vmem:[#allocation3 + $0x90] sm:$0xff]  ;;  %v4425_v31 = vld [vmem:[#allocation3 + $0x98] sm:$0xff]  ;;  %v18343_v28 = vld [vmem:[#allocation2 + $0x31] sm:$0xff] }
 0x2f4   : > { %4362 = vst.msk [vmem:[#allocation3 + $0xc1] sm:$0xff] %vm2442_vm2, %v4204_v59  ;;  %14398 = vmatprep.mubr.msk.f32.mxu0 %vm2442_vm2, %v4424_v30  ;;  %v12407_v59 = vld [vmem:[%s20065_s9 + $0xa0] sm:$0xff]  ;;  %v18354_v30 = vpack.c.bf16 %v12156_v27, %v12155_v26  ;;  %v4411_v26 = vld [vmem:[#allocation2 + $0x170] sm:$0xff] }
 0x2f5   : > { %14399 = vmatmul.mubr.msk.f32.gmra.mrb[84].mxu0 %vm2442_vm2, %v4425_v31  ;;  %v4385_v31 = vld [vmem:[#allocation2 + $0x38] sm:$0xff] }
 0x2f6   : > { %v14350_v0 = vpop.f32.mrb[56].mxu0  ;;  %v18490_v27 = vld [vmem:[#allocation2 + $0x171] sm:$0xff] }
 0x2f7   : > { %4365 = vst.msk [vmem:[#allocation3 + $0xe1] sm:$0xff] %vm2442_vm2, %v14350_v0  ;;  %v4214_v32 = vpop.f32.mrb[57].mxu0  ;;  %v4426_v4 = vld [vmem:[#allocation3 + $0xa8] sm:$0xff]  ;;  %v4427_v5 = vld [vmem:[#allocation3 + $0xb0] sm:$0xff] }
 0x2f8   : > { %4364 = vst.msk [vmem:[#allocation3 + $0xd9] sm:$0xff] %vm2442_vm2, %v4214_v32  ;;  %14401 = vmatprep.mubr.msk.f32.mxu0 %vm2442_vm2, %v4426_v4  ;;  %v18356_v0 = vld [vmem:[#allocation2 + $0x39] sm:$0xff]  ;;  %v4386_v4 = vld [vmem:[#allocation2 + $0x48] sm:$0xff] }
 0x2f9   : > { %14402 = vmatmul.mubr.msk.f32.gmra.mrb[86].mxu0 %vm2442_vm2, %v4427_v5  ;;  %v18363_v5 = vld [vmem:[#allocation2 + $0x49] sm:$0xff] }
 0x2fa   : > { %v14353_v63 = vpop.f32.mrb[58].mxu0 }
 0x2fb   : > { %4367 = vst.msk [vmem:[#allocation3 + $0xf9] sm:$0xff] %vm2442_vm2, %v14353_v63  ;;  %v4224_v34 = vpop.f32.mrb[59].mxu0  ;;  %v4428_v33 = vld [vmem:[#allocation3 + $0xc0] sm:$0xff]  ;;  %v4429_v9 = vld [vmem:[#allocation3 + $0xc8] sm:$0xff] }
 0x2fc   : > { %4366 = vst.msk [vmem:[#allocation3 + $0xf1] sm:$0xff] %vm2442_vm2, %v4224_v34  ;;  %14404 = vmatprep.mubr.msk.f32.mxu0 %vm2442_vm2, %v4428_v33  ;;  %v4387_v63 = vld [vmem:[#allocation2 + $0x50] sm:$0xff]  ;;  %v4388_v33 = vld [vmem:[#allocation2 + $0x60] sm:$0xff] }
 0x2fd   : > { %14405 = vmatmul.mubr.msk.f32.gmra.mrb[88].mxu0 %vm2442_vm2, %v4429_v9  ;;  %v18369_v34 = vld [vmem:[#allocation2 + $0x51] sm:$0xff]  ;;  %v18375_v9 = vld [vmem:[#allocation2 + $0x61] sm:$0xff] }
 0x2fe   : > { %v14356_v35 = vpop.f32.mrb[60].mxu0 }
 0x2ff   : > { %4369 = vst.msk [vmem:[#allocation3 + $0x111] sm:$0xff] %vm2442_vm2, %v14356_v35  ;;  %v4234_v36 = vpop.f32.mrb[61].mxu0  ;;  %v4430_v39 = vld [vmem:[#allocation3 + $0xd8] sm:$0xff]  ;;  %v4431_v37 = vld [vmem:[#allocation3 + $0xe0] sm:$0xff] }
 0x300   : > { %4368 = vst.msk [vmem:[#allocation3 + $0x109] sm:$0xff] %vm2442_vm2, %v4234_v36  ;;  %14407 = vmatprep.mubr.msk.f32.mxu0 %vm2442_vm2, %v4430_v39  ;;  %v4389_v35 = vld [vmem:[#allocation2 + $0x68] sm:$0xff]  ;;  %v4390_v39 = vld [vmem:[#allocation2 + $0x78] sm:$0xff] }
 0x301   : > { %14408 = vmatmul.mubr.msk.f32.gmra.mrb[90].mxu0 %vm2442_vm2, %v4431_v37  ;;  %v18380_v36 = vld [vmem:[#allocation2 + $0x69] sm:$0xff]  ;;  %v18385_v37 = vld [vmem:[#allocation2 + $0x79] sm:$0xff] }
 0x302   : > { %v14359_v40 = vpop.f32.mrb[62].mxu0 }
 0x303   : > { %4371 = vst.msk [vmem:[#allocation3 + $0x129] sm:$0xff] %vm2442_vm2, %v14359_v40  ;;  %v4244_v43 = vpop.f32.mrb[63].mxu0  ;;  %v4432_v44 = vld [vmem:[#allocation3 + $0xf0] sm:$0xff]  ;;  %v4433_v48 = vld [vmem:[#allocation3 + $0xf8] sm:$0xff] }
 0x304   : > { %4370 = vst.msk [vmem:[#allocation3 + $0x121] sm:$0xff] %vm2442_vm2, %v4244_v43  ;;  %14410 = vmatprep.mubr.msk.f32.mxu0 %vm2442_vm2, %v4432_v44  ;;  %v4391_v40 = vld [vmem:[#allocation2 + $0x80] sm:$0xff]  ;;  %v4392_v44 = vld [vmem:[#allocation2 + $0x90] sm:$0xff] }
 0x305   : > { %14411 = vmatmul.mubr.msk.f32.gmra.mrb[92].mxu0 %vm2442_vm2, %v4433_v48  ;;  %v18390_v43 = vld [vmem:[#allocation2 + $0x81] sm:$0xff]  ;;  %v18395_v48 = vld [vmem:[#allocation2 + $0x91] sm:$0xff] }
 0x306   : > { %v14362_v53 = vpop.f32.mrb[64].mxu0 }
 0x307   : > { %4373 = vst.msk [vmem:[#allocation3 + $0x141] sm:$0xff] %vm2442_vm2, %v14362_v53  ;;  %v4254_v15 = vpop.f32.mrb[65].mxu0  ;;  %v4434_v20 = vld [vmem:[#allocation3 + $0x108] sm:$0xff]  ;;  %v4435_v41 = vld [vmem:[#allocation3 + $0x110] sm:$0xff] }
 0x308   : > { %4372 = vst.msk [vmem:[#allocation3 + $0x139] sm:$0xff] %vm2442_vm2, %v4254_v15  ;;  %14413 = vmatprep.mubr.msk.f32.mxu0 %vm2442_vm2, %v4434_v20  ;;  %v4393_v53 = vld [vmem:[#allocation2 + $0x98] sm:$0xff]  ;;  %v4394_v20 = vld [vmem:[#allocation2 + $0xa8] sm:$0xff] }
 0x309   : > { %14414 = vmatmul.mubr.msk.f32.gmra.mrb[94].mxu0 %vm2442_vm2, %v4435_v41  ;;  %v18400_v15 = vld [vmem:[#allocation2 + $0x99] sm:$0xff]  ;;  %v18405_v41 = vld [vmem:[#allocation2 + $0xa9] sm:$0xff] }
 0x30a   : > { %v14365_v24 = vpop.f32.mrb[66].mxu0 }
 0x30b   : > { %4375 = vst.msk [vmem:[#allocation3 + $0x159] sm:$0xff] %vm2442_vm2, %v14365_v24  ;;  %v4264_v45 = vpop.f32.mrb[67].mxu0  ;;  %v4436_v25 = vld [vmem:[#allocation3 + $0x120] sm:$0xff]  ;;  %v4437_v46 = vld [vmem:[#allocation3 + $0x128] sm:$0xff] }
 0x30c   : > { %4374 = vst.msk [vmem:[#allocation3 + $0x151] sm:$0xff] %vm2442_vm2, %v4264_v45  ;;  %14416 = vmatprep.mubr.msk.f32.mxu0 %vm2442_vm2, %v4436_v25  ;;  %v4395_v24 = vld [vmem:[#allocation2 + $0xb0] sm:$0xff]  ;;  %v4396_v25 = vld [vmem:[#allocation2 + $0xc0] sm:$0xff] }
 0x30d   : > { %14417 = vmatmul.mubr.msk.f32.gmra.mrb[96].mxu0 %vm2442_vm2, %v4437_v46  ;;  %v18410_v45 = vld [vmem:[#allocation2 + $0xb1] sm:$0xff]  ;;  %v18415_v46 = vld [vmem:[#allocation2 + $0xc1] sm:$0xff] }
 0x30e   : > { %v14368_v29 = vpop.f32.mrb[68].mxu0 }
 0x30f   : > { %4377 = vst.msk [vmem:[#allocation3 + $0x171] sm:$0xff] %vm2442_vm2, %v14368_v29  ;;  %v4274_v47 = vpop.f32.mrb[69].mxu0  ;;  %v4438_v50 = vld [vmem:[#allocation3 + $0x138] sm:$0xff]  ;;  %v4439_v51 = vld [vmem:[#allocation3 + $0x140] sm:$0xff] }
 0x310   : > { %4376 = vst.msk [vmem:[#allocation3 + $0x169] sm:$0xff] %vm2442_vm2, %v4274_v47  ;;  %14419 = vmatprep.mubr.msk.f32.mxu0 %vm2442_vm2, %v4438_v50  ;;  %v4397_v29 = vld [vmem:[#allocation2 + $0xc8] sm:$0xff]  ;;  %v4398_v50 = vld [vmem:[#allocation2 + $0xd8] sm:$0xff] }
 0x311   : > { %14420 = vmatmul.mubr.msk.f32.gmra.mrb[98].mxu0 %vm2442_vm2, %v4439_v51  ;;  %v18420_v47 = vld [vmem:[#allocation2 + $0xc9] sm:$0xff]  ;;  %v18425_v51 = vld [vmem:[#allocation2 + $0xd9] sm:$0xff] }
 0x312   : > { %v14371_v52 = vpop.f32.mrb[70].mxu0 }
 0x313   : > { %4379 = vst.msk [vmem:[#allocation3 + $0x189] sm:$0xff] %vm2442_vm2, %v14371_v52  ;;  %v4284_v54 = vpop.f32.mrb[71].mxu0  ;;  %v4440_v56 = vld [vmem:[#allocation3 + $0x150] sm:$0xff]  ;;  %v4441_v38 = vld [vmem:[#allocation3 + $0x158] sm:$0xff] }
 0x314   : > { %4378 = vst.msk [vmem:[#allocation3 + $0x181] sm:$0xff] %vm2442_vm2, %v4284_v54  ;;  %14422 = vmatprep.mubr.msk.f32.mxu0 %vm2442_vm2, %v4440_v56  ;;  %v4399_v52 = vld [vmem:[#allocation2 + $0xe0] sm:$0xff]  ;;  %v4400_v56 = vld [vmem:[#allocation2 + $0xf0] sm:$0xff] }
 0x315   : > { %14423 = vmatmul.mubr.msk.f32.gmra.mrb[100].mxu0 %vm2442_vm2, %v4441_v38  ;;  %v18430_v54 = vld [vmem:[#allocation2 + $0xe1] sm:$0xff]  ;;  %v18435_v38 = vld [vmem:[#allocation2 + $0xf1] sm:$0xff] }
 0x317   : > { %v4442_v61 = vld [vmem:[#allocation3 + $0x168] sm:$0xff]  ;;  %v4443_v62 = vld [vmem:[#allocation3 + $0x170] sm:$0xff] }
 0x318   : > { %14425 = vmatprep.mubr.msk.f32.mxu0 %vm2442_vm2, %v4442_v61  ;;  %14814 = vmatprep.mubr.msk.f32.mxu1 %vm2442_vm2, %v4442_v61  ;;  %v4402_v61 = vld [vmem:[#allocation2 + $0x108] sm:$0xff] }
 0x319   : > { %14426 = vmatmul.mubr.msk.f32.gmra.mrb[102].mxu0 %vm2442_vm2, %v4443_v62  ;;  %14815 = vmatmul.mubr.msk.f32.vlgmr.msra.gmra.mrb[32].mxu1 %vm2442_vm2, %v4443_v62  ;;  %v18445_v62 = vld [vmem:[#allocation2 + $0x109] sm:$0xff] }
 0x31a   : > { %15687 = vmatpush3.bf16.msra.mxu1 %v18160_v55  ;;  %14436 = vmatprep.mubr.msk.f32.mxu0 %vm2442_vm2, %v4380_v42  ;;  %v4382_v55 = vld [vmem:[#allocation2 + $0x18] sm:$0xff]  ;;  %v4403_v42 = vld [vmem:[#allocation2 + $0x110] sm:$0xff] }
 0x31b   : > { %v6716_v7 = vld [vmem:[#allocation3 + $0x180] sm:$0xff]  ;;  %v6717_v8 = vld [vmem:[#allocation3 + $0x188] sm:$0xff]  ;;  %15689 = vmatprep.subr.bf16.mxu1 %v15688_v1 }
 0x31c   : > { %14817 = vmatprep.mubr.msk.f32.mxu1 %vm2442_vm2, %v6716_v7  ;;  %v18460_v7 = vld [vmem:[#allocation2 + $0x129] sm:$0xff] }
 0x31d   : > { %14437 = vmatmul.mubr.msk.f32.vlgmr.msra.gmra.mrb[72].mxu0 %vm2442_vm2, %v4381_v6  ;;  %14818 = vmatmul.mubr.msk.f32.gmra.mrb[34].mxu1 %vm2442_vm2, %v6717_v8  ;;  %v4405_v6 = vld [vmem:[#allocation2 + $0x128] sm:$0xff]  ;;  %v4406_v8 = vld [vmem:[#allocation2 + $0x138] sm:$0xff] }
 0x31e   : > { %14439 = vmatprep.mubr.msk.f32.mxu0 %vm2442_vm2, %v4382_v55  ;;  %15691 = vmatpush3.bf16.msra.mxu1 %v15688_v1  ;;  %v18450_v1 = vld [vmem:[#allocation2 + $0x111] sm:$0xff] }
 0x31f   : > { %14828 = vmatprep.mubr.msk.f32.mxu1 %vm2442_vm2, %v18327_v16  ;;  %15693 = vmatprep.subr.bf16.mxu1 %v15692_v10  ;;  %v4408_v55 = vld [vmem:[#allocation2 + $0x150] sm:$0xff] }
 0x320   : > { %15639 = vmatpush3.bf16.msra.mxu0 %v18228_v57  ;;  %v12408_v57 = vld [vmem:[%s20065_s9 + $0xa8] sm:$0xff] }
 0x321   : > { %14440 = vmatmul.mubr.msk.f32.gmra.mrb[74].mxu0 %vm2442_vm2, %v4383_v17  ;;  %14829 = vmatmul.mubr.msk.f32.vlgmr.msra.gmra.mrb[36].mxu1 %vm2442_vm2, %v18331_v18  ;;  %v18358_v32 = vpack.c.bf16 %v12408_v57, %v12407_v59  ;;  %v18480_v17 = vld [vmem:[#allocation2 + $0x159] sm:$0xff]  ;;  %v7464_v59 = vld [vmem:[#allocation2 + $0x181] sm:$0xff]  ;;  %v12157_v57 = vld [vmem:[%s20066_s10 + $0x30] sm:$0xff] }
 0x322   : > { %14442 = vmatprep.mubr.msk.f32.mxu0 %vm2442_vm2, %v4384_v22  ;;  %14831 = vmatprep.mubr.msk.f32.mxu1 %vm2442_vm2, %v18343_v28  ;;  %v18485_v22 = vld [vmem:[#allocation2 + $0x169] sm:$0xff] }
 0x323   : > { %15695 = vmatpush3.bf16.msra.mxu1 %v15692_v10  ;;  %15641 = vmatprep.subr.bf16.mxu0 %v15640_v21  ;;  %v18465_v10 = vld [vmem:[#allocation2 + $0x139] sm:$0xff] }
 0x324   : > { %15697 = vmatprep.subr.bf16.mxu1 %v15696_v23  ;;  %15643 = vmatpush3.bf16.msra.mxu0 %v15640_v21  ;;  %v4410_v21 = vld [vmem:[#allocation2 + $0x168] sm:$0xff] }
 0x325   : > { %14443 = vmatmul.mubr.msk.f32.gmra.mrb[76].mxu0 %vm2442_vm2, %v4385_v31  ;;  %14832 = vmatmul.mubr.msk.f32.gmra.mrb[38].mxu1 %vm2442_vm2, %v18356_v0  ;;  %v12158_v31 = vld [vmem:[%s20066_s10 + $0x38] sm:$0xff] }
 0x326   : > { %14445 = vmatprep.mubr.msk.f32.mxu0 %vm2442_vm2, %v4386_v4  ;;  %14834 = vmatprep.mubr.msk.f32.mxu1 %vm2442_vm2, %v18363_v5  ;;  %v5095_v4 = vld [vmem:[#allocation2 + $0x9] sm:$0xff] }
 0x327   : > { %15699 = vmatpush3.bf16.msra.mxu1 %v15696_v23  ;;  %15645 = vmatprep.subr.bf16.mxu0 %v18354_v30  ;;  %v5094_v23 = vld [vmem:[#allocation2 + $0x1] sm:$0xff] }
 0x328   : > { %15701 = vmatprep.subr.bf16.mxu1 %v18358_v32 }
 0x329   : > { %14446 = vmatmul.mubr.msk.f32.gmra.mrb[78].mxu0 %vm2442_vm2, %v4387_v63  ;;  %14835 = vmatmul.mubr.msk.f32.gmra.mrb[40].mxu1 %vm2442_vm2, %v18369_v34  ;;  %v7465_v63 = vld [vmem:[#allocation2 + $0x189] sm:$0xff] }
 0x32a   : > { %14448 = vmatprep.mubr.msk.f32.mxu0 %vm2442_vm2, %v4388_v33  ;;  %14837 = vmatprep.mubr.msk.f32.mxu1 %vm2442_vm2, %v18375_v9  ;;  %v18503_v33 = vld [vmem:[#allocation3 + $0x19] sm:$0xff] }
 0x32d   : > { %14449 = vmatmul.mubr.msk.f32.gmra.mrb[80].mxu0 %vm2442_vm2, %v4389_v35  ;;  %14838 = vmatmul.mubr.msk.f32.gmra.mrb[42].mxu1 %vm2442_vm2, %v18380_v36  ;;  %v12409_v35 = vld [vmem:[%s20065_s9 + $0xb0] sm:$0xff] }
 0x32e   : > { %14451 = vmatprep.mubr.msk.f32.mxu0 %vm2442_vm2, %v4390_v39  ;;  %14840 = vmatprep.mubr.msk.f32.mxu1 %vm2442_vm2, %v18385_v37  ;;  %v15648_v39 = vpack.c.bf16 %v12158_v31, %v12157_v57  ;;  %v18761_v57 = vld [vmem:[#allocation2 + $0x3a] sm:$0xff] }
 0x331   : > { %14452 = vmatmul.mubr.msk.f32.gmra.mrb[82].mxu0 %vm2442_vm2, %v4391_v40  ;;  %14841 = vmatmul.mubr.msk.f32.gmra.mrb[44].mxu1 %vm2442_vm2, %v18390_v43  ;;  %v12410_v40 = vld [vmem:[%s20065_s9 + $0xb8] sm:$0xff] }
 0x332   : > { %14454 = vmatprep.mubr.msk.f32.mxu0 %vm2442_vm2, %v4392_v44  ;;  %14843 = vmatprep.mubr.msk.f32.mxu1 %vm2442_vm2, %v18395_v48  ;;  %v12191_v44 = vld [vmem:[%s20065_s9 + $0x40] sm:$0xff] }
 0x335   : > { %14455 = vmatmul.mubr.msk.f32.gmra.mrb[84].mxu0 %vm2442_vm2, %v4393_v53  ;;  %14844 = vmatmul.mubr.msk.f32.gmra.mrb[46].mxu1 %vm2442_vm2, %v18400_v15  ;;  %v12192_v53 = vld [vmem:[%s20065_s9 + $0x48] sm:$0xff] }
 0x336   : > { %14457 = vmatprep.mubr.msk.f32.mxu0 %vm2442_vm2, %v4394_v20  ;;  %14846 = vmatprep.mubr.msk.f32.mxu1 %vm2442_vm2, %v18405_v41  ;;  %v18524_v20 = vld [vmem:[#allocation3 + $0x21] sm:$0xff] }
 0x339   : > { %14458 = vmatmul.mubr.msk.f32.gmra.mrb[86].mxu0 %vm2442_vm2, %v4395_v24  ;;  %14847 = vmatmul.mubr.msk.f32.gmra.mrb[48].mxu1 %vm2442_vm2, %v18410_v45  ;;  %v15704_v24 = vpack.c.bf16 %v12410_v40, %v12409_v35  ;;  %v18789_v35 = vld [vmem:[#allocation2 + $0x6a] sm:$0xff]  ;;  %v18801_v40 = vld [vmem:[#allocation2 + $0x82] sm:$0xff] }
 0x33a   : > { %14460 = vmatprep.mubr.msk.f32.mxu0 %vm2442_vm2, %v4396_v25  ;;  %14849 = vmatprep.mubr.msk.f32.mxu1 %vm2442_vm2, %v18415_v46  ;;  %v18526_v25 = vpack.c.bf16 %v12192_v53, %v12191_v44  ;;  %v18807_v44 = vld [vmem:[#allocation2 + $0x92] sm:$0xff]  ;;  %v18813_v53 = vld [vmem:[#allocation2 + $0x9a] sm:$0xff] }
 0x33d   : > { %14461 = vmatmul.mubr.msk.f32.gmra.mrb[88].mxu0 %vm2442_vm2, %v4397_v29  ;;  %14850 = vmatmul.mubr.msk.f32.gmra.mrb[50].mxu1 %vm2442_vm2, %v18420_v47  ;;  %v18532_v29 = vld [vmem:[#allocation3 + $0x31] sm:$0xff] }
 0x33e   : > { %14463 = vmatprep.mubr.msk.f32.mxu0 %vm2442_vm2, %v4398_v50  ;;  %14852 = vmatprep.mubr.msk.f32.mxu1 %vm2442_vm2, %v18425_v51 }
 0x341   : > { %14464 = vmatmul.mubr.msk.f32.gmra.mrb[90].mxu0 %vm2442_vm2, %v4399_v52  ;;  %14853 = vmatmul.mubr.msk.f32.gmra.mrb[52].mxu1 %vm2442_vm2, %v18430_v54  ;;  %v18651_v52 = vld [vmem:[#allocation3 + $0x109] sm:$0xff] }
 0x342   : > { %14466 = vmatprep.mubr.msk.f32.mxu0 %vm2442_vm2, %v4400_v56  ;;  %14855 = vmatprep.mubr.msk.f32.mxu1 %vm2442_vm2, %v18435_v38  ;;  %v18663_v56 = vld [vmem:[#allocation3 + $0x121] sm:$0xff] }
 0x345   : > { %14467 = vmatmul.mubr.msk.f32.gmra.mrb[92].mxu0 %vm2442_vm2, %v4401_v58  ;;  %14856 = vmatmul.mubr.msk.f32.gmra.mrb[54].mxu1 %vm2442_vm2, %v18440_v60  ;;  %v18675_v58 = vld [vmem:[#allocation3 + $0x139] sm:$0xff] }
 0x346   : > { %14469 = vmatprep.mubr.msk.f32.mxu0 %vm2442_vm2, %v4402_v61  ;;  %14858 = vmatprep.mubr.msk.f32.mxu1 %vm2442_vm2, %v18445_v62  ;;  %v18687_v61 = vld [vmem:[#allocation3 + $0x151] sm:$0xff] }
 0x349   : > { %14470 = vmatmul.mubr.msk.f32.gmra.mrb[94].mxu0 %vm2442_vm2, %v4403_v42  ;;  %14859 = vmatmul.mubr.msk.f32.gmra.mrb[56].mxu1 %vm2442_vm2, %v18450_v1  ;;  %v18699_v42 = vld [vmem:[#allocation3 + $0x169] sm:$0xff] }
 0x34a   : > { %14472 = vmatprep.mubr.msk.f32.mxu0 %vm2442_vm2, %v4404_v2  ;;  %14861 = vmatprep.mubr.msk.f32.mxu1 %vm2442_vm2, %v18455_v3  ;;  %v18705_v2 = vld [vmem:[#allocation3 + $0x171] sm:$0xff] }
 0x34d   : > { %14473 = vmatmul.mubr.msk.f32.gmra.mrb[96].mxu0 %vm2442_vm2, %v4405_v6  ;;  %14862 = vmatmul.mubr.msk.f32.gmra.mrb[58].mxu1 %vm2442_vm2, %v18460_v7  ;;  %v12193_v6 = vld [vmem:[%s20065_s9 + $0x50] sm:$0xff] }
 0x34e   : > { %14475 = vmatprep.mubr.msk.f32.mxu0 %vm2442_vm2, %v4406_v8  ;;  %14864 = vmatprep.mubr.msk.f32.mxu1 %vm2442_vm2, %v18465_v10  ;;  %v5127_v8 = vld [vmem:[#allocation3 + $0x9] sm:$0xff] }
 0x351   : > { %14476 = vmatmul.mubr.msk.f32.gmra.mrb[98].mxu0 %vm2442_vm2, %v4407_v11  ;;  %14865 = vmatmul.mubr.msk.f32.gmra.mrb[60].mxu1 %vm2442_vm2, %v18470_v12  ;;  %v18719_v11 = vld [vmem:[#allocation2 + $0x1a] sm:$0xff] }
 0x352   : > { %14478 = vmatprep.mubr.msk.f32.mxu0 %vm2442_vm2, %v4408_v55  ;;  %14867 = vmatprep.mubr.msk.f32.mxu1 %vm2442_vm2, %v18475_v13 }
 0x355   : > { %14479 = vmatmul.mubr.msk.f32.gmra.mrb[100].mxu0 %vm2442_vm2, %v4409_v14  ;;  %14868 = vmatmul.mubr.msk.f32.gmra.mrb[62].mxu1 %vm2442_vm2, %v18480_v17  ;;  %v12227_v14 = vld [vmem:[%s20066_s10 + $0x40] sm:$0xff] }
 0x356   : > { %14481 = vmatprep.mubr.msk.f32.mxu0 %vm2442_vm2, %v4410_v21  ;;  %14870 = vmatprep.mubr.msk.f32.mxu1 %vm2442_vm2, %v18485_v22  ;;  %v18740_v21 = vld [vmem:[#allocation2 + $0x22] sm:$0xff] }
 0x359   : > { %14482 = vmatmul.mubr.msk.f32.gmra.mrb[102].mxu0 %vm2442_vm2, %v4411_v26  ;;  %14871 = vmatmul.mubr.msk.f32.gmra.mrb[32].mxu1 %vm2442_vm2, %v18490_v27  ;;  %v18748_v26 = vld [vmem:[#allocation2 + $0x32] sm:$0xff] }
 0x35a   : > { %14873 = vmatprep.mubr.msk.f32.mxu1 %vm2442_vm2, %v7464_v59  ;;  %14492 = vmatprep.mubr.msk.f32.mxu0 %vm2442_vm2, %v5094_v23  ;;  %v12480_v59 = vld [vmem:[%s20065_s9 + $0xc8] sm:$0xff] }
 0x35d   : > { %14493 = vmatmul.mubr.msk.f32.vlgmr.msra.gmra.mrb[72].mxu0 %vm2442_vm2, %v5095_v4  ;;  %14874 = vmatmul.mubr.msk.f32.gmra.mrb[34].mxu1 %vm2442_vm2, %v7465_v63  ;;  %v18770_v4 = vld [vmem:[#allocation2 + $0x4a] sm:$0xff]  ;;  %v18776_v63 = vld [vmem:[#allocation2 + $0x52] sm:$0xff] }
 0x35e   : > { %14495 = vmatprep.mubr.msk.f32.mxu0 %vm2442_vm2, %v18327_v16  ;;  %14884 = vmatprep.mubr.msk.f32.mxu1 %vm2442_vm2, %v18503_v33  ;;  %v12443_v16 = vld [vmem:[%s20066_s10 + $0xa0] sm:$0xff] }
 0x35f   : > { %15647 = vmatpush3.bf16.msra.mxu0 %v18354_v30  ;;  %v12444_v30 = vld [vmem:[%s20066_s10 + $0xa8] sm:$0xff] }
 0x360   : > { %15649 = vmatprep.subr.bf16.mxu0 %v15648_v39  ;;  %v18547_v50 = vpack.c.bf16 %v12444_v30, %v12443_v16  ;;  %v18843_v16 = vld [vmem:[#allocation2 + $0xda] sm:$0xff]  ;;  %v18849_v30 = vld [vmem:[#allocation2 + $0xe2] sm:$0xff] }
 0x361   : > { %14496 = vmatmul.mubr.msk.f32.gmra.mrb[74].mxu0 %vm2442_vm2, %v18331_v18  ;;  %14885 = vmatmul.mubr.msk.f32.vlgmr.msra.gmra.mrb[36].mxu1 %vm2442_vm2, %v18524_v20  ;;  %v18545_v18 = vld [vmem:[#allocation3 + $0x39] sm:$0xff] }
 0x362   : > { %14498 = vmatprep.mubr.msk.f32.mxu0 %vm2442_vm2, %v18343_v28  ;;  %14887 = vmatprep.mubr.msk.f32.mxu1 %vm2442_vm2, %v18532_v29  ;;  %v18554_v28 = vld [vmem:[#allocation3 + $0x49] sm:$0xff] }
 0x363   : > { %15703 = vmatpush3.bf16.msra.mxu1 %v18358_v32  ;;  %15651 = vmatpush3.bf16.msra.mxu0 %v15648_v39  ;;  %v18560_v32 = vld [vmem:[#allocation3 + $0x51] sm:$0xff] }
 0x364   : > { %15705 = vmatprep.subr.bf16.mxu1 %v15704_v24  ;;  %15653 = vmatprep.subr.bf16.mxu0 %v18526_v25  ;;  %v18795_v39 = vld [vmem:[#allocation2 + $0x7a] sm:$0xff] }
 0x365   : > { %14499 = vmatmul.mubr.msk.f32.gmra.mrb[76].mxu0 %vm2442_vm2, %v18356_v0  ;;  %14888 = vmatmul.mubr.msk.f32.gmra.mrb[38].mxu1 %vm2442_vm2, %v18545_v18  ;;  %v18567_v0 = vld [vmem:[#allocation3 + $0x61] sm:$0xff] }
 0x366   : > { %14501 = vmatprep.mubr.msk.f32.mxu0 %vm2442_vm2, %v18363_v5  ;;  %14890 = vmatprep.mubr.msk.f32.mxu1 %vm2442_vm2, %v18554_v28  ;;  %v18573_v5 = vld [vmem:[#allocation3 + $0x69] sm:$0xff] }
 0x367   : > { %15707 = vmatpush3.bf16.msra.mxu1 %v15704_v24  ;;  %v18825_v24 = vld [vmem:[#allocation2 + $0xb2] sm:$0xff] }
 0x368   : > { %15709 = vmatprep.subr.bf16.mxu1 %v18547_v50 }
 0x369   : > { %14502 = vmatmul.mubr.msk.f32.gmra.mrb[78].mxu0 %vm2442_vm2, %v18369_v34  ;;  %14891 = vmatmul.mubr.msk.f32.gmra.mrb[40].mxu1 %vm2442_vm2, %v18560_v32  ;;  %v18579_v34 = vld [vmem:[#allocation3 + $0x79] sm:$0xff] }
 0x36a   : > { %14504 = vmatprep.mubr.msk.f32.mxu0 %vm2442_vm2, %v18375_v9  ;;  %14893 = vmatprep.mubr.msk.f32.mxu1 %vm2442_vm2, %v18567_v0  ;;  %v18585_v9 = vld [vmem:[#allocation3 + $0x81] sm:$0xff] }
 0x36d   : > { %14505 = vmatmul.mubr.msk.f32.gmra.mrb[80].mxu0 %vm2442_vm2, %v18380_v36  ;;  %14894 = vmatmul.mubr.msk.f32.gmra.mrb[42].mxu1 %vm2442_vm2, %v18573_v5  ;;  %v18591_v36 = vld [vmem:[#allocation3 + $0x91] sm:$0xff] }
 0x36e   : > { %14507 = vmatprep.mubr.msk.f32.mxu0 %vm2442_vm2, %v18385_v37  ;;  %14896 = vmatprep.mubr.msk.f32.mxu1 %vm2442_vm2, %v18579_v34  ;;  %v18597_v37 = vld [vmem:[#allocation3 + $0x99] sm:$0xff] }
 0x371   : > { %14508 = vmatmul.mubr.msk.f32.gmra.mrb[82].mxu0 %vm2442_vm2, %v18390_v43  ;;  %14897 = vmatmul.mubr.msk.f32.gmra.mrb[44].mxu1 %vm2442_vm2, %v18585_v9  ;;  %v18603_v43 = vld [vmem:[#allocation3 + $0xa9] sm:$0xff] }
 0x372   : > { %14510 = vmatprep.mubr.msk.f32.mxu0 %vm2442_vm2, %v18395_v48  ;;  %14899 = vmatprep.mubr.msk.f32.mxu1 %vm2442_vm2, %v18591_v36  ;;  %v18609_v48 = vld [vmem:[#allocation3 + $0xb1] sm:$0xff] }
 0x375   : > { %14511 = vmatmul.mubr.msk.f32.gmra.mrb[84].mxu0 %vm2442_vm2, %v18400_v15  ;;  %14900 = vmatmul.mubr.msk.f32.gmra.mrb[46].mxu1 %vm2442_vm2, %v18597_v37  ;;  %v18615_v15 = vld [vmem:[#allocation3 + $0xc1] sm:$0xff] }
 0x376   : > { %14513 = vmatprep.mubr.msk.f32.mxu0 %vm2442_vm2, %v18405_v41  ;;  %14902 = vmatprep.mubr.msk.f32.mxu1 %vm2442_vm2, %v18603_v43  ;;  %v18621_v41 = vld [vmem:[#allocation3 + $0xc9] sm:$0xff] }
 0x379   : > { %14514 = vmatmul.mubr.msk.f32.gmra.mrb[86].mxu0 %vm2442_vm2, %v18410_v45  ;;  %14903 = vmatmul.mubr.msk.f32.gmra.mrb[48].mxu1 %vm2442_vm2, %v18609_v48  ;;  %v18627_v45 = vld [vmem:[#allocation3 + $0xd9] sm:$0xff] }
 0x37a   : > { %14516 = vmatprep.mubr.msk.f32.mxu0 %vm2442_vm2, %v18415_v46  ;;  %14905 = vmatprep.mubr.msk.f32.mxu1 %vm2442_vm2, %v18615_v15  ;;  %v18633_v46 = vld [vmem:[#allocation3 + $0xe1] sm:$0xff] }
 0x37d   : > { %14517 = vmatmul.mubr.msk.f32.gmra.mrb[88].mxu0 %vm2442_vm2, %v18420_v47  ;;  %14906 = vmatmul.mubr.msk.f32.gmra.mrb[50].mxu1 %vm2442_vm2, %v18621_v41  ;;  %v18639_v47 = vld [vmem:[#allocation3 + $0xf1] sm:$0xff] }
 0x37e   : > { %14519 = vmatprep.mubr.msk.f32.mxu0 %vm2442_vm2, %v18425_v51  ;;  %14908 = vmatprep.mubr.msk.f32.mxu1 %vm2442_vm2, %v18627_v45  ;;  %v18645_v51 = vld [vmem:[#allocation3 + $0xf9] sm:$0xff] }
 0x381   : > { %14520 = vmatmul.mubr.msk.f32.gmra.mrb[90].mxu0 %vm2442_vm2, %v18430_v54  ;;  %14909 = vmatmul.mubr.msk.f32.gmra.mrb[52].mxu1 %vm2442_vm2, %v18633_v46  ;;  %v18657_v54 = vld [vmem:[#allocation3 + $0x111] sm:$0xff] }
 0x382   : > { %14522 = vmatprep.mubr.msk.f32.mxu0 %vm2442_vm2, %v18435_v38  ;;  %14911 = vmatprep.mubr.msk.f32.mxu1 %vm2442_vm2, %v18639_v47  ;;  %v18669_v38 = vld [vmem:[#allocation3 + $0x129] sm:$0xff] }
 0x385   : > { %14523 = vmatmul.mubr.msk.f32.gmra.mrb[92].mxu0 %vm2442_vm2, %v18440_v60  ;;  %14912 = vmatmul.mubr.msk.f32.gmra.mrb[54].mxu1 %vm2442_vm2, %v18645_v51  ;;  %v18681_v60 = vld [vmem:[#allocation3 + $0x141] sm:$0xff] }
 0x386   : > { %14525 = vmatprep.mubr.msk.f32.mxu0 %vm2442_vm2, %v18445_v62  ;;  %14914 = vmatprep.mubr.msk.f32.mxu1 %vm2442_vm2, %v18651_v52  ;;  %v18693_v62 = vld [vmem:[#allocation3 + $0x159] sm:$0xff] }
 0x389   : > { %14526 = vmatmul.mubr.msk.f32.gmra.mrb[94].mxu0 %vm2442_vm2, %v18450_v1  ;;  %14915 = vmatmul.mubr.msk.f32.gmra.mrb[56].mxu1 %vm2442_vm2, %v18657_v54  ;;  %v5126_v1 = vld [vmem:[#allocation3 + $0x1] sm:$0xff] }
 0x38a   : > { %14528 = vmatprep.mubr.msk.f32.mxu0 %vm2442_vm2, %v18455_v3  ;;  %14917 = vmatprep.mubr.msk.f32.mxu1 %vm2442_vm2, %v18663_v56  ;;  %v7496_v3 = vld [vmem:[#allocation3 + $0x181] sm:$0xff] }
 0x38d   : > { %14529 = vmatmul.mubr.msk.f32.gmra.mrb[96].mxu0 %vm2442_vm2, %v18460_v7  ;;  %14918 = vmatmul.mubr.msk.f32.gmra.mrb[58].mxu1 %vm2442_vm2, %v18669_v38  ;;  %v12194_v7 = vld [vmem:[%s20065_s9 + $0x58] sm:$0xff] }
 0x38e   : > { %14531 = vmatprep.mubr.msk.f32.mxu0 %vm2442_vm2, %v18465_v10  ;;  %14920 = vmatprep.mubr.msk.f32.mxu1 %vm2442_vm2, %v18675_v58  ;;  %v7497_v10 = vld [vmem:[#allocation3 + $0x189] sm:$0xff]  ;;  %v15656_v55 = vpack.c.bf16 %v12194_v7, %v12193_v6  ;;  %v18977_v6 = vld [vmem:[#allocation3 + $0x3a] sm:$0xff] }
 0x391   : > { %14532 = vmatmul.mubr.msk.f32.gmra.mrb[98].mxu0 %vm2442_vm2, %v18470_v12  ;;  %14921 = vmatmul.mubr.msk.f32.gmra.mrb[60].mxu1 %vm2442_vm2, %v18681_v60  ;;  %v12445_v12 = vld [vmem:[%s20066_s10 + $0xb0] sm:$0xff] }
 0x392   : > { %14534 = vmatprep.mubr.msk.f32.mxu0 %vm2442_vm2, %v18475_v13  ;;  %14923 = vmatprep.mubr.msk.f32.mxu1 %vm2442_vm2, %v18687_v61  ;;  %v12446_v13 = vld [vmem:[%s20066_s10 + $0xb8] sm:$0xff] }
 0x395   : > { %14535 = vmatmul.mubr.msk.f32.gmra.mrb[100].mxu0 %vm2442_vm2, %v18480_v17  ;;  %14924 = vmatmul.mubr.msk.f32.gmra.mrb[62].mxu1 %vm2442_vm2, %v18693_v62  ;;  %v12228_v17 = vld [vmem:[%s20066_s10 + $0x48] sm:$0xff] }
 0x396   : > { %14537 = vmatprep.mubr.msk.f32.mxu0 %vm2442_vm2, %v18485_v22  ;;  %14926 = vmatprep.mubr.msk.f32.mxu1 %vm2442_vm2, %v18699_v42  ;;  %v15712_v22 = vpack.c.bf16 %v12446_v13, %v12445_v12  ;;  %v18742_v23 = vpack.c.bf16 %v12228_v17, %v12227_v14  ;;  %v19005_v12 = vld [vmem:[#allocation3 + $0x6a] sm:$0xff]  ;;  %v19017_v13 = vld [vmem:[#allocation3 + $0x82] sm:$0xff]  ;;  %v19023_v14 = vld [vmem:[#allocation3 + $0x92] sm:$0xff] }
 0x397   : > { %v19029_v17 = vld [vmem:[#allocation3 + $0x9a] sm:$0xff] }
 0x399   : > { %14538 = vmatmul.mubr.msk.f32.gmra.mrb[102].mxu0 %vm2442_vm2, %v18490_v27  ;;  %14927 = vmatmul.mubr.msk.f32.gmra.mrb[32].mxu1 %vm2442_vm2, %v18705_v2  ;;  %v12479_v27 = vld [vmem:[%s20065_s9 + $0xc0] sm:$0xff] }
 0x39a   : > { %14929 = vmatprep.mubr.msk.f32.mxu1 %vm2442_vm2, %v7496_v3  ;;  %14548 = vmatprep.mubr.msk.f32.mxu0 %vm2442_vm2, %v5126_v1  ;;  %v18763_v31 = vpack.c.bf16 %v12480_v59, %v12479_v27  ;;  %v18964_v1 = vld [vmem:[#allocation3 + $0x32] sm:$0xff]  ;;  %v19059_v27 = vld [vmem:[#allocation3 + $0xda] sm:$0xff]  ;;  %v19065_v59 = vld [vmem:[#allocation3 + $0xe2] sm:$0xff] }
 0x39b   : > { %v12516_v3 = vld [vmem:[%s20066_s10 + $0xc8] sm:$0xff] }
 0x39d   : > { %14549 = vmatmul.mubr.msk.f32.vlgmr.msra.gmra.mrb[72].mxu0 %vm2442_vm2, %v5127_v8  ;;  %14930 = vmatmul.mubr.msk.f32.gmra.mrb[34].mxu1 %vm2442_vm2, %v7497_v10  ;;  %v18986_v8 = vld [vmem:[#allocation3 + $0x4a] sm:$0xff]  ;;  %v18992_v10 = vld [vmem:[#allocation3 + $0x52] sm:$0xff] }
 0x39e   : > { %14551 = vmatprep.mubr.msk.f32.mxu0 %vm2442_vm2, %v18503_v33  ;;  %14940 = vmatprep.mubr.msk.f32.mxu1 %vm2442_vm2, %v18719_v11  ;;  %v18783_v33 = vld [vmem:[#allocation2 + $0x62] sm:$0xff] }
 0x39f   : > { %15655 = vmatpush3.bf16.msra.mxu0 %v18526_v25  ;;  %v18831_v25 = vld [vmem:[#allocation2 + $0xc2] sm:$0xff] }
 0x3a0   : > { %15657 = vmatprep.subr.bf16.mxu0 %v15656_v55 }
 0x3a1   : > { %14552 = vmatmul.mubr.msk.f32.gmra.mrb[74].mxu0 %vm2442_vm2, %v18524_v20  ;;  %14941 = vmatmul.mubr.msk.f32.vlgmr.msra.gmra.mrb[36].mxu1 %vm2442_vm2, %v18740_v21  ;;  %v18819_v20 = vld [vmem:[#allocation2 + $0xaa] sm:$0xff] }
 0x3a2   : > { %14554 = vmatprep.mubr.msk.f32.mxu0 %vm2442_vm2, %v18532_v29  ;;  %14943 = vmatprep.mubr.msk.f32.mxu1 %vm2442_vm2, %v18748_v26  ;;  %v18837_v29 = vld [vmem:[#allocation2 + $0xca] sm:$0xff] }
 0x3a3   : > { %15711 = vmatpush3.bf16.msra.mxu1 %v18547_v50  ;;  %15659 = vmatpush3.bf16.msra.mxu0 %v15656_v55  ;;  %v18861_v50 = vld [vmem:[#allocation2 + $0xfa] sm:$0xff]  ;;  %v19011_v55 = vld [vmem:[#allocation3 + $0x7a] sm:$0xff] }
 0x3a4   : > { %15713 = vmatprep.subr.bf16.mxu1 %v15712_v22  ;;  %15661 = vmatprep.subr.bf16.mxu0 %v18742_v23 }
 0x3a5   : > { %14555 = vmatmul.mubr.msk.f32.gmra.mrb[76].mxu0 %vm2442_vm2, %v18545_v18  ;;  %14944 = vmatmul.mubr.msk.f32.gmra.mrb[38].mxu1 %vm2442_vm2, %v18761_v57  ;;  %v18855_v18 = vld [vmem:[#allocation2 + $0xf2] sm:$0xff] }
 0x3a6   : > { %14557 = vmatprep.mubr.msk.f32.mxu0 %vm2442_vm2, %v18554_v28  ;;  %14946 = vmatprep.mubr.msk.f32.mxu1 %vm2442_vm2, %v18770_v4  ;;  %v18867_v28 = vld [vmem:[#allocation2 + $0x10a] sm:$0xff] }
 0x3a7   : > { %15715 = vmatpush3.bf16.msra.mxu1 %v15712_v22  ;;  %v19041_v22 = vld [vmem:[#allocation3 + $0xb2] sm:$0xff] }
 0x3a8   : > { %15717 = vmatprep.subr.bf16.mxu1 %v18763_v31 }
 0x3a9   : > { %14558 = vmatmul.mubr.msk.f32.gmra.mrb[78].mxu0 %vm2442_vm2, %v18560_v32  ;;  %14947 = vmatmul.mubr.msk.f32.gmra.mrb[40].mxu1 %vm2442_vm2, %v18776_v63  ;;  %v18873_v32 = vld [vmem:[#allocation2 + $0x112] sm:$0xff] }
 0x3aa   : > { %14560 = vmatprep.mubr.msk.f32.mxu0 %vm2442_vm2, %v18567_v0  ;;  %14949 = vmatprep.mubr.msk.f32.mxu1 %vm2442_vm2, %v18783_v33  ;;  %v18879_v0 = vld [vmem:[#allocation2 + $0x122] sm:$0xff] }
 0x3ad   : > { %14561 = vmatmul.mubr.msk.f32.gmra.mrb[80].mxu0 %vm2442_vm2, %v18573_v5  ;;  %14950 = vmatmul.mubr.msk.f32.gmra.mrb[42].mxu1 %vm2442_vm2, %v18789_v35  ;;  %v18885_v5 = vld [vmem:[#allocation2 + $0x12a] sm:$0xff] }
 0x3ae   : > { %14563 = vmatprep.mubr.msk.f32.mxu0 %vm2442_vm2, %v18579_v34  ;;  %14952 = vmatprep.mubr.msk.f32.mxu1 %vm2442_vm2, %v18795_v39  ;;  %v18891_v34 = vld [vmem:[#allocation2 + $0x13a] sm:$0xff] }
 0x3b1   : > { %14564 = vmatmul.mubr.msk.f32.gmra.mrb[82].mxu0 %vm2442_vm2, %v18585_v9  ;;  %14953 = vmatmul.mubr.msk.f32.gmra.mrb[44].mxu1 %vm2442_vm2, %v18801_v40  ;;  %v18897_v9 = vld [vmem:[#allocation2 + $0x142] sm:$0xff] }
 0x3b2   : > { %14566 = vmatprep.mubr.msk.f32.mxu0 %vm2442_vm2, %v18591_v36  ;;  %14955 = vmatprep.mubr.msk.f32.mxu1 %vm2442_vm2, %v18807_v44  ;;  %v18903_v36 = vld [vmem:[#allocation2 + $0x152] sm:$0xff] }
 0x3b5   : > { %14567 = vmatmul.mubr.msk.f32.gmra.mrb[84].mxu0 %vm2442_vm2, %v18597_v37  ;;  %14956 = vmatmul.mubr.msk.f32.gmra.mrb[46].mxu1 %vm2442_vm2, %v18813_v53  ;;  %v18909_v37 = vld [vmem:[#allocation2 + $0x15a] sm:$0xff] }
 0x3b6   : > { %14569 = vmatprep.mubr.msk.f32.mxu0 %vm2442_vm2, %v18603_v43  ;;  %14958 = vmatprep.mubr.msk.f32.mxu1 %vm2442_vm2, %v18819_v20  ;;  %v18915_v43 = vld [vmem:[#allocation2 + $0x16a] sm:$0xff] }
 0x3b9   : > { %14570 = vmatmul.mubr.msk.f32.gmra.mrb[86].mxu0 %vm2442_vm2, %v18609_v48  ;;  %14959 = vmatmul.mubr.msk.f32.gmra.mrb[48].mxu1 %vm2442_vm2, %v18825_v24  ;;  %v5874_v48 = vld [vmem:[#allocation2 + $0x2] sm:$0xff] }
 0x3ba   : > { %14572 = vmatprep.mubr.msk.f32.mxu0 %vm2442_vm2, %v18615_v15  ;;  %14961 = vmatprep.mubr.msk.f32.mxu1 %vm2442_vm2, %v18831_v25  ;;  %v18921_v15 = vld [vmem:[#allocation2 + $0x172] sm:$0xff] }
 0x3bd   : > { %14573 = vmatmul.mubr.msk.f32.gmra.mrb[88].mxu0 %vm2442_vm2, %v18621_v41  ;;  %14962 = vmatmul.mubr.msk.f32.gmra.mrb[50].mxu1 %vm2442_vm2, %v18837_v29  ;;  %v8244_v41 = vld [vmem:[#allocation2 + $0x182] sm:$0xff] }
 0x3be   : > { %14575 = vmatprep.mubr.msk.f32.mxu0 %vm2442_vm2, %v18627_v45  ;;  %14964 = vmatprep.mubr.msk.f32.mxu1 %vm2442_vm2, %v18843_v16  ;;  %v12229_v45 = vld [vmem:[%s20066_s10 + $0x50] sm:$0xff] }
 0x3c1   : > { %14576 = vmatmul.mubr.msk.f32.gmra.mrb[90].mxu0 %vm2442_vm2, %v18633_v46  ;;  %14965 = vmatmul.mubr.msk.f32.gmra.mrb[52].mxu1 %vm2442_vm2, %v18849_v30  ;;  %v12230_v46 = vld [vmem:[%s20066_s10 + $0x58] sm:$0xff] }
 0x3c2   : > { %14578 = vmatprep.mubr.msk.f32.mxu0 %vm2442_vm2, %v18639_v47  ;;  %14967 = vmatprep.mubr.msk.f32.mxu1 %vm2442_vm2, %v18855_v18  ;;  %v5875_v47 = vld [vmem:[#allocation2 + $0xa] sm:$0xff] }
 0x3c5   : > { %14579 = vmatmul.mubr.msk.f32.gmra.mrb[92].mxu0 %vm2442_vm2, %v18645_v51  ;;  %14968 = vmatmul.mubr.msk.f32.gmra.mrb[54].mxu1 %vm2442_vm2, %v18861_v50  ;;  %v8245_v51 = vld [vmem:[#allocation2 + $0x18a] sm:$0xff] }
 0x3c6   : > { %14581 = vmatprep.mubr.msk.f32.mxu0 %vm2442_vm2, %v18651_v52  ;;  %14970 = vmatprep.mubr.msk.f32.mxu1 %vm2442_vm2, %v18867_v28  ;;  %v18935_v52 = vld [vmem:[#allocation3 + $0x1a] sm:$0xff] }
 0x3c9   : > { %14582 = vmatmul.mubr.msk.f32.gmra.mrb[94].mxu0 %vm2442_vm2, %v18657_v54  ;;  %14971 = vmatmul.mubr.msk.f32.gmra.mrb[56].mxu1 %vm2442_vm2, %v18873_v32  ;;  %v12481_v54 = vld [vmem:[%s20065_s9 + $0xd0] sm:$0xff] }
 0x3ca   : > { %14584 = vmatprep.mubr.msk.f32.mxu0 %vm2442_vm2, %v18663_v56  ;;  %14973 = vmatprep.mubr.msk.f32.mxu1 %vm2442_vm2, %v18879_v0  ;;  %v15664_v56 = vpack.c.bf16 %v12230_v46, %v12229_v45  ;;  %v19200_v45 = vld [vmem:[#allocation2 + $0x68] sm:$0xff]  ;;  %v19207_v46 = vld [vmem:[#allocation2 + $0x78] sm:$0xff] }
 0x3cd   : > { %14585 = vmatmul.mubr.msk.f32.gmra.mrb[96].mxu0 %vm2442_vm2, %v18669_v38  ;;  %14974 = vmatmul.mubr.msk.f32.gmra.mrb[58].mxu1 %vm2442_vm2, %v18885_v5  ;;  %v12482_v38 = vld [vmem:[%s20065_s9 + $0xd8] sm:$0xff] }
 0x3ce   : > { %14587 = vmatprep.mubr.msk.f32.mxu0 %vm2442_vm2, %v18675_v58  ;;  %14976 = vmatprep.mubr.msk.f32.mxu1 %vm2442_vm2, %v18891_v34  ;;  %v12263_v58 = vld [vmem:[%s20065_s9 + $0x60] sm:$0xff] }
 0x3d1   : > { %14588 = vmatmul.mubr.msk.f32.gmra.mrb[98].mxu0 %vm2442_vm2, %v18681_v60  ;;  %14977 = vmatmul.mubr.msk.f32.gmra.mrb[60].mxu1 %vm2442_vm2, %v18897_v9  ;;  %v12264_v60 = vld [vmem:[%s20065_s9 + $0x68] sm:$0xff] }
 0x3d2   : > { %14590 = vmatprep.mubr.msk.f32.mxu0 %vm2442_vm2, %v18687_v61  ;;  %14979 = vmatprep.mubr.msk.f32.mxu1 %vm2442_vm2, %v18903_v36  ;;  %v18956_v61 = vld [vmem:[#allocation3 + $0x22] sm:$0xff] }
 0x3d5   : > { %14591 = vmatmul.mubr.msk.f32.gmra.mrb[100].mxu0 %vm2442_vm2, %v18693_v62  ;;  %14980 = vmatmul.mubr.msk.f32.gmra.mrb[62].mxu1 %vm2442_vm2, %v18909_v37  ;;  %v15720_v62 = vpack.c.bf16 %v12482_v38, %v12481_v54  ;;  %v19231_v54 = vld [vmem:[#allocation2 + $0xa8] sm:$0xff]  ;;  %v19243_v38 = vld [vmem:[#allocation2 + $0xc0] sm:$0xff] }
 0x3d6   : > { %14593 = vmatprep.mubr.msk.f32.mxu0 %vm2442_vm2, %v18699_v42  ;;  %14982 = vmatprep.mubr.msk.f32.mxu1 %vm2442_vm2, %v18915_v43  ;;  %v18958_v42 = vpack.c.bf16 %v12264_v60, %v12263_v58  ;;  %v19249_v58 = vld [vmem:[#allocation2 + $0xc8] sm:$0xff]  ;;  %v19255_v60 = vld [vmem:[#allocation2 + $0xd8] sm:$0xff] }
 0x3d9   : > { %14594 = vmatmul.mubr.msk.f32.gmra.mrb[102].mxu0 %vm2442_vm2, %v18705_v2  ;;  %14983 = vmatmul.mubr.msk.f32.gmra.mrb[32].mxu1 %vm2442_vm2, %v18921_v15  ;;  %v12515_v2 = vld [vmem:[%s20066_s10 + $0xc0] sm:$0xff] }
 0x3da   : > { %14985 = vmatprep.mubr.msk.f32.mxu1 %vm2442_vm2, %v8244_v41  ;;  %14604 = vmatprep.mubr.msk.f32.mxu0 %vm2442_vm2, %v5874_v48  ;;  %v18979_v7 = vpack.c.bf16 %v12516_v3, %v12515_v2  ;;  %v19185_v48 = vld [vmem:[#allocation2 + $0x50] sm:$0xff]  ;;  %v19194_v41 = vld [vmem:[#allocation2 + $0x60] sm:$0xff] }
 0x3db   : > { %v19285_v2 = vld [vmem:[#allocation2 + $0x110] sm:$0xff]  ;;  %v19291_v3 = vld [vmem:[#allocation2 + $0x120] sm:$0xff] }
 0x3dd   : > { %14605 = vmatmul.mubr.msk.f32.vlgmr.msra.gmra.mrb[72].mxu0 %vm2442_vm2, %v5875_v47  ;;  %14986 = vmatmul.mubr.msk.f32.gmra.mrb[34].mxu1 %vm2442_vm2, %v8245_v51  ;;  %v19213_v47 = vld [vmem:[#allocation2 + $0x80] sm:$0xff]  ;;  %v19219_v51 = vld [vmem:[#allocation2 + $0x90] sm:$0xff] }
 0x3de   : > { %14607 = vmatprep.mubr.msk.f32.mxu0 %vm2442_vm2, %v18719_v11  ;;  %14996 = vmatprep.mubr.msk.f32.mxu1 %vm2442_vm2, %v18935_v52  ;;  %v18999_v11 = vld [vmem:[#allocation3 + $0x62] sm:$0xff] }
 0x3df   : > { %15663 = vmatpush3.bf16.msra.mxu0 %v18742_v23  ;;  %v19047_v23 = vld [vmem:[#allocation3 + $0xc2] sm:$0xff] }
 0x3e0   : > { %15665 = vmatprep.subr.bf16.mxu0 %v15664_v56 }
 0x3e1   : > { %14608 = vmatmul.mubr.msk.f32.gmra.mrb[74].mxu0 %vm2442_vm2, %v18740_v21  ;;  %14997 = vmatmul.mubr.msk.f32.vlgmr.msra.gmra.mrb[36].mxu1 %vm2442_vm2, %v18956_v61  ;;  %v19035_v21 = vld [vmem:[#allocation3 + $0xaa] sm:$0xff] }
 0x3e2   : > { %14610 = vmatprep.mubr.msk.f32.mxu0 %vm2442_vm2, %v18748_v26  ;;  %14999 = vmatprep.mubr.msk.f32.mxu1 %vm2442_vm2, %v18964_v1  ;;  %v19053_v26 = vld [vmem:[#allocation3 + $0xca] sm:$0xff] }
 0x3e3   : > { %15719 = vmatpush3.bf16.msra.mxu1 %v18763_v31  ;;  %15667 = vmatpush3.bf16.msra.mxu0 %v15664_v56  ;;  %v19077_v31 = vld [vmem:[#allocation3 + $0xfa] sm:$0xff] }
 0x3e4   : > { %15721 = vmatprep.subr.bf16.mxu1 %v15720_v62  ;;  %15669 = vmatprep.subr.bf16.mxu0 %v18958_v42  ;;  %v19237_v56 = vld [vmem:[#allocation2 + $0xb0] sm:$0xff] }
 0x3e5   : > { %14611 = vmatmul.mubr.msk.f32.gmra.mrb[76].mxu0 %vm2442_vm2, %v18761_v57  ;;  %15000 = vmatmul.mubr.msk.f32.gmra.mrb[38].mxu1 %vm2442_vm2, %v18977_v6  ;;  %v19071_v57 = vld [vmem:[#allocation3 + $0xf2] sm:$0xff] }
 0x3e6   : > { %14613 = vmatprep.mubr.msk.f32.mxu0 %vm2442_vm2, %v18770_v4  ;;  %15002 = vmatprep.mubr.msk.f32.mxu1 %vm2442_vm2, %v18986_v8  ;;  %v19083_v4 = vld [vmem:[#allocation3 + $0x10a] sm:$0xff] }
 0x3e7   : > { %15723 = vmatpush3.bf16.msra.mxu1 %v15720_v62  ;;  %v19267_v62 = vld [vmem:[#allocation2 + $0xf0] sm:$0xff] }
 0x3e8   : > { %15725 = vmatprep.subr.bf16.mxu1 %v18979_v7 }
 0x3e9   : > { %14614 = vmatmul.mubr.msk.f32.gmra.mrb[78].mxu0 %vm2442_vm2, %v18776_v63  ;;  %15003 = vmatmul.mubr.msk.f32.gmra.mrb[40].mxu1 %vm2442_vm2, %v18992_v10  ;;  %v19089_v63 = vld [vmem:[#allocation3 + $0x112] sm:$0xff] }
 0x3ea   : > { %14616 = vmatprep.mubr.msk.f32.mxu0 %vm2442_vm2, %v18783_v33  ;;  %15005 = vmatprep.mubr.msk.f32.mxu1 %vm2442_vm2, %v18999_v11  ;;  %v19095_v33 = vld [vmem:[#allocation3 + $0x122] sm:$0xff] }
 0x3ed   : > { %14617 = vmatmul.mubr.msk.f32.gmra.mrb[80].mxu0 %vm2442_vm2, %v18789_v35  ;;  %15006 = vmatmul.mubr.msk.f32.gmra.mrb[42].mxu1 %vm2442_vm2, %v19005_v12  ;;  %v19101_v35 = vld [vmem:[#allocation3 + $0x12a] sm:$0xff] }
 0x3ee   : > { %14619 = vmatprep.mubr.msk.f32.mxu0 %vm2442_vm2, %v18795_v39  ;;  %15008 = vmatprep.mubr.msk.f32.mxu1 %vm2442_vm2, %v19011_v55  ;;  %v19107_v39 = vld [vmem:[#allocation3 + $0x13a] sm:$0xff] }
 0x3f1   : > { %14620 = vmatmul.mubr.msk.f32.gmra.mrb[82].mxu0 %vm2442_vm2, %v18801_v40  ;;  %15009 = vmatmul.mubr.msk.f32.gmra.mrb[44].mxu1 %vm2442_vm2, %v19017_v13  ;;  %v19113_v40 = vld [vmem:[#allocation3 + $0x142] sm:$0xff] }
 0x3f2   : > { %14622 = vmatprep.mubr.msk.f32.mxu0 %vm2442_vm2, %v18807_v44  ;;  %15011 = vmatprep.mubr.msk.f32.mxu1 %vm2442_vm2, %v19023_v14  ;;  %v19119_v44 = vld [vmem:[#allocation3 + $0x152] sm:$0xff] }
 0x3f5   : > { %14623 = vmatmul.mubr.msk.f32.gmra.mrb[84].mxu0 %vm2442_vm2, %v18813_v53  ;;  %15012 = vmatmul.mubr.msk.f32.gmra.mrb[46].mxu1 %vm2442_vm2, %v19029_v17  ;;  %v19125_v53 = vld [vmem:[#allocation3 + $0x15a] sm:$0xff] }
 0x3f6   : > { %14625 = vmatprep.mubr.msk.f32.mxu0 %vm2442_vm2, %v18819_v20  ;;  %15014 = vmatprep.mubr.msk.f32.mxu1 %vm2442_vm2, %v19035_v21  ;;  %v19131_v20 = vld [vmem:[#allocation3 + $0x16a] sm:$0xff] }
 0x3f9   : > { %14626 = vmatmul.mubr.msk.f32.gmra.mrb[86].mxu0 %vm2442_vm2, %v18825_v24  ;;  %15015 = vmatmul.mubr.msk.f32.gmra.mrb[48].mxu1 %vm2442_vm2, %v19041_v22  ;;  %v5906_v24 = vld [vmem:[#allocation3 + $0x2] sm:$0xff] }
 0x3fa   : > { %14628 = vmatprep.mubr.msk.f32.mxu0 %vm2442_vm2, %v18831_v25  ;;  %15017 = vmatprep.mubr.msk.f32.mxu1 %vm2442_vm2, %v19047_v23  ;;  %v19137_v25 = vld [vmem:[#allocation3 + $0x172] sm:$0xff] }
 0x3fd   : > { %14629 = vmatmul.mubr.msk.f32.gmra.mrb[88].mxu0 %vm2442_vm2, %v18837_v29  ;;  %15018 = vmatmul.mubr.msk.f32.gmra.mrb[50].mxu1 %vm2442_vm2, %v19053_v26  ;;  %v8276_v29 = vld [vmem:[#allocation3 + $0x182] sm:$0xff] }
 0x3fe   : > { %14631 = vmatprep.mubr.msk.f32.mxu0 %vm2442_vm2, %v18843_v16  ;;  %15020 = vmatprep.mubr.msk.f32.mxu1 %vm2442_vm2, %v19059_v27  ;;  %v12265_v16 = vld [vmem:[%s20065_s9 + $0x70] sm:$0xff] }
 0x401   : > { %14632 = vmatmul.mubr.msk.f32.gmra.mrb[90].mxu0 %vm2442_vm2, %v18849_v30  ;;  %15021 = vmatmul.mubr.msk.f32.gmra.mrb[52].mxu1 %vm2442_vm2, %v19065_v59  ;;  %v12266_v30 = vld [vmem:[%s20065_s9 + $0x78] sm:$0xff] }
 0x402   : > { %14634 = vmatprep.mubr.msk.f32.mxu0 %vm2442_vm2, %v18855_v18  ;;  %15023 = vmatprep.mubr.msk.f32.mxu1 %vm2442_vm2, %v19071_v57  ;;  %v5907_v18 = vld [vmem:[#allocation3 + $0xa] sm:$0xff] }
 0x405   : > { %14635 = vmatmul.mubr.msk.f32.gmra.mrb[92].mxu0 %vm2442_vm2, %v18861_v50  ;;  %15024 = vmatmul.mubr.msk.f32.gmra.mrb[54].mxu1 %vm2442_vm2, %v19077_v31  ;;  %v8277_v50 = vld [vmem:[#allocation3 + $0x18a] sm:$0xff] }
 0x406   : > { %14637 = vmatprep.mubr.msk.f32.mxu0 %vm2442_vm2, %v18867_v28  ;;  %15026 = vmatprep.mubr.msk.f32.mxu1 %vm2442_vm2, %v19083_v4  ;;  %v15672_v28 = vpack.c.bf16 %v12266_v30, %v12265_v16  ;;  %v19452_v16 = vld [vmem:[#allocation3 + $0xc8] sm:$0xff]  ;;  %v19458_v30 = vld [vmem:[#allocation3 + $0xd8] sm:$0xff] }
 0x409   : > { %14638 = vmatmul.mubr.msk.f32.gmra.mrb[94].mxu0 %vm2442_vm2, %v18873_v32  ;;  %15027 = vmatmul.mubr.msk.f32.gmra.mrb[56].mxu1 %vm2442_vm2, %v19089_v63  ;;  %v19153_v32 = vld [vmem:[#allocation2 + $0x30] sm:$0xff] }
 0x40a   : > { %14640 = vmatprep.mubr.msk.f32.mxu0 %vm2442_vm2, %v18879_v0  ;;  %15029 = vmatprep.mubr.msk.f32.mxu1 %vm2442_vm2, %v19095_v33  ;;  %v12517_v0 = vld [vmem:[%s20066_s10 + $0xd0] sm:$0xff] }
 0x40d   : > { %14641 = vmatmul.mubr.msk.f32.gmra.mrb[96].mxu0 %vm2442_vm2, %v18885_v5  ;;  %15030 = vmatmul.mubr.msk.f32.gmra.mrb[58].mxu1 %vm2442_vm2, %v19101_v35  ;;  %v12518_v5 = vld [vmem:[%s20066_s10 + $0xd8] sm:$0xff] }
 0x40e   : > { %14643 = vmatprep.mubr.msk.f32.mxu0 %vm2442_vm2, %v18891_v34  ;;  %15032 = vmatprep.mubr.msk.f32.mxu1 %vm2442_vm2, %v19107_v39  ;;  %v19166_v34 = vld [vmem:[#allocation2 + $0x38] sm:$0xff] }
 0x411   : > { %14644 = vmatmul.mubr.msk.f32.gmra.mrb[98].mxu0 %vm2442_vm2, %v18897_v9  ;;  %15033 = vmatmul.mubr.msk.f32.gmra.mrb[60].mxu1 %vm2442_vm2, %v19113_v40  ;;  %v15728_v9 = vpack.c.bf16 %v12518_v5, %v12517_v0  ;;  %v19488_v0 = vld [vmem:[#allocation3 + $0x110] sm:$0xff]  ;;  %v19494_v5 = vld [vmem:[#allocation3 + $0x120] sm:$0xff] }
 0x412   : > { %14646 = vmatprep.mubr.msk.f32.mxu0 %vm2442_vm2, %v18903_v36  ;;  %15035 = vmatprep.mubr.msk.f32.mxu1 %vm2442_vm2, %v19119_v44  ;;  %v19172_v36 = vld [vmem:[#allocation2 + $0x48] sm:$0xff] }
 0x415   : > { %14647 = vmatmul.mubr.msk.f32.gmra.mrb[100].mxu0 %vm2442_vm2, %v18909_v37  ;;  %15036 = vmatmul.mubr.msk.f32.gmra.mrb[62].mxu1 %vm2442_vm2, %v19125_v53  ;;  %v12551_v37 = vld [vmem:[%s20065_s9 + $0xe0] sm:$0xff] }
 0x416   : > { %14649 = vmatprep.mubr.msk.f32.mxu0 %vm2442_vm2, %v18915_v43  ;;  %15038 = vmatprep.mubr.msk.f32.mxu1 %vm2442_vm2, %v19131_v20  ;;  %v12552_v43 = vld [vmem:[%s20065_s9 + $0xe8] sm:$0xff] }
 0x419   : > { %14650 = vmatmul.mubr.msk.f32.gmra.mrb[102].mxu0 %vm2442_vm2, %v18921_v15  ;;  %15039 = vmatmul.mubr.msk.f32.gmra.mrb[32].mxu1 %vm2442_vm2, %v19137_v25  ;;  %v19187_v15 = vpack.c.bf16 %v12552_v43, %v12551_v37  ;;  %v19518_v37 = vld [vmem:[#allocation3 + $0x150] sm:$0xff]  ;;  %v19524_v43 = vld [vmem:[#allocation3 + $0x158] sm:$0xff] }
 0x41a   : > { %15041 = vmatprep.mubr.msk.f32.mxu1 %vm2442_vm2, %v8276_v29  ;;  %14660 = vmatprep.mubr.msk.f32.mxu0 %vm2442_vm2, %v5906_v24  ;;  %v19434_v24 = vld [vmem:[#allocation3 + $0xa8] sm:$0xff]  ;;  %v19446_v29 = vld [vmem:[#allocation3 + $0xc0] sm:$0xff] }
 0x41d   : > { %14661 = vmatmul.mubr.msk.f32.vlgmr.msra.gmra.mrb[72].mxu0 %vm2442_vm2, %v5907_v18  ;;  %15042 = vmatmul.mubr.msk.f32.gmra.mrb[34].mxu1 %vm2442_vm2, %v8277_v50  ;;  %v19464_v18 = vld [vmem:[#allocation3 + $0xe0] sm:$0xff]  ;;  %v19470_v50 = vld [vmem:[#allocation3 + $0xf0] sm:$0xff] }
 0x41e   : > { %14663 = vmatprep.mubr.msk.f32.mxu0 %vm2442_vm2, %v18935_v52  ;;  %15052 = vmatprep.mubr.msk.f32.mxu1 %vm2442_vm2, %v19153_v32  ;;  %v19225_v52 = vld [vmem:[#allocation2 + $0x98] sm:$0xff] }
 0x41f   : > { %15671 = vmatpush3.bf16.msra.mxu0 %v18958_v42  ;;  %v19273_v42 = vld [vmem:[#allocation2 + $0xf8] sm:$0xff] }
 0x420   : > { %15673 = vmatprep.subr.bf16.mxu0 %v15672_v28 }
 0x421   : > { %14664 = vmatmul.mubr.msk.f32.gmra.mrb[74].mxu0 %vm2442_vm2, %v18956_v61  ;;  %15053 = vmatmul.mubr.msk.f32.vlgmr.msra.gmra.mrb[36].mxu1 %vm2442_vm2, %v19166_v34  ;;  %v19261_v61 = vld [vmem:[#allocation2 + $0xe0] sm:$0xff] }
 0x422   : > { %14666 = vmatprep.mubr.msk.f32.mxu0 %vm2442_vm2, %v18964_v1  ;;  %15055 = vmatprep.mubr.msk.f32.mxu1 %vm2442_vm2, %v19172_v36  ;;  %v19279_v1 = vld [vmem:[#allocation2 + $0x108] sm:$0xff] }
 0x423   : > { %15727 = vmatpush3.bf16.msra.mxu1 %v18979_v7  ;;  %15675 = vmatpush3.bf16.msra.mxu0 %v15672_v28  ;;  %v19303_v7 = vld [vmem:[#allocation2 + $0x138] sm:$0xff]  ;;  %v19476_v28 = vld [vmem:[#allocation3 + $0xf8] sm:$0xff] }
 0x424   : > { %15729 = vmatprep.subr.bf16.mxu1 %v15728_v9  ;;  %15677 = vmatprep.subr.bf16.mxu0 %v18120_v49 }
 0x425   : > { %14667 = vmatmul.mubr.msk.f32.gmra.mrb[76].mxu0 %vm2442_vm2, %v18977_v6  ;;  %15056 = vmatmul.mubr.msk.f32.gmra.mrb[38].mxu1 %vm2442_vm2, %v19185_v48  ;;  %v19297_v6 = vld [vmem:[#allocation2 + $0x128] sm:$0xff] }
 0x426   : > { %14669 = vmatprep.mubr.msk.f32.mxu0 %vm2442_vm2, %v18986_v8  ;;  %15058 = vmatprep.mubr.msk.f32.mxu1 %vm2442_vm2, %v19194_v41  ;;  %v19309_v8 = vld [vmem:[#allocation2 + $0x140] sm:$0xff] }
 0x427   : > { %15731 = vmatpush3.bf16.msra.mxu1 %v15728_v9  ;;  %v19506_v9 = vld [vmem:[#allocation3 + $0x138] sm:$0xff] }
 0x428   : > { %15733 = vmatprep.subr.bf16.mxu1 %v19187_v15 }
 0x429   : > { %14670 = vmatmul.mubr.msk.f32.gmra.mrb[78].mxu0 %vm2442_vm2, %v18992_v10  ;;  %15059 = vmatmul.mubr.msk.f32.gmra.mrb[40].mxu1 %vm2442_vm2, %v19200_v45  ;;  %v19315_v10 = vld [vmem:[#allocation2 + $0x150] sm:$0xff] }
 0x42a   : > { %14672 = vmatprep.mubr.msk.f32.mxu0 %vm2442_vm2, %v18999_v11  ;;  %15061 = vmatprep.mubr.msk.f32.mxu1 %vm2442_vm2, %v19207_v46  ;;  %v19321_v11 = vld [vmem:[#allocation2 + $0x158] sm:$0xff] }
 0x42d   : > { %14673 = vmatmul.mubr.msk.f32.gmra.mrb[80].mxu0 %vm2442_vm2, %v19005_v12  ;;  %15062 = vmatmul.mubr.msk.f32.gmra.mrb[42].mxu1 %vm2442_vm2, %v19213_v47  ;;  %v19327_v12 = vld [vmem:[#allocation2 + $0x168] sm:$0xff] }
 0x42e   : > { %14675 = vmatprep.mubr.msk.f32.mxu0 %vm2442_vm2, %v19011_v55  ;;  %15064 = vmatprep.mubr.msk.f32.mxu1 %vm2442_vm2, %v19219_v51  ;;  %v19333_v55 = vld [vmem:[#allocation2 + $0x170] sm:$0xff] }
 0x431   : > { %14676 = vmatmul.mubr.msk.f32.gmra.mrb[82].mxu0 %vm2442_vm2, %v19017_v13  ;;  %15065 = vmatmul.mubr.msk.f32.gmra.mrb[44].mxu1 %vm2442_vm2, %v19225_v52  ;;  %v19339_v13 = vld [vmem:[#allocation2 + $0x180] sm:$0xff] }
 0x432   : > { %14678 = vmatprep.mubr.msk.f32.mxu0 %vm2442_vm2, %v19023_v14  ;;  %15067 = vmatprep.mubr.msk.f32.mxu1 %vm2442_vm2, %v19231_v54  ;;  %v9025_v14 = vld [vmem:[#allocation2 + $0x198] sm:$0xff] }
 0x435   : > { %14679 = vmatmul.mubr.msk.f32.gmra.mrb[84].mxu0 %vm2442_vm2, %v19029_v17  ;;  %15068 = vmatmul.mubr.msk.f32.gmra.mrb[46].mxu1 %vm2442_vm2, %v19237_v56  ;;  %v19345_v17 = vld [vmem:[#allocation2 + $0x188] sm:$0xff] }
 0x436   : > { %14681 = vmatprep.mubr.msk.f32.mxu0 %vm2442_vm2, %v19035_v21  ;;  %15070 = vmatprep.mubr.msk.f32.mxu1 %vm2442_vm2, %v19243_v38  ;;  %v6654_v21 = vld [vmem:[#allocation2 + $0x18] sm:$0xff] }
 0x439   : > { %14682 = vmatmul.mubr.msk.f32.gmra.mrb[86].mxu0 %vm2442_vm2, %v19041_v22  ;;  %15071 = vmatmul.mubr.msk.f32.gmra.mrb[48].mxu1 %vm2442_vm2, %v19249_v58  ;;  %v9026_v22 = vld [vmem:[#allocation2 + $0x1a0] sm:$0xff] }
 0x43a   : > { %14684 = vmatprep.mubr.msk.f32.mxu0 %vm2442_vm2, %v19047_v23  ;;  %15073 = vmatprep.mubr.msk.f32.mxu1 %vm2442_vm2, %v19255_v60  ;;  %v6655_v23 = vld [vmem:[#allocation2 + $0x20] sm:$0xff] }
 0x43d   : > { %14685 = vmatmul.mubr.msk.f32.gmra.mrb[88].mxu0 %vm2442_vm2, %v19053_v26  ;;  %15074 = vmatmul.mubr.msk.f32.gmra.mrb[50].mxu1 %vm2442_vm2, %v19261_v61  ;;  %v19355_v26 = vld [vmem:[#allocation3 + $0x30] sm:$0xff] }
 0x43e   : > { %14687 = vmatprep.mubr.msk.f32.mxu0 %vm2442_vm2, %v19059_v27  ;;  %15076 = vmatprep.mubr.msk.f32.mxu1 %vm2442_vm2, %v19267_v62  ;;  %v12553_v27 = vld [vmem:[%s20065_s9 + $0xf0] sm:$0xff] }
 0x441   : > { %14688 = vmatmul.mubr.msk.f32.gmra.mrb[90].mxu0 %vm2442_vm2, %v19065_v59  ;;  %15077 = vmatmul.mubr.msk.f32.gmra.mrb[52].mxu1 %vm2442_vm2, %v19273_v42  ;;  %v12554_v59 = vld [vmem:[%s20065_s9 + $0xf8] sm:$0xff] }
 0x442   : > { %14690 = vmatprep.mubr.msk.f32.mxu0 %vm2442_vm2, %v19071_v57  ;;  %15079 = vmatprep.mubr.msk.f32.mxu1 %vm2442_vm2, %v19279_v1  ;;  %v19368_v57 = vld [vmem:[#allocation3 + $0x38] sm:$0xff] }
 0x445   : > { %14691 = vmatmul.mubr.msk.f32.gmra.mrb[92].mxu0 %vm2442_vm2, %v19077_v31  ;;  %15080 = vmatmul.mubr.msk.f32.gmra.mrb[54].mxu1 %vm2442_vm2, %v19285_v2  ;;  %v15736_v31 = vpack.c.bf16 %v12554_v59, %v12553_v27  ;;  %v9795_v27 = vld [vmem:[#allocation2 + $0x111] sm:$0xff]  ;;  %v9796_v59 = vld [vmem:[#allocation2 + $0x121] sm:$0xff] }
 0x446   : > { %14693 = vmatprep.mubr.msk.f32.mxu0 %vm2442_vm2, %v19083_v4  ;;  %15082 = vmatprep.mubr.msk.f32.mxu1 %vm2442_vm2, %v19291_v3  ;;  %v19375_v4 = vld [vmem:[#allocation3 + $0x48] sm:$0xff] }
 0x449   : > { %14694 = vmatmul.mubr.msk.f32.gmra.mrb[94].mxu0 %vm2442_vm2, %v19089_v63  ;;  %15083 = vmatmul.mubr.msk.f32.gmra.mrb[56].mxu1 %vm2442_vm2, %v19297_v6  ;;  %v12587_v63 = vld [vmem:[%s20066_s10 + $0xe0] sm:$0xff] }
 0x44a   : > { %14696 = vmatprep.mubr.msk.f32.mxu0 %vm2442_vm2, %v19095_v33  ;;  %15085 = vmatprep.mubr.msk.f32.mxu1 %vm2442_vm2, %v19303_v7  ;;  %v19389_v33 = vld [vmem:[#allocation3 + $0x50] sm:$0xff] }
 0x44d   : > { %14697 = vmatmul.mubr.msk.f32.gmra.mrb[96].mxu0 %vm2442_vm2, %v19101_v35  ;;  %15086 = vmatmul.mubr.msk.f32.gmra.mrb[58].mxu1 %vm2442_vm2, %v19309_v8 }
 0x44e   : > { %14699 = vmatprep.mubr.msk.f32.mxu0 %vm2442_vm2, %v19107_v39  ;;  %15088 = vmatprep.mubr.msk.f32.mxu1 %vm2442_vm2, %v19315_v10  ;;  %v19397_v39 = vld [vmem:[#allocation3 + $0x60] sm:$0xff] }
 0x451   : > { %14700 = vmatmul.mubr.msk.f32.gmra.mrb[98].mxu0 %vm2442_vm2, %v19113_v40  ;;  %15089 = vmatmul.mubr.msk.f32.gmra.mrb[60].mxu1 %vm2442_vm2, %v19321_v11  ;;  %v19410_v40 = vld [vmem:[#allocation3 + $0x78] sm:$0xff] }
 0x452   : > { %14702 = vmatprep.mubr.msk.f32.mxu0 %vm2442_vm2, %v19119_v44  ;;  %15091 = vmatprep.mubr.msk.f32.mxu1 %vm2442_vm2, %v19327_v12  ;;  %v19416_v44 = vld [vmem:[#allocation3 + $0x80] sm:$0xff] }
 0x455   : > { %14703 = vmatmul.mubr.msk.f32.gmra.mrb[100].mxu0 %vm2442_vm2, %v19125_v53  ;;  %15092 = vmatmul.mubr.msk.f32.gmra.mrb[62].mxu1 %vm2442_vm2, %v19333_v55  ;;  %v19422_v53 = vld [vmem:[#allocation3 + $0x90] sm:$0xff] }
 0x456   : > { %14705 = vmatprep.mubr.msk.f32.mxu0 %vm2442_vm2, %v19131_v20  ;;  %15094 = vmatprep.mubr.msk.f32.mxu1 %vm2442_vm2, %v19339_v13  ;;  %v19428_v20 = vld [vmem:[#allocation3 + $0x98] sm:$0xff] }
 0x459   : > { %14706 = vmatmul.mubr.msk.f32.gmra.mrb[102].mxu0 %vm2442_vm2, %v19137_v25  ;;  %15095 = vmatmul.mubr.msk.f32.gmra.mrb[32].mxu1 %vm2442_vm2, %v19345_v17  ;;  %v19440_v25 = vld [vmem:[#allocation3 + $0xb0] sm:$0xff] }
 0x45a   : > { %14716 = vmatprep.mubr.msk.f32.mxu0 %vm2442_vm2, %v6654_v21  ;;  %15097 = vmatprep.mubr.msk.f32.mxu1 %vm2442_vm2, %v9025_v14  ;;  %v9789_v14 = vld [vmem:[#allocation2 + $0xc9] sm:$0xff]  ;;  %v9791_v21 = vld [vmem:[#allocation2 + $0xe1] sm:$0xff] }
 0x45d   : > { %14717 = vmatmul.mubr.msk.f32.vlgmr.msra.gmra.mrb[72].mxu0 %vm2442_vm2, %v6655_v23  ;;  %15098 = vmatmul.mubr.msk.f32.gmra.mrb[34].mxu1 %vm2442_vm2, %v9026_v22  ;;  %v9792_v22 = vld [vmem:[#allocation2 + $0xf1] sm:$0xff]  ;;  %v9793_v23 = vld [vmem:[#allocation2 + $0xf9] sm:$0xff] }
 0x45e   : > { %14719 = vmatprep.mubr.msk.f32.mxu0 %vm2442_vm2, %v19153_v32  ;;  %15108 = vmatprep.mubr.msk.f32.mxu1 %vm2442_vm2, %v19355_v26  ;;  %v19482_v32 = vld [vmem:[#allocation3 + $0x108] sm:$0xff] }
 0x45f   : > { %15679 = vmatpush3.bf16.msra.mxu0 %v18120_v49  ;;  %v12588_v49 = vld [vmem:[%s20066_s10 + $0xe8] sm:$0xff] }
 0x460   : > { %15681 = vmatprep.subr.bf16.mxu0 %v18130_v19  ;;  %v19391_v35 = vpack.c.bf16 %v12588_v49, %v12587_v63  ;;  %v9800_v63 = vld [vmem:[#allocation2 + $0x151] sm:$0xff]  ;;  %v9801_v49 = vld [vmem:[#allocation2 + $0x159] sm:$0xff] }
 0x461   : > { %14720 = vmatmul.mubr.msk.f32.gmra.mrb[74].mxu0 %vm2442_vm2, %v19166_v34  ;;  %15109 = vmatmul.mubr.msk.f32.vlgmr.msra.gmra.mrb[36].mxu1 %vm2442_vm2, %v19368_v57  ;;  %v19500_v34 = vld [vmem:[#allocation3 + $0x128] sm:$0xff] }
 0x462   : > { %14722 = vmatprep.mubr.msk.f32.mxu0 %vm2442_vm2, %v19172_v36  ;;  %15111 = vmatprep.mubr.msk.f32.mxu1 %vm2442_vm2, %v19375_v4  ;;  %v19512_v36 = vld [vmem:[#allocation3 + $0x140] sm:$0xff] }
 0x463   : > { %15735 = vmatpush3.bf16.msra.mxu1 %v19187_v15  ;;  %15683 = vmatpush3.bf16.msra.mxu0 %v18130_v19  ;;  %v19403_v19 = vld [vmem:[#allocation3 + $0x68] sm:$0xff]  ;;  %v9055_v15 = vld [vmem:[#allocation3 + $0x170] sm:$0xff] }
 0x464   : > { %15737 = vmatprep.subr.bf16.mxu1 %v15736_v31 }
 0x465   : > { %14723 = vmatmul.mubr.msk.f32.gmra.mrb[76].mxu0 %vm2442_vm2, %v19185_v48  ;;  %15112 = vmatmul.mubr.msk.f32.gmra.mrb[38].mxu1 %vm2442_vm2, %v19389_v33  ;;  %v9054_v48 = vld [vmem:[#allocation3 + $0x168] sm:$0xff] }
 0x466   : > { %14725 = vmatprep.mubr.msk.f32.mxu0 %vm2442_vm2, %v19194_v41  ;;  %15114 = vmatprep.mubr.msk.f32.mxu1 %vm2442_vm2, %v19397_v39  ;;  %v9056_v41 = vld [vmem:[#allocation3 + $0x180] sm:$0xff] }
 0x467   : > { %15739 = vmatpush3.bf16.msra.mxu1 %v15736_v31  ;;  %v9798_v31 = vld [vmem:[#allocation2 + $0x139] sm:$0xff] }
 0x468   : > { %15741 = vmatprep.subr.bf16.mxu1 %v19391_v35 }
 0x469   : > { %14726 = vmatmul.mubr.msk.f32.gmra.mrb[78].mxu0 %vm2442_vm2, %v19200_v45  ;;  %15115 = vmatmul.mubr.msk.f32.gmra.mrb[40].mxu1 %vm2442_vm2, %v19403_v19  ;;  %v9058_v45 = vld [vmem:[#allocation3 + $0x198] sm:$0xff] }
 0x46a   : > { %14728 = vmatprep.mubr.msk.f32.mxu0 %vm2442_vm2, %v19207_v46  ;;  %15117 = vmatprep.mubr.msk.f32.mxu1 %vm2442_vm2, %v19410_v40  ;;  %v9057_v46 = vld [vmem:[#allocation3 + $0x188] sm:$0xff] }
 0x46d   : > { %14729 = vmatmul.mubr.msk.f32.gmra.mrb[80].mxu0 %vm2442_vm2, %v19213_v47  ;;  %15118 = vmatmul.mubr.msk.f32.gmra.mrb[42].mxu1 %vm2442_vm2, %v19416_v44  ;;  %v6686_v47 = vld [vmem:[#allocation3 + $0x18] sm:$0xff] }
 0x46e   : > { %14731 = vmatprep.mubr.msk.f32.mxu0 %vm2442_vm2, %v19219_v51  ;;  %15120 = vmatprep.mubr.msk.f32.mxu1 %vm2442_vm2, %v19422_v53  ;;  %v9059_v51 = vld [vmem:[#allocation3 + $0x1a0] sm:$0xff] }
 0x471   : > { %14732 = vmatmul.mubr.msk.f32.gmra.mrb[82].mxu0 %vm2442_vm2, %v19225_v52  ;;  %15121 = vmatmul.mubr.msk.f32.gmra.mrb[44].mxu1 %vm2442_vm2, %v19428_v20  ;;  %v6687_v52 = vld [vmem:[#allocation3 + $0x20] sm:$0xff] }
 0x472   : > { %14734 = vmatprep.mubr.msk.f32.mxu0 %vm2442_vm2, %v19231_v54  ;;  %15123 = vmatprep.mubr.msk.f32.mxu1 %vm2442_vm2, %v19434_v24  ;;  %v9776_v54 = vld [vmem:[#allocation2 + $0x31] sm:$0xff] }
 0x475   : > { %14735 = vmatmul.mubr.msk.f32.gmra.mrb[84].mxu0 %vm2442_vm2, %v19237_v56  ;;  %15124 = vmatmul.mubr.msk.f32.gmra.mrb[46].mxu1 %vm2442_vm2, %v19440_v25  ;;  %v12589_v56 = vld [vmem:[%s20066_s10 + $0xf0] sm:$0xff] }
 0x476   : > { %14737 = vmatprep.mubr.msk.f32.mxu0 %vm2442_vm2, %v19243_v38  ;;  %15126 = vmatprep.mubr.msk.f32.mxu1 %vm2442_vm2, %v19446_v29  ;;  %v12590_v38 = vld [vmem:[%s20066_s10 + $0xf8] sm:$0xff] }
 0x479   : > { %14738 = vmatmul.mubr.msk.f32.gmra.mrb[86].mxu0 %vm2442_vm2, %v19249_v58  ;;  %15127 = vmatmul.mubr.msk.f32.gmra.mrb[48].mxu1 %vm2442_vm2, %v19452_v16  ;;  %v9777_v58 = vld [vmem:[#allocation2 + $0x39] sm:$0xff] }
 0x47a   : > { %14740 = vmatprep.mubr.msk.f32.mxu0 %vm2442_vm2, %v19255_v60  ;;  %15129 = vmatprep.mubr.msk.f32.mxu1 %vm2442_vm2, %v19458_v30  ;;  %v15744_v60 = vpack.c.bf16 %v12590_v38, %v12589_v56  ;;  %v9829_v56 = vld [vmem:[#allocation3 + $0x129] sm:$0xff]  ;;  %v9830_v38 = vld [vmem:[#allocation3 + $0x139] sm:$0xff] }
 0x47d   : > { %14741 = vmatmul.mubr.msk.f32.gmra.mrb[88].mxu0 %vm2442_vm2, %v19261_v61  ;;  %15130 = vmatmul.mubr.msk.f32.gmra.mrb[50].mxu1 %vm2442_vm2, %v19464_v18  ;;  %v9778_v61 = vld [vmem:[#allocation2 + $0x49] sm:$0xff] }
 0x47e   : > { %14743 = vmatprep.mubr.msk.f32.mxu0 %vm2442_vm2, %v19267_v62  ;;  %15132 = vmatprep.mubr.msk.f32.mxu1 %vm2442_vm2, %v19470_v50  ;;  %v12623_v62 = vld [vmem:[%s20065_s9 + $0x100] sm:$0xff] }
 0x481   : > { %14744 = vmatmul.mubr.msk.f32.gmra.mrb[90].mxu0 %vm2442_vm2, %v19273_v42  ;;  %15133 = vmatmul.mubr.msk.f32.gmra.mrb[52].mxu1 %vm2442_vm2, %v19476_v28  ;;  %v12624_v42 = vld [vmem:[%s20065_s9 + $0x108] sm:$0xff] }
 0x482   : > { %14746 = vmatprep.mubr.msk.f32.mxu0 %vm2442_vm2, %v19279_v1  ;;  %15135 = vmatprep.mubr.msk.f32.mxu1 %vm2442_vm2, %v19482_v32  ;;  %v9779_v1 = vld [vmem:[#allocation2 + $0x51] sm:$0xff] }
 0x485   : > { %14747 = vmatmul.mubr.msk.f32.gmra.mrb[92].mxu0 %vm2442_vm2, %v19285_v2  ;;  %15136 = vmatmul.mubr.msk.f32.gmra.mrb[54].mxu1 %vm2442_vm2, %v19488_v0  ;;  %v19568_v2 = vpack.c.bf16 %v12624_v42, %v12623_v62  ;;  %v9834_v62 = vld [vmem:[#allocation3 + $0x169] sm:$0xff]  ;;  %v9835_v42 = vld [vmem:[#allocation3 + $0x171] sm:$0xff] }
 0x486   : > { %14749 = vmatprep.mubr.msk.f32.mxu0 %vm2442_vm2, %v19291_v3  ;;  %15138 = vmatprep.mubr.msk.f32.mxu1 %vm2442_vm2, %v19494_v5  ;;  %v9780_v3 = vld [vmem:[#allocation2 + $0x61] sm:$0xff] }
 0x489   : > { %14750 = vmatmul.mubr.msk.f32.gmra.mrb[94].mxu0 %vm2442_vm2, %v19297_v6  ;;  %15139 = vmatmul.mubr.msk.f32.gmra.mrb[56].mxu1 %vm2442_vm2, %v19500_v34  ;;  %v9781_v6 = vld [vmem:[#allocation2 + $0x69] sm:$0xff] }
 0x48a   : > { %14752 = vmatprep.mubr.msk.f32.mxu0 %vm2442_vm2, %v19303_v7  ;;  %15141 = vmatprep.mubr.msk.f32.mxu1 %vm2442_vm2, %v19506_v9  ;;  %v9782_v7 = vld [vmem:[#allocation2 + $0x79] sm:$0xff] }
 0x48d   : > { %14753 = vmatmul.mubr.msk.f32.gmra.mrb[96].mxu0 %vm2442_vm2, %v19309_v8  ;;  %15142 = vmatmul.mubr.msk.f32.gmra.mrb[58].mxu1 %vm2442_vm2, %v19512_v36  ;;  %v9783_v8 = vld [vmem:[#allocation2 + $0x81] sm:$0xff] }
 0x48e   : > { %14755 = vmatprep.mubr.msk.f32.mxu0 %vm2442_vm2, %v19315_v10  ;;  %15144 = vmatprep.mubr.msk.f32.mxu1 %vm2442_vm2, %v19518_v37  ;;  %v9784_v10 = vld [vmem:[#allocation2 + $0x91] sm:$0xff] }
 0x491   : > { %14756 = vmatmul.mubr.msk.f32.gmra.mrb[98].mxu0 %vm2442_vm2, %v19321_v11  ;;  %15145 = vmatmul.mubr.msk.f32.gmra.mrb[60].mxu1 %vm2442_vm2, %v19524_v43  ;;  %v9785_v11 = vld [vmem:[#allocation2 + $0x99] sm:$0xff] }
 0x492   : > { %14758 = vmatprep.mubr.msk.f32.mxu0 %vm2442_vm2, %v19327_v12  ;;  %15147 = vmatprep.mubr.msk.f32.mxu1 %vm2442_vm2, %v9054_v48  ;;  %v9786_v12 = vld [vmem:[#allocation2 + $0xa9] sm:$0xff]  ;;  %v9820_v48 = vld [vmem:[#allocation3 + $0xc1] sm:$0xff] }
 0x495   : > { %14759 = vmatmul.mubr.msk.f32.gmra.mrb[100].mxu0 %vm2442_vm2, %v19333_v55  ;;  %15148 = vmatmul.mubr.msk.f32.gmra.mrb[62].mxu1 %vm2442_vm2, %v9055_v15  ;;  %v9787_v55 = vld [vmem:[#allocation2 + $0xb1] sm:$0xff]  ;;  %v9821_v15 = vld [vmem:[#allocation3 + $0xc9] sm:$0xff] }
 0x496   : > { %14761 = vmatprep.mubr.msk.f32.mxu0 %vm2442_vm2, %v19339_v13  ;;  %15150 = vmatprep.mubr.msk.f32.mxu1 %vm2442_vm2, %v9056_v41  ;;  %v9788_v13 = vld [vmem:[#allocation2 + $0xc1] sm:$0xff]  ;;  %v9822_v41 = vld [vmem:[#allocation3 + $0xd9] sm:$0xff] }
 0x499   : > { %14762 = vmatmul.mubr.msk.f32.gmra.mrb[102].mxu0 %vm2442_vm2, %v19345_v17  ;;  %15151 = vmatmul.mubr.msk.f32.gmra.mrb[32].mxu1 %vm2442_vm2, %v9057_v46  ;;  %v9790_v17 = vld [vmem:[#allocation2 + $0xd9] sm:$0xff]  ;;  %v9824_v46 = vld [vmem:[#allocation3 + $0xf1] sm:$0xff] }
 0x49a   : > { %14772 = vmatprep.mubr.msk.f32.mxu0 %vm2442_vm2, %v6686_v47  ;;  %15153 = vmatprep.mubr.msk.f32.mxu1 %vm2442_vm2, %v9058_v45  ;;  %v9823_v45 = vld [vmem:[#allocation3 + $0xe1] sm:$0xff]  ;;  %v9825_v47 = vld [vmem:[#allocation3 + $0xf9] sm:$0xff] }
 0x49d   : > { %14773 = vmatmul.mubr.msk.f32.vlgmr.msra.gmra.mrb[72].mxu0 %vm2442_vm2, %v6687_v52  ;;  %15154 = vmatmul.mubr.msk.f32.gmra.mrb[34].mxu1 %vm2442_vm2, %v9059_v51  ;;  %v9826_v51 = vld [vmem:[#allocation3 + $0x109] sm:$0xff]  ;;  %v9827_v52 = vld [vmem:[#allocation3 + $0x111] sm:$0xff] }
 0x49e   : > { %14775 = vmatprep.mubr.msk.f32.mxu0 %vm2442_vm2, %v19355_v26  ;;  %15164 = vmatprep.mubr.msk.f32.mxu1 %vm2442_vm2, %v9776_v54  ;;  %v9794_v26 = vld [vmem:[#allocation2 + $0x109] sm:$0xff]  ;;  %v9828_v54 = vld [vmem:[#allocation3 + $0x121] sm:$0xff] }
 0x4a1   : > { %14776 = vmatmul.mubr.msk.f32.gmra.mrb[74].mxu0 %vm2442_vm2, %v19368_v57  ;;  %15165 = vmatmul.mubr.msk.f32.vlgmr.msra.gmra.mrb[36].mxu1 %vm2442_vm2, %v9777_v58  ;;  %v9797_v57 = vld [vmem:[#allocation2 + $0x129] sm:$0xff]  ;;  %v9831_v58 = vld [vmem:[#allocation3 + $0x141] sm:$0xff] }
 0x4a2   : > { %14778 = vmatprep.mubr.msk.f32.mxu0 %vm2442_vm2, %v19375_v4  ;;  %15167 = vmatprep.mubr.msk.f32.mxu1 %vm2442_vm2, %v9778_v61  ;;  %v9799_v4 = vld [vmem:[#allocation2 + $0x141] sm:$0xff]  ;;  %v9833_v61 = vld [vmem:[#allocation3 + $0x159] sm:$0xff] }
 0x4a3   : > { %15743 = vmatpush3.bf16.msra.mxu1 %v19391_v35  ;;  %v9803_v35 = vld [vmem:[#allocation2 + $0x171] sm:$0xff] }
 0x4a4   : > { %15745 = vmatprep.subr.bf16.mxu1 %v15744_v60 }
 0x4a5   : > { %14779 = vmatmul.mubr.msk.f32.gmra.mrb[76].mxu0 %vm2442_vm2, %v19389_v33  ;;  %15168 = vmatmul.mubr.msk.f32.gmra.mrb[38].mxu1 %vm2442_vm2, %v9779_v1  ;;  %v9802_v33 = vld [vmem:[#allocation2 + $0x169] sm:$0xff]  ;;  %v9836_v1 = vld [vmem:[#allocation3 + $0x181] sm:$0xff] }
 0x4a6   : > { %14781 = vmatprep.mubr.msk.f32.mxu0 %vm2442_vm2, %v19397_v39  ;;  %15170 = vmatprep.mubr.msk.f32.mxu1 %vm2442_vm2, %v9780_v3  ;;  %v9804_v39 = vld [vmem:[#allocation2 + $0x181] sm:$0xff]  ;;  %v9837_v3 = vld [vmem:[#allocation3 + $0x189] sm:$0xff] }
 0x4a7   : > { %15747 = vmatpush3.bf16.msra.mxu1 %v15744_v60  ;;  %v9832_v60 = vld [vmem:[#allocation3 + $0x151] sm:$0xff] }
 0x4a8   : > { %15749 = vmatprep.subr.bf16.mxu1 %v19568_v2 }
 0x4a9   : > { %14782 = vmatmul.mubr.msk.f32.gmra.mrb[78].mxu0 %vm2442_vm2, %v19403_v19  ;;  %15171 = vmatmul.mubr.msk.f32.gmra.mrb[40].mxu1 %vm2442_vm2, %v9781_v6  ;;  %v9806_v19 = vld [vmem:[#allocation2 + $0x199] sm:$0xff]  ;;  %v9839_v6 = vld [vmem:[#allocation3 + $0x1a1] sm:$0xff] }
 0x4aa   : > { %14784 = vmatprep.mubr.msk.f32.mxu0 %vm2442_vm2, %v19410_v40  ;;  %15173 = vmatprep.mubr.msk.f32.mxu1 %vm2442_vm2, %v9782_v7  ;;  %v9805_v40 = vld [vmem:[#allocation2 + $0x189] sm:$0xff] }
 0x4ab   : > { %v12661_v7 = vld [vmem:[%s20066_s10 + $0x110] sm:$0xff] }
 0x4ad   : > { %14785 = vmatmul.mubr.msk.f32.gmra.mrb[80].mxu0 %vm2442_vm2, %v19416_v44  ;;  %15174 = vmatmul.mubr.msk.f32.gmra.mrb[42].mxu1 %vm2442_vm2, %v9783_v8  ;;  %v9807_v44 = vld [vmem:[#allocation2 + $0x1a1] sm:$0xff]  ;;  %v12662_v8 = vld [vmem:[%s20066_s10 + $0x118] sm:$0xff] }
 0x4ae   : > { %14787 = vmatprep.mubr.msk.f32.mxu0 %vm2442_vm2, %v19422_v53  ;;  %15176 = vmatprep.mubr.msk.f32.mxu1 %vm2442_vm2, %v9784_v10  ;;  %v12625_v53 = vld [vmem:[%s20065_s9 + $0x110] sm:$0xff] }
 0x4af   : > { %v10556_v10 = vld [vmem:[#allocation2 + $0x32] sm:$0xff] }
 0x4b1   : > { %14788 = vmatmul.mubr.msk.f32.gmra.mrb[82].mxu0 %vm2442_vm2, %v19428_v20  ;;  %15177 = vmatmul.mubr.msk.f32.gmra.mrb[44].mxu1 %vm2442_vm2, %v9785_v11  ;;  %v12626_v20 = vld [vmem:[%s20065_s9 + $0x118] sm:$0xff]  ;;  %v15760_v11 = vpack.c.bf16 %v12662_v8, %v12661_v7  ;;  %v10605_v8 = vld [vmem:[#allocation3 + $0xfa] sm:$0xff] }
 0x4b2   : > { %14790 = vmatprep.mubr.msk.f32.mxu0 %vm2442_vm2, %v19434_v24  ;;  %15179 = vmatprep.mubr.msk.f32.mxu1 %vm2442_vm2, %v9786_v12  ;;  %v9808_v24 = vld [vmem:[#allocation3 + $0x31] sm:$0xff] }
 0x4b3   : > { %v10557_v12 = vld [vmem:[#allocation2 + $0x3a] sm:$0xff] }
 0x4b5   : > { %14791 = vmatmul.mubr.msk.f32.gmra.mrb[84].mxu0 %vm2442_vm2, %v19440_v25  ;;  %15180 = vmatmul.mubr.msk.f32.gmra.mrb[46].mxu1 %vm2442_vm2, %v9787_v55  ;;  %v15752_v25 = vpack.c.bf16 %v12626_v20, %v12625_v53  ;;  %v10558_v55 = vld [vmem:[#allocation2 + $0x4a] sm:$0xff]  ;;  %v10579_v53 = vld [vmem:[#allocation2 + $0x142] sm:$0xff]  ;;  %v10580_v20 = vld [vmem:[#allocation2 + $0x152] sm:$0xff] }
 0x4b6   : > { %14793 = vmatprep.mubr.msk.f32.mxu0 %vm2442_vm2, %v19446_v29  ;;  %15182 = vmatprep.mubr.msk.f32.mxu1 %vm2442_vm2, %v9788_v13  ;;  %v9809_v29 = vld [vmem:[#allocation3 + $0x39] sm:$0xff]  ;;  %v10559_v13 = vld [vmem:[#allocation2 + $0x52] sm:$0xff] }
 0x4b9   : > { %14794 = vmatmul.mubr.msk.f32.gmra.mrb[86].mxu0 %vm2442_vm2, %v19452_v16  ;;  %15183 = vmatmul.mubr.msk.f32.gmra.mrb[48].mxu1 %vm2442_vm2, %v9789_v14  ;;  %v12659_v16 = vld [vmem:[%s20066_s10 + $0x100] sm:$0xff] }
 0x4ba   : > { %14796 = vmatprep.mubr.msk.f32.mxu0 %vm2442_vm2, %v19458_v30  ;;  %15185 = vmatprep.mubr.msk.f32.mxu1 %vm2442_vm2, %v9790_v17  ;;  %v12660_v30 = vld [vmem:[%s20066_s10 + $0x108] sm:$0xff] }
 0x4bb   : > { %v10560_v14 = vld [vmem:[#allocation2 + $0x62] sm:$0xff]  ;;  %v10561_v17 = vld [vmem:[#allocation2 + $0x6a] sm:$0xff] }
 0x4bd   : > { %14797 = vmatmul.mubr.msk.f32.gmra.mrb[88].mxu0 %vm2442_vm2, %v19464_v18  ;;  %15186 = vmatmul.mubr.msk.f32.gmra.mrb[50].mxu1 %vm2442_vm2, %v9791_v21  ;;  %v9810_v18 = vld [vmem:[#allocation3 + $0x49] sm:$0xff] }
 0x4be   : > { %14799 = vmatprep.mubr.msk.f32.mxu0 %vm2442_vm2, %v19470_v50  ;;  %15188 = vmatprep.mubr.msk.f32.mxu1 %vm2442_vm2, %v9792_v22  ;;  %v19662_v50 = vpack.c.bf16 %v12660_v30, %v12659_v16  ;;  %v10562_v21 = vld [vmem:[#allocation2 + $0x7a] sm:$0xff]  ;;  %v10563_v22 = vld [vmem:[#allocation2 + $0x82] sm:$0xff] }
 0x4bf   : > { %v10584_v16 = vld [vmem:[#allocation2 + $0x182] sm:$0xff]  ;;  %v10586_v30 = vld [vmem:[#allocation2 + $0x19a] sm:$0xff] }
 0x4c1   : > { %14800 = vmatmul.mubr.msk.f32.gmra.mrb[90].mxu0 %vm2442_vm2, %v19476_v28  ;;  %15189 = vmatmul.mubr.msk.f32.gmra.mrb[52].mxu1 %vm2442_vm2, %v9793_v23  ;;  %v9811_v28 = vld [vmem:[#allocation3 + $0x51] sm:$0xff]  ;;  %v10564_v23 = vld [vmem:[#allocation2 + $0x92] sm:$0xff] }
 0x4c2   : > { %14802 = vmatprep.mubr.msk.f32.mxu0 %vm2442_vm2, %v19482_v32  ;;  %15191 = vmatprep.mubr.msk.f32.mxu1 %vm2442_vm2, %v9794_v26  ;;  %v9812_v32 = vld [vmem:[#allocation3 + $0x61] sm:$0xff]  ;;  %v10565_v26 = vld [vmem:[#allocation2 + $0x9a] sm:$0xff] }
 0x4c5   : > { %14803 = vmatmul.mubr.msk.f32.gmra.mrb[92].mxu0 %vm2442_vm2, %v19488_v0  ;;  %15192 = vmatmul.mubr.msk.f32.gmra.mrb[54].mxu1 %vm2442_vm2, %v9795_v27  ;;  %v9813_v0 = vld [vmem:[#allocation3 + $0x69] sm:$0xff]  ;;  %v10566_v27 = vld [vmem:[#allocation2 + $0xaa] sm:$0xff] }
 0x4c6   : > { %14805 = vmatprep.mubr.msk.f32.mxu0 %vm2442_vm2, %v19494_v5  ;;  %15194 = vmatprep.mubr.msk.f32.mxu1 %vm2442_vm2, %v9796_v59  ;;  %v9814_v5 = vld [vmem:[#allocation3 + $0x79] sm:$0xff]  ;;  %v10567_v59 = vld [vmem:[#allocation2 + $0xb2] sm:$0xff] }
 0x4c9   : > { %14806 = vmatmul.mubr.msk.f32.gmra.mrb[94].mxu0 %vm2442_vm2, %v19500_v34  ;;  %15195 = vmatmul.mubr.msk.f32.gmra.mrb[56].mxu1 %vm2442_vm2, %v9797_v57  ;;  %v9815_v34 = vld [vmem:[#allocation3 + $0x81] sm:$0xff]  ;;  %v10568_v57 = vld [vmem:[#allocation2 + $0xc2] sm:$0xff] }
 0x4ca   : > { %14808 = vmatprep.mubr.msk.f32.mxu0 %vm2442_vm2, %v19506_v9  ;;  %15197 = vmatprep.mubr.msk.f32.mxu1 %vm2442_vm2, %v9798_v31  ;;  %v9816_v9 = vld [vmem:[#allocation3 + $0x91] sm:$0xff]  ;;  %v10569_v31 = vld [vmem:[#allocation2 + $0xca] sm:$0xff] }
 0x4cd   : > { %14809 = vmatmul.mubr.msk.f32.gmra.mrb[96].mxu0 %vm2442_vm2, %v19512_v36  ;;  %15198 = vmatmul.mubr.msk.f32.gmra.mrb[58].mxu1 %vm2442_vm2, %v9799_v4  ;;  %v9817_v36 = vld [vmem:[#allocation3 + $0x99] sm:$0xff]  ;;  %v10570_v4 = vld [vmem:[#allocation2 + $0xda] sm:$0xff] }
 0x4ce   : > { %14811 = vmatprep.mubr.msk.f32.mxu0 %vm2442_vm2, %v19518_v37  ;;  %15200 = vmatprep.mubr.msk.f32.mxu1 %vm2442_vm2, %v9800_v63  ;;  %v9818_v37 = vld [vmem:[#allocation3 + $0xa9] sm:$0xff]  ;;  %v10571_v63 = vld [vmem:[#allocation2 + $0xe2] sm:$0xff] }
 0x4d1   : > { %14812 = vmatmul.mubr.msk.f32.gmra.mrb[98].mxu0 %vm2442_vm2, %v19524_v43  ;;  %15201 = vmatmul.mubr.msk.f32.gmra.mrb[60].mxu1 %vm2442_vm2, %v9801_v49  ;;  %v9819_v43 = vld [vmem:[#allocation3 + $0xb1] sm:$0xff]  ;;  %v10572_v49 = vld [vmem:[#allocation2 + $0xf2] sm:$0xff] }
 0x4d2   : > { %15203 = vmatprep.mubr.msk.f32.mxu1 %vm2442_vm2, %v9802_v33  ;;  %v10573_v33 = vld [vmem:[#allocation2 + $0xfa] sm:$0xff] }
 0x4d5   : > { %15204 = vmatmul.mubr.msk.f32.gmra.mrb[62].mxu1 %vm2442_vm2, %v9803_v35  ;;  %v10574_v35 = vld [vmem:[#allocation2 + $0x10a] sm:$0xff] }
 0x4d6   : > { %15206 = vmatprep.mubr.msk.f32.mxu1 %vm2442_vm2, %v9804_v39  ;;  %v10575_v39 = vld [vmem:[#allocation2 + $0x112] sm:$0xff] }
 0x4d9   : > { %15207 = vmatmul.mubr.msk.f32.gmra.mrb[32].mxu1 %vm2442_vm2, %v9805_v40  ;;  %v10577_v40 = vld [vmem:[#allocation2 + $0x12a] sm:$0xff] }
 0x4da   : > { %15209 = vmatprep.mubr.msk.f32.mxu1 %vm2442_vm2, %v9806_v19  ;;  %v10576_v19 = vld [vmem:[#allocation2 + $0x122] sm:$0xff] }
 0x4dd   : > { %15210 = vmatmul.mubr.msk.f32.gmra.mrb[34].mxu1 %vm2442_vm2, %v9807_v44  ;;  %v10578_v44 = vld [vmem:[#allocation2 + $0x13a] sm:$0xff] }
 0x4de   : > { %15220 = vmatprep.mubr.msk.f32.mxu1 %vm2442_vm2, %v9808_v24  ;;  %v10581_v24 = vld [vmem:[#allocation2 + $0x15a] sm:$0xff] }
 0x4e1   : > { %15221 = vmatmul.mubr.msk.f32.vlgmr.msra.gmra.mrb[36].mxu1 %vm2442_vm2, %v9809_v29  ;;  %v10583_v29 = vld [vmem:[#allocation2 + $0x172] sm:$0xff] }
 0x4e2   : > { %15223 = vmatprep.mubr.msk.f32.mxu1 %vm2442_vm2, %v9810_v18  ;;  %15751 = vmatpush3.bf16.msra.mxu1 %v19568_v2  ;;  %v9838_v2 = vld [vmem:[#allocation3 + $0x199] sm:$0xff] }
 0x4e3   : > { %15753 = vmatprep.subr.bf16.mxu1 %v15752_v25  ;;  %v10585_v18 = vld [vmem:[#allocation2 + $0x18a] sm:$0xff] }
 0x4e5   : > { %15224 = vmatmul.mubr.msk.f32.gmra.mrb[38].mxu1 %vm2442_vm2, %v9811_v28  ;;  %v10588_v28 = vld [vmem:[#allocation3 + $0x32] sm:$0xff] }
 0x4e6   : > { %15226 = vmatprep.mubr.msk.f32.mxu1 %vm2442_vm2, %v9812_v32  ;;  %15755 = vmatpush3.bf16.msra.mxu1 %v15752_v25  ;;  %v10582_v25 = vld [vmem:[#allocation2 + $0x16a] sm:$0xff] }
 0x4e7   : > { %15757 = vmatprep.subr.bf16.mxu1 %v19662_v50  ;;  %v10589_v32 = vld [vmem:[#allocation3 + $0x3a] sm:$0xff] }
 0x4e9   : > { %15227 = vmatmul.mubr.msk.f32.gmra.mrb[40].mxu1 %vm2442_vm2, %v9813_v0  ;;  %v10590_v0 = vld [vmem:[#allocation3 + $0x4a] sm:$0xff] }
 0x4ea   : > { %15229 = vmatprep.mubr.msk.f32.mxu1 %vm2442_vm2, %v9814_v5  ;;  %v10591_v5 = vld [vmem:[#allocation3 + $0x52] sm:$0xff] }
 0x4ed   : > { %15230 = vmatmul.mubr.msk.f32.gmra.mrb[42].mxu1 %vm2442_vm2, %v9815_v34  ;;  %v10592_v34 = vld [vmem:[#allocation3 + $0x62] sm:$0xff] }
 0x4ee   : > { %15232 = vmatprep.mubr.msk.f32.mxu1 %vm2442_vm2, %v9816_v9 }
 0x4f1   : > { %15233 = vmatmul.mubr.msk.f32.gmra.mrb[44].mxu1 %vm2442_vm2, %v9817_v36  ;;  %v10593_v36 = vld [vmem:[#allocation3 + $0x6a] sm:$0xff] }
 0x4f2   : > { %15235 = vmatprep.mubr.msk.f32.mxu1 %vm2442_vm2, %v9818_v37 }
 0x4f5   : > { %15236 = vmatmul.mubr.msk.f32.gmra.mrb[46].mxu1 %vm2442_vm2, %v9819_v43  ;;  %v10594_v43 = vld [vmem:[#allocation3 + $0x7a] sm:$0xff] }
 0x4f6   : > { %15238 = vmatprep.mubr.msk.f32.mxu1 %vm2442_vm2, %v9820_v48 }
 0x4f9   : > { %15239 = vmatmul.mubr.msk.f32.gmra.mrb[48].mxu1 %vm2442_vm2, %v9821_v15  ;;  %v10595_v15 = vld [vmem:[#allocation3 + $0x82] sm:$0xff] }
 0x4fa   : > { %15241 = vmatprep.mubr.msk.f32.mxu1 %vm2442_vm2, %v9822_v41 }
 0x4fd   : > { %15242 = vmatmul.mubr.msk.f32.gmra.mrb[50].mxu1 %vm2442_vm2, %v9823_v45  ;;  %v10596_v45 = vld [vmem:[#allocation3 + $0x92] sm:$0xff] }
 0x4fe   : > { %15244 = vmatprep.mubr.msk.f32.mxu1 %vm2442_vm2, %v9824_v46 }
 0x501   : > { %15245 = vmatmul.mubr.msk.f32.gmra.mrb[52].mxu1 %vm2442_vm2, %v9825_v47  ;;  %v10597_v47 = vld [vmem:[#allocation3 + $0x9a] sm:$0xff] }
 0x502   : > { %15247 = vmatprep.mubr.msk.f32.mxu1 %vm2442_vm2, %v9826_v51 }
 0x505   : > { %15248 = vmatmul.mubr.msk.f32.gmra.mrb[54].mxu1 %vm2442_vm2, %v9827_v52  ;;  %v10598_v52 = vld [vmem:[#allocation3 + $0xaa] sm:$0xff] }
 0x506   : > { %15250 = vmatprep.mubr.msk.f32.mxu1 %vm2442_vm2, %v9828_v54 }
 0x509   : > { %15251 = vmatmul.mubr.msk.f32.gmra.mrb[56].mxu1 %vm2442_vm2, %v9829_v56  ;;  %v10599_v56 = vld [vmem:[#allocation3 + $0xb2] sm:$0xff] }
 0x50a   : > { %15253 = vmatprep.mubr.msk.f32.mxu1 %vm2442_vm2, %v9830_v38 }
 0x50d   : > { %15254 = vmatmul.mubr.msk.f32.gmra.mrb[58].mxu1 %vm2442_vm2, %v9831_v58  ;;  %v10600_v58 = vld [vmem:[#allocation3 + $0xc2] sm:$0xff] }
 0x50e   : > { %15256 = vmatprep.mubr.msk.f32.mxu1 %vm2442_vm2, %v9832_v60 }
 0x511   : > { %15257 = vmatmul.mubr.msk.f32.gmra.mrb[60].mxu1 %vm2442_vm2, %v9833_v61  ;;  %v10601_v61 = vld [vmem:[#allocation3 + $0xca] sm:$0xff] }
 0x512   : > { %15259 = vmatprep.mubr.msk.f32.mxu1 %vm2442_vm2, %v9834_v62 }
 0x515   : > { %15260 = vmatmul.mubr.msk.f32.gmra.mrb[62].mxu1 %vm2442_vm2, %v9835_v42  ;;  %v10602_v42 = vld [vmem:[#allocation3 + $0xda] sm:$0xff] }
 0x516   : > { %15262 = vmatprep.mubr.msk.f32.mxu1 %vm2442_vm2, %v9836_v1 }
 0x519   : > { %15263 = vmatmul.mubr.msk.f32.gmra.mrb[32].mxu1 %vm2442_vm2, %v9837_v3 }
 0x51a   : > { %15265 = vmatprep.mubr.msk.f32.mxu1 %vm2442_vm2, %v9838_v2  ;;  %v10603_v2 = vld [vmem:[#allocation3 + $0xe2] sm:$0xff] }
 0x51d   : > { %15266 = vmatmul.mubr.msk.f32.gmra.mrb[34].mxu1 %vm2442_vm2, %v9839_v6  ;;  %v10604_v6 = vld [vmem:[#allocation3 + $0xf2] sm:$0xff] }
 0x51e   : > { %15276 = vmatprep.mubr.msk.f32.mxu1 %vm2442_vm2, %v10556_v10 }
 0x521   : > { %15277 = vmatmul.mubr.msk.f32.vlgmr.msra.gmra.mrb[36].mxu1 %vm2442_vm2, %v10557_v12 }
 0x522   : > { %15279 = vmatprep.mubr.msk.f32.mxu1 %vm2442_vm2, %v10558_v55  ;;  %15759 = vmatpush3.bf16.msra.mxu1 %v19662_v50  ;;  %v10587_v50 = vld [vmem:[#allocation2 + $0x1a2] sm:$0xff] }
 0x523   : > { %15761 = vmatprep.subr.bf16.mxu1 %v15760_v11  ;;  %v10607_v55 = vld [vmem:[#allocation3 + $0x112] sm:$0xff] }
 0x525   : > { %15280 = vmatmul.mubr.msk.f32.gmra.mrb[38].mxu1 %vm2442_vm2, %v10559_v13 }
 0x526   : > { %15282 = vmatprep.mubr.msk.f32.mxu1 %vm2442_vm2, %v10560_v14  ;;  %15763 = vmatpush3.bf16.msra.mxu1 %v15760_v11  ;;  %v10606_v11 = vld [vmem:[#allocation3 + $0x10a] sm:$0xff]  ;;  %v10608_v14 = vld [vmem:[#allocation3 + $0x122] sm:$0xff] }
 0x529   : > { %15283 = vmatmul.mubr.msk.f32.gmra.mrb[40].mxu1 %vm2442_vm2, %v10561_v17 }
 0x52a   : > { %15285 = vmatprep.mubr.msk.f32.mxu1 %vm2442_vm2, %v10562_v21  ;;  %v10609_v21 = vld [vmem:[#allocation3 + $0x12a] sm:$0xff] }
 0x52d   : > { %15286 = vmatmul.mubr.msk.f32.gmra.mrb[42].mxu1 %vm2442_vm2, %v10563_v22 }
 0x52e   : > { %15288 = vmatprep.mubr.msk.f32.mxu1 %vm2442_vm2, %v10564_v23  ;;  %v10610_v23 = vld [vmem:[#allocation3 + $0x13a] sm:$0xff] }
 0x531   : > { %15289 = vmatmul.mubr.msk.f32.gmra.mrb[44].mxu1 %vm2442_vm2, %v10565_v26 }
 0x532   : > { %15291 = vmatprep.mubr.msk.f32.mxu1 %vm2442_vm2, %v10566_v27  ;;  %v10611_v27 = vld [vmem:[#allocation3 + $0x142] sm:$0xff] }
 0x535   : > { %15292 = vmatmul.mubr.msk.f32.gmra.mrb[46].mxu1 %vm2442_vm2, %v10567_v59 }
 0x536   : > { %15294 = vmatprep.mubr.msk.f32.mxu1 %vm2442_vm2, %v10568_v57  ;;  %v10612_v57 = vld [vmem:[#allocation3 + $0x152] sm:$0xff] }
 0x539   : > { %15295 = vmatmul.mubr.msk.f32.gmra.mrb[48].mxu1 %vm2442_vm2, %v10569_v31 }
 0x53a   : > { %15297 = vmatprep.mubr.msk.f32.mxu1 %vm2442_vm2, %v10570_v4  ;;  %v10613_v4 = vld [vmem:[#allocation3 + $0x15a] sm:$0xff] }
 0x53d   : > { %15298 = vmatmul.mubr.msk.f32.gmra.mrb[50].mxu1 %vm2442_vm2, %v10571_v63 }
 0x53e   : > { %15300 = vmatprep.mubr.msk.f32.mxu1 %vm2442_vm2, %v10572_v49  ;;  %v10614_v49 = vld [vmem:[#allocation3 + $0x16a] sm:$0xff] }
 0x541   : > { %15301 = vmatmul.mubr.msk.f32.gmra.mrb[52].mxu1 %vm2442_vm2, %v10573_v33 }
 0x542   : > { %15303 = vmatprep.mubr.msk.f32.mxu1 %vm2442_vm2, %v10574_v35  ;;  %v10615_v35 = vld [vmem:[#allocation3 + $0x172] sm:$0xff] }
 0x545   : > { %15304 = vmatmul.mubr.msk.f32.gmra.mrb[54].mxu1 %vm2442_vm2, %v10575_v39 }
 0x546   : > { %15306 = vmatprep.mubr.msk.f32.mxu1 %vm2442_vm2, %v10576_v19  ;;  %v10616_v19 = vld [vmem:[#allocation3 + $0x182] sm:$0xff] }
 0x549   : > { %15307 = vmatmul.mubr.msk.f32.gmra.mrb[56].mxu1 %vm2442_vm2, %v10577_v40  ;;  %v10618_v40 = vld [vmem:[#allocation3 + $0x19a] sm:$0xff] }
 0x54a   : > { %15309 = vmatprep.mubr.msk.f32.mxu1 %vm2442_vm2, %v10578_v44 }
 0x54d   : > { %15310 = vmatmul.mubr.msk.f32.gmra.mrb[58].mxu1 %vm2442_vm2, %v10579_v53  ;;  %v10617_v53 = vld [vmem:[#allocation3 + $0x18a] sm:$0xff] }
 0x54e   : > { %15312 = vmatprep.mubr.msk.f32.mxu1 %vm2442_vm2, %v10580_v20 }
 0x551   : > { %15313 = vmatmul.mubr.msk.f32.gmra.mrb[60].mxu1 %vm2442_vm2, %v10581_v24  ;;  %v10619_v24 = vld [vmem:[#allocation3 + $0x1a2] sm:$0xff] }
 0x552   : > { %15315 = vmatprep.mubr.msk.f32.mxu1 %vm2442_vm2, %v10582_v25 }
 0x555   : > { %15316 = vmatmul.mubr.msk.f32.gmra.mrb[62].mxu1 %vm2442_vm2, %v10583_v29 }
 0x556   : > { %15318 = vmatprep.mubr.msk.f32.mxu1 %vm2442_vm2, %v10584_v16 }
 0x559   : > { %15319 = vmatmul.mubr.msk.f32.gmra.mrb[32].mxu1 %vm2442_vm2, %v10585_v18 }
 0x55a   : > { %15321 = vmatprep.mubr.msk.f32.mxu1 %vm2442_vm2, %v10586_v30 }
 0x55d   : > { %15322 = vmatmul.mubr.msk.f32.gmra.mrb[34].mxu1 %vm2442_vm2, %v10587_v50 }
 0x55e   : > { %15332 = vmatprep.mubr.msk.f32.mxu1 %vm2442_vm2, %v10588_v28 }
 0x561   : > { %15333 = vmatmul.mubr.msk.f32.vlgmr.msra.gmra.mrb[36].mxu1 %vm2442_vm2, %v10589_v32  ;;  %v19833_v32 = vld [vmem:[%s20067_s11] ss:$0 sm:$0xff] }
 0x562   : > { %15335 = vmatprep.mubr.msk.f32.mxu1 %vm2442_vm2, %v10590_v0 }
 0x565   : > { %15336 = vmatmul.mubr.msk.f32.gmra.mrb[38].mxu1 %vm2442_vm2, %v10591_v5 }
 0x566   : > { %15338 = vmatprep.mubr.msk.f32.mxu1 %vm2442_vm2, %v10592_v34  ;;  %v19839_v34 = vld [vmem:[%s20068_s12] ss:$0 sm:$0xff] }
 0x568   : > { %v19738_v9 = vpop.f32.mrb[100].mxu0 }
 0x569   : > { %v19740_v37 = vpop.f32.mrb[101].mxu0  ;;  %15339 = vmatmul.mubr.msk.f32.gmra.mrb[40].mxu1 %vm2442_vm2, %v10593_v36 }
 0x56a   : > { %15341 = vmatprep.mubr.msk.f32.mxu1 %vm2442_vm2, %v10594_v43 }
 0x56c   : > { %v19744_v48 = vpop.f32.mrb[102].mxu0 }
 0x56d   : > { %v19746_v41 = vpop.f32.mrb[103].mxu0  ;;  %15342 = vmatmul.mubr.msk.f32.gmra.mrb[42].mxu1 %vm2442_vm2, %v10595_v15 }
 0x56e   : > { %15344 = vmatprep.mubr.msk.f32.mxu1 %vm2442_vm2, %v10596_v45 }
 0x570   : > { %v19750_v46 = vpop.f32.mrb[72].mxu0 }
 0x571   : > { %v19752_v51 = vpop.f32.mrb[73].mxu0  ;;  %15345 = vmatmul.mubr.msk.f32.gmra.mrb[44].mxu1 %vm2442_vm2, %v10597_v47 }
 0x572   : > { %15347 = vmatprep.mubr.msk.f32.mxu1 %vm2442_vm2, %v10598_v52 }
 0x574   : > { %v19756_v54 = vpop.f32.mrb[74].mxu0 }
 0x575   : > { %v19758_v38 = vpop.f32.mrb[75].mxu0  ;;  %15348 = vmatmul.mubr.msk.f32.gmra.mrb[46].mxu1 %vm2442_vm2, %v10599_v56 }
 0x576   : > { %15350 = vmatprep.mubr.msk.f32.mxu1 %vm2442_vm2, %v10600_v58 }
 0x578   : > { %v19762_v60 = vpop.f32.mrb[76].mxu0 }
 0x579   : > { %v19764_v62 = vpop.f32.mrb[77].mxu0  ;;  %15351 = vmatmul.mubr.msk.f32.gmra.mrb[48].mxu1 %vm2442_vm2, %v10601_v61 }
 0x57a   : > { %15353 = vmatprep.mubr.msk.f32.mxu1 %vm2442_vm2, %v10602_v42 }
 0x57c   : > { %v19768_v1 = vpop.f32.mrb[78].mxu0 }
 0x57d   : > { %v19770_v3 = vpop.f32.mrb[79].mxu0  ;;  %15354 = vmatmul.mubr.msk.f32.gmra.mrb[50].mxu1 %vm2442_vm2, %v10603_v2 }
 0x57e   : > { %15356 = vmatprep.mubr.msk.f32.mxu1 %vm2442_vm2, %v10604_v6 }
 0x580   : > { %v19774_v7 = vpop.f32.mrb[80].mxu0 }
 0x581   : > { %v19776_v10 = vpop.f32.mrb[81].mxu0  ;;  %15357 = vmatmul.mubr.msk.f32.gmra.mrb[52].mxu1 %vm2442_vm2, %v10605_v8 }
 0x582   : > { %15359 = vmatprep.mubr.msk.f32.mxu1 %vm2442_vm2, %v10606_v11 }
 0x584   : > { %v19780_v12 = vpop.f32.mrb[82].mxu0 }
 0x585   : > { %v19782_v13 = vpop.f32.mrb[83].mxu0  ;;  %15360 = vmatmul.mubr.msk.f32.gmra.mrb[54].mxu1 %vm2442_vm2, %v10607_v55 }
 0x586   : > { %15362 = vmatprep.mubr.msk.f32.mxu1 %vm2442_vm2, %v10608_v14 }
 0x588   : > { %v19786_v17 = vpop.f32.mrb[84].mxu0 }
 0x589   : > { %v19788_v22 = vpop.f32.mrb[85].mxu0  ;;  %15363 = vmatmul.mubr.msk.f32.gmra.mrb[56].mxu1 %vm2442_vm2, %v10609_v21 }
 0x58a   : > { %15365 = vmatprep.mubr.msk.f32.mxu1 %vm2442_vm2, %v10610_v23 }
 0x58c   : > { %v19792_v26 = vpop.f32.mrb[86].mxu0 }
 0x58d   : > { %v19794_v59 = vpop.f32.mrb[87].mxu0  ;;  %15366 = vmatmul.mubr.msk.f32.gmra.mrb[58].mxu1 %vm2442_vm2, %v10611_v27 }
 0x58e   : > { %15368 = vmatprep.mubr.msk.f32.mxu1 %vm2442_vm2, %v10612_v57 }
 0x590   : > { %v19798_v31 = vpop.f32.mrb[88].mxu0 }
 0x591   : > { %v19800_v63 = vpop.f32.mrb[89].mxu0  ;;  %15369 = vmatmul.mubr.msk.f32.gmra.mrb[60].mxu1 %vm2442_vm2, %v10613_v4 }
 0x592   : > { %15371 = vmatprep.mubr.msk.f32.mxu1 %vm2442_vm2, %v10614_v49 }
 0x594   : > { %v19804_v33 = vpop.f32.mrb[90].mxu0 }
 0x595   : > { %v19806_v39 = vpop.f32.mrb[91].mxu0  ;;  %15372 = vmatmul.mubr.msk.f32.gmra.mrb[62].mxu1 %vm2442_vm2, %v10615_v35 }
 0x596   : > { %15374 = vmatprep.mubr.msk.f32.mxu1 %vm2442_vm2, %v10616_v19 }
 0x598   : > { %v19810_v44 = vpop.f32.mrb[92].mxu0 }
 0x599   : > { %v19812_v20 = vpop.f32.mrb[93].mxu0  ;;  %15375 = vmatmul.mubr.msk.f32.gmra.mrb[32].mxu1 %vm2442_vm2, %v10617_v53 }
 0x59a   : > { %15377 = vmatprep.mubr.msk.f32.mxu1 %vm2442_vm2, %v10618_v40 }
 0x59c   : > { %v19816_v25 = vpop.f32.mrb[94].mxu0 }
 0x59d   : > { %v19818_v29 = vpop.f32.mrb[95].mxu0  ;;  %15378 = vmatmul.mubr.msk.f32.gmra.mrb[34].mxu1 %vm2442_vm2, %v10619_v24 }
 0x5a0   : > { %v19821_v16 = vpop.f32.mrb[96].mxu0 }
 0x5a1   : > { %v19823_v30 = vpop.f32.mrb[97].mxu0 }
 0x5a4   : > { %v19825_v18 = vpop.f32.mrb[98].mxu0 }
 0x5a5   : > { %v19827_v50 = vpop.f32.mrb[99].mxu0 }
 0x634   : > { %v15334_v28 = vpop.f32.mrb[36].mxu1 }
 0x635   : > { %v15768_v0 = vadd.f32 %v15334_v28, %v19750_v46  ;;  %v11145_v5 = vpop.f32.mrb[37].mxu1 }
 0x636   : > { %v15769_v36 = vadd.f32 %v11145_v5, %v19752_v51 }
 0x637   : > { %v11344_v43 = vmul.f32 %v15768_v0, %v19833_v32 }
 0x638   : > { %v11343_v15 = vmul.f32 %v15769_v36, %v19833_v32  ;;  %v15337_v45 = vpop.f32.mrb[38].mxu1 }
 0x639   : > { %v11383_v47 = vadd.f32 %v19839_v34, %v11344_v43  ;;  %v15770_v52 = vadd.f32 %v15337_v45, %v19756_v54  ;;  %v11155_v46 = vpop.f32.mrb[39].mxu1 }
 0x63a   : > { %v11382_v56 = vadd.f32 %v19839_v34, %v11343_v15  ;;  %v15771_v58 = vadd.f32 %v11155_v46, %v19758_v38 }
 0x63b   : > { %v11415_v61 = vmax.f32 %v11383_v47, 0.0  ;;  %v11346_v42 = vmul.f32 %v15770_v52, %v19833_v32 }
 0x63c   : > { %v11414_v51 = vmax.f32 %v11382_v56, 0.0  ;;  %v11345_v2 = vmul.f32 %v15771_v58, %v19833_v32  ;;  %v15340_v6 = vpop.f32.mrb[40].mxu1 }
 0x63d   : > { %11447 = vst.msk [vmem:[%s19852_s20 + $0x8] sm:$0xff] %vm2442_vm2, %v11415_v61  ;;  %v11385_v54 = vadd.f32 %v19839_v34, %v11346_v42  ;;  %v15772_v8 = vadd.f32 %v15340_v6, %v19762_v60  ;;  %v11165_v38 = vpop.f32.mrb[41].mxu1 }
 0x63e   : > { %11446 = vst.msk [vmem:[%s19852_s20] sm:$0xff] %vm2442_vm2, %v11414_v51  ;;  %v11384_v11 = vadd.f32 %v19839_v34, %v11345_v2  ;;  %v15773_v55 = vadd.f32 %v11165_v38, %v19764_v62 }
 0x63f   : > { %v11417_v14 = vmax.f32 %v11385_v54, 0.0  ;;  %v11348_v21 = vmul.f32 %v15772_v8, %v19833_v32 }
 0x640   : > { %v11416_v23 = vmax.f32 %v11384_v11, 0.0  ;;  %v11347_v27 = vmul.f32 %v15773_v55, %v19833_v32  ;;  %v15343_v57 = vpop.f32.mrb[42].mxu1 }
 0x641   : > { %11449 = vst.msk [vmem:[%s19852_s20 + $0x18] sm:$0xff] %vm2442_vm2, %v11417_v14  ;;  %v11387_v60 = vadd.f32 %v19839_v34, %v11348_v21  ;;  %v15774_v4 = vadd.f32 %v15343_v57, %v19768_v1  ;;  %v11175_v49 = vpop.f32.mrb[43].mxu1 }
 0x642   : > { %11448 = vst.msk [vmem:[%s19852_s20 + $0x10] sm:$0xff] %vm2442_vm2, %v11416_v23  ;;  %v11386_v62 = vadd.f32 %v19839_v34, %v11347_v27  ;;  %v15775_v35 = vadd.f32 %v11175_v49, %v19770_v3 }
 0x643   : > { %v11419_v19 = vmax.f32 %v11387_v60, 0.0  ;;  %v11350_v40 = vmul.f32 %v15774_v4, %v19833_v32 }
 0x644   : > { %v11418_v53 = vmax.f32 %v11386_v62, 0.0  ;;  %v11349_v24 = vmul.f32 %v15775_v35, %v19833_v32  ;;  %v15346_v28 = vpop.f32.mrb[44].mxu1 }
 0x645   : > { %11451 = vst.msk [vmem:[%s19852_s20 + $0x28] sm:$0xff] %vm2442_vm2, %v11419_v19  ;;  %v11389_v1 = vadd.f32 %v19839_v34, %v11350_v40  ;;  %v15776_v0 = vadd.f32 %v15346_v28, %v19774_v7  ;;  %v11185_v5 = vpop.f32.mrb[45].mxu1 }
 0x646   : > { %11450 = vst.msk [vmem:[%s19852_s20 + $0x20] sm:$0xff] %vm2442_vm2, %v11418_v53  ;;  %v11388_v3 = vadd.f32 %v19839_v34, %v11349_v24  ;;  %v15777_v36 = vadd.f32 %v11185_v5, %v19776_v10 }
 0x647   : > { %v11421_v43 = vmax.f32 %v11389_v1, 0.0  ;;  %v11352_v15 = vmul.f32 %v15776_v0, %v19833_v32 }
 0x648   : > { %v11420_v45 = vmax.f32 %v11388_v3, 0.0  ;;  %v11351_v47 = vmul.f32 %v15777_v36, %v19833_v32  ;;  %v15349_v52 = vpop.f32.mrb[46].mxu1 }
 0x649   : > { %11453 = vst.msk [vmem:[%s19852_s20 + $0x38] sm:$0xff] %vm2442_vm2, %v11421_v43  ;;  %v11391_v7 = vadd.f32 %v19839_v34, %v11352_v15  ;;  %v15778_v46 = vadd.f32 %v15349_v52, %v19780_v12  ;;  %v11195_v56 = vpop.f32.mrb[47].mxu1 }
 0x64a   : > { %11452 = vst.msk [vmem:[%s19852_s20 + $0x30] sm:$0xff] %vm2442_vm2, %v11420_v45  ;;  %v11390_v10 = vadd.f32 %v19839_v34, %v11351_v47  ;;  %v15779_v58 = vadd.f32 %v11195_v56, %v19782_v13 }
 0x64b   : > { %v11423_v61 = vmax.f32 %v11391_v7, 0.0  ;;  %v11354_v42 = vmul.f32 %v15778_v46, %v19833_v32 }
 0x64c   : > { %v11422_v51 = vmax.f32 %v11390_v10, 0.0  ;;  %v11353_v2 = vmul.f32 %v15779_v58, %v19833_v32  ;;  %v15352_v6 = vpop.f32.mrb[48].mxu1 }
 0x64d   : > { %11455 = vst.msk [vmem:[%s19852_s20 + $0x48] sm:$0xff] %vm2442_vm2, %v11423_v61  ;;  %v11393_v12 = vadd.f32 %v19839_v34, %v11354_v42  ;;  %v15780_v54 = vadd.f32 %v15352_v6, %v19786_v17  ;;  %v11205_v8 = vpop.f32.mrb[49].mxu1 }
 0x64e   : > { %11454 = vst.msk [vmem:[%s19852_s20 + $0x40] sm:$0xff] %vm2442_vm2, %v11422_v51  ;;  %v11392_v13 = vadd.f32 %v19839_v34, %v11353_v2  ;;  %v15781_v38 = vadd.f32 %v11205_v8, %v19788_v22 }
 0x64f   : > { %v11425_v11 = vmax.f32 %v11393_v12, 0.0  ;;  %v11356_v55 = vmul.f32 %v15780_v54, %v19833_v32 }
 0x650   : > { %v11424_v14 = vmax.f32 %v11392_v13, 0.0  ;;  %v11355_v21 = vmul.f32 %v15781_v38, %v19833_v32  ;;  %v15355_v23 = vpop.f32.mrb[50].mxu1 }
 0x651   : > { %11457 = vst.msk [vmem:[%s19852_s20 + $0x58] sm:$0xff] %vm2442_vm2, %v11425_v11  ;;  %v11395_v17 = vadd.f32 %v19839_v34, %v11356_v55  ;;  %v15782_v27 = vadd.f32 %v15355_v23, %v19792_v26  ;;  %v11215_v57 = vpop.f32.mrb[51].mxu1 }
 0x652   : > { %11456 = vst.msk [vmem:[%s19852_s20 + $0x50] sm:$0xff] %vm2442_vm2, %v11424_v14  ;;  %v11394_v22 = vadd.f32 %v19839_v34, %v11355_v21  ;;  %v15783_v60 = vadd.f32 %v11215_v57, %v19794_v59 }
 0x653   : > { %v11427_v4 = vmax.f32 %v11395_v17, 0.0  ;;  %v11358_v49 = vmul.f32 %v15782_v27, %v19833_v32 }
 0x654   : > { %v11426_v62 = vmax.f32 %v11394_v22, 0.0  ;;  %v11357_v35 = vmul.f32 %v15783_v60, %v19833_v32  ;;  %v15358_v19 = vpop.f32.mrb[52].mxu1 }
 0x655   : > { %11459 = vst.msk [vmem:[%s19852_s20 + $0x68] sm:$0xff] %vm2442_vm2, %v11427_v4  ;;  %v11397_v26 = vadd.f32 %v19839_v34, %v11358_v49  ;;  %v15784_v40 = vadd.f32 %v15358_v19, %v19798_v31  ;;  %v11225_v53 = vpop.f32.mrb[53].mxu1 }
 0x656   : > { %11458 = vst.msk [vmem:[%s19852_s20 + $0x60] sm:$0xff] %vm2442_vm2, %v11426_v62  ;;  %v11396_v59 = vadd.f32 %v19839_v34, %v11357_v35  ;;  %v15785_v24 = vadd.f32 %v11225_v53, %v19800_v63 }
 0x657   : > { %v11429_v28 = vmax.f32 %v11397_v26, 0.0  ;;  %v11360_v1 = vmul.f32 %v15784_v40, %v19833_v32 }
 0x658   : > { %v11428_v0 = vmax.f32 %v11396_v59, 0.0  ;;  %v11359_v5 = vmul.f32 %v15785_v24, %v19833_v32  ;;  %v15361_v3 = vpop.f32.mrb[54].mxu1 }
 0x659   : > { %11461 = vst.msk [vmem:[%s19852_s20 + $0x78] sm:$0xff] %vm2442_vm2, %v11429_v28  ;;  %v11399_v31 = vadd.f32 %v19839_v34, %v11360_v1  ;;  %v15786_v36 = vadd.f32 %v15361_v3, %v19804_v33  ;;  %v11235_v43 = vpop.f32.mrb[55].mxu1 }
 0x65a   : > { %11460 = vst.msk [vmem:[%s19852_s20 + $0x70] sm:$0xff] %vm2442_vm2, %v11428_v0  ;;  %v11398_v63 = vadd.f32 %v19839_v34, %v11359_v5  ;;  %v15787_v15 = vadd.f32 %v11235_v43, %v19806_v39 }
 0x65b   : > { %v11431_v45 = vmax.f32 %v11399_v31, 0.0  ;;  %v11362_v47 = vmul.f32 %v15786_v36, %v19833_v32 }
 0x65c   : > { %v11430_v52 = vmax.f32 %v11398_v63, 0.0  ;;  %v11361_v7 = vmul.f32 %v15787_v15, %v19833_v32  ;;  %v15364_v46 = vpop.f32.mrb[56].mxu1 }
 0x65d   : > { %11463 = vst.msk [vmem:[%s19852_s20 + $0x88] sm:$0xff] %vm2442_vm2, %v11431_v45  ;;  %v11401_v33 = vadd.f32 %v19839_v34, %v11362_v47  ;;  %v15788_v56 = vadd.f32 %v15364_v46, %v19810_v44  ;;  %v11245_v10 = vpop.f32.mrb[57].mxu1 }
 0x65e   : > { %11462 = vst.msk [vmem:[%s19852_s20 + $0x80] sm:$0xff] %vm2442_vm2, %v11430_v52  ;;  %v11400_v39 = vadd.f32 %v19839_v34, %v11361_v7  ;;  %v15789_v58 = vadd.f32 %v11245_v10, %v19812_v20 }
 0x65f   : > { %v11433_v61 = vmax.f32 %v11401_v33, 0.0  ;;  %v11364_v42 = vmul.f32 %v15788_v56, %v19833_v32 }
 0x660   : > { %v11432_v51 = vmax.f32 %v11400_v39, 0.0  ;;  %v11363_v2 = vmul.f32 %v15789_v58, %v19833_v32  ;;  %v15367_v6 = vpop.f32.mrb[58].mxu1 }
 0x661   : > { %11465 = vst.msk [vmem:[%s19852_s20 + $0x98] sm:$0xff] %vm2442_vm2, %v11433_v61  ;;  %v11403_v44 = vadd.f32 %v19839_v34, %v11364_v42  ;;  %v15790_v12 = vadd.f32 %v15367_v6, %v19816_v25  ;;  %v11255_v54 = vpop.f32.mrb[59].mxu1 }
 0x662   : > { %11464 = vst.msk [vmem:[%s19852_s20 + $0x90] sm:$0xff] %vm2442_vm2, %v11432_v51  ;;  %v11402_v20 = vadd.f32 %v19839_v34, %v11363_v2  ;;  %v15791_v8 = vadd.f32 %v11255_v54, %v19818_v29 }
 0x663   : > { %v11435_v13 = vmax.f32 %v11403_v44, 0.0  ;;  %v11366_v38 = vmul.f32 %v15790_v12, %v19833_v32 }
 0x664   : > { %v11434_v11 = vmax.f32 %v11402_v20, 0.0  ;;  %v11365_v55 = vmul.f32 %v15791_v8, %v19833_v32  ;;  %v15370_v14 = vpop.f32.mrb[60].mxu1 }
 0x665   : > { %11467 = vst.msk [vmem:[%s19852_s20 + $0xa8] sm:$0xff] %vm2442_vm2, %v11435_v13  ;;  %v11405_v25 = vadd.f32 %v19839_v34, %v11366_v38  ;;  %v15792_v21 = vadd.f32 %v15370_v14, %v19821_v16  ;;  %v11265_v23 = vpop.f32.mrb[61].mxu1 }
 0x666   : > { %11466 = vst.msk [vmem:[%s19852_s20 + $0xa0] sm:$0xff] %vm2442_vm2, %v11434_v11  ;;  %v11404_v29 = vadd.f32 %v19839_v34, %v11365_v55  ;;  %v15793_v17 = vadd.f32 %v11265_v23, %v19823_v30 }
 0x667   : > { %v11437_v27 = vmax.f32 %v11405_v25, 0.0  ;;  %v11368_v57 = vmul.f32 %v15792_v21, %v19833_v32 }
 0x668   : > { %v11436_v22 = vmax.f32 %v11404_v29, 0.0  ;;  %v11367_v60 = vmul.f32 %v15793_v17, %v19833_v32  ;;  %v15373_v4 = vpop.f32.mrb[62].mxu1 }
 0x669   : > { %11469 = vst.msk [vmem:[%s19852_s20 + $0xb8] sm:$0xff] %vm2442_vm2, %v11437_v27  ;;  %v11407_v16 = vadd.f32 %v19839_v34, %v11368_v57  ;;  %v15794_v49 = vadd.f32 %v15373_v4, %v19825_v18  ;;  %v11275_v62 = vpop.f32.mrb[63].mxu1 }
 0x66a   : > { %11468 = vst.msk [vmem:[%s19852_s20 + $0xb0] sm:$0xff] %vm2442_vm2, %v11436_v22  ;;  %v11406_v30 = vadd.f32 %v19839_v34, %v11367_v60  ;;  %v15795_v35 = vadd.f32 %v11275_v62, %v19827_v50 }
 0x66b   : > { %v11439_v19 = vmax.f32 %v11407_v16, 0.0  ;;  %v11370_v26 = vmul.f32 %v15794_v49, %v19833_v32 }
 0x66c   : > { %v11438_v40 = vmax.f32 %v11406_v30, 0.0  ;;  %v11369_v53 = vmul.f32 %v15795_v35, %v19833_v32  ;;  %v15376_v59 = vpop.f32.mrb[32].mxu1 }
 0x66d   : > { %11471 = vst.msk [vmem:[%s19852_s20 + $0xc8] sm:$0xff] %vm2442_vm2, %v11439_v19  ;;  %v11409_v18 = vadd.f32 %v19839_v34, %v11370_v26  ;;  %v15796_v24 = vadd.f32 %v15376_v59, %v19738_v9  ;;  %v11285_v28 = vpop.f32.mrb[33].mxu1 }
 0x66e   : > { %11470 = vst.msk [vmem:[%s19852_s20 + $0xc0] sm:$0xff] %vm2442_vm2, %v11438_v40  ;;  %v11408_v50 = vadd.f32 %v19839_v34, %v11369_v53  ;;  %v15797_v1 = vadd.f32 %v11285_v28, %v19740_v37 }
 0x66f   : > { %v11441_v0 = vmax.f32 %v11409_v18, 0.0  ;;  %v11372_v5 = vmul.f32 %v15796_v24, %v19833_v32 }
 0x670   : > { %v11440_v3 = vmax.f32 %v11408_v50, 0.0  ;;  %v11371_v31 = vmul.f32 %v15797_v1, %v19833_v32  ;;  %v15379_v36 = vpop.f32.mrb[34].mxu1 }
 0x671   : > { %11473 = vst.msk [vmem:[%s19852_s20 + $0xd8] sm:$0xff] %vm2442_vm2, %v11441_v0  ;;  %v11411_v9 = vadd.f32 %v19839_v34, %v11372_v5  ;;  %v15798_v43 = vadd.f32 %v15379_v36, %v19744_v48  ;;  %v11295_v63 = vpop.f32.mrb[35].mxu1 }
 0x672   : > { %11472 = vst.msk [vmem:[%s19852_s20 + $0xd0] sm:$0xff] %vm2442_vm2, %v11440_v3  ;;  %v11410_v37 = vadd.f32 %v19839_v34, %v11371_v31  ;;  %v15799_v15 = vadd.f32 %v11295_v63, %v19746_v41 }
 0x673   : > { %v11443_v45 = vmax.f32 %v11411_v9, 0.0  ;;  %v11374_v47 = vmul.f32 %v15798_v43, %v19833_v32 }
 0x674   : > { %v11442_v52 = vmax.f32 %v11410_v37, 0.0  ;;  %v11373_v7 = vmul.f32 %v15799_v15, %v19833_v32 }
 0x675   : > { %11475 = vst.msk [vmem:[%s19852_s20 + $0xe8] sm:$0xff] %vm2442_vm2, %v11443_v45  ;;  %v11413_v48 = vadd.f32 %v19839_v34, %v11374_v47 }
 0x676   : > { %11474 = vst.msk [vmem:[%s19852_s20 + $0xe0] sm:$0xff] %vm2442_vm2, %v11442_v52  ;;  %v11412_v46 = vadd.f32 %v19839_v34, %v11373_v7 }
 0x677   : > { %v11445_v41 = vmax.f32 %v11413_v48, 0.0 }
 0x678   : > { %v11444_v32 = vmax.f32 %v11412_v46, 0.0 }
 0x679   : > { %11477 = vst.msk [vmem:[%s19852_s20 + $0xf8] sm:$0xff] %vm2442_vm2, %v11445_v41 }
 0x67a   : > { %11476 = vst.msk [vmem:[%s19852_s20 + $0xf0] sm:$0xff] %vm2442_vm2, %v11444_v32 }
 0x67b   : > { %16528 = shalt.err (!%p16525_p3)
}
 0x67c   : > { %s16529_s15 = scalar_lea.hbm %s20005_s23, 4096  ;;  %s16533_s27 = scalar_lea.hbm %s20069_s13, 8192 }
 0x67d   : > { %p16530_p4 = scmp.ne.s32.totalorder %s20005_s23, %s16529_s15  ;;  %p16534_p9 = scmp.lt.u32.totalorder %s20005_s23, %s20069_s13 }
 0x67e   : > { %p16535_p10 = scmp.lt.u32.totalorder %s16533_s27, %s16529_s15  ;;  %p16537_p12 = scmp.lt.u32.totalorder %s16529_s15, %s20005_s23 }
 0x67f   : > { %p16531_p7 = pnand %p16530_p4, %p16691_p5 }
 0x680   : > { %p16536_p11 = por %p16535_p10, %p16534_p9 }
 0x681   : > { %p16532_p8 = pneg %p16531_p7 }
 0x682   : > { %p16538_p13 = por %p16537_p12, %p16536_p11 }
 0x684   : > { %p16539_p0 = pnand %p16538_p13, %p16532_p8 }
 0x686   : > { %16542 = shalt.err (!%p16539_p0)
}
 0x687   : > { %s16581_s30 = smov 128   ;;  %s16582_s21 = smov 8  }
 0x688   : > { %16473 = dma.vmem_to_hbm [thread:$0]  (%p16691_p5), %s20007_s22, 4096, %s20005_s23, %s20015_s29, %s16581_s30, %s16581_s30, %s16582_s21  }
 0x689 PF: > { %p16479_p1 = scmp.ge.s32.totalorder %s16577_s28, 2  ;;  %s11507_s20 = sand.u32 1, %s16565_s25  }
 0x68a   : > { %s11508_s15 = scalar_lea.sflag [#allocation5], %s11507_s20 }
 0x68b   : > { %p16476_p2 = pnand %p16479_p1, %p16695_p6 }
 0x68d   : > { %16560 = dma.done.wait (!%p16476_p2), %s11508_s15, 4096  }
 0x68e   : > { %16562 = vsyncadd (!%p16476_p2), %s11508_s15, 4294963200  ;;  %s20075_s24 = sld [smem:[#allocation7_spill]]  ;;  %s20076_s27 = sld [smem:[#allocation8_spill]] }
 0x68f   : > { %p23_p3 = scmp.ge.s32.totalorder %s16678_s14, 4   ;;  %s20077_s25 = smov %s16569_s26 }
 0x690   : > { %s20079_s28 = smov %s16678_s14 }
 0x691   :  { %25 = sbr.rel (!%p23_p3) target bundleno = 3 (0x3), region = 146 }
 0x694   : > { %s20078_s26 = smov %s20075_s24 }
 0x698   :  { %11513 = vsyncpa [#allocation5], 1 }
 0x699   :  { %11515 = vsyncpa [#allocation5 + $0x1], 1 }

</bundles_post_ra>
